<compile_context>
chip_gen: v7x
topology: tpu7x:2x2x1
jax: 0.10.0
libtpu: 0.0.40
codegen_flags: <defaults>
</compile_context>

<pallas_src>
import functools

import jax
import jax.numpy as jnp
from jax.experimental import pallas as pl
from jax.experimental.pallas import tpu as pltpu


# TODO(synk): DynamicConv2d's hash-bucket querying / dynamic active-channel
# selection (Python hash tables, dict sorting, per-forward in-place weight
# mutation) is host-side control flow with no clean Pallas equivalent; only the
# InceptionC block of Inception3_DS_Hash is lowered here.

_CPAD = 256  # each 192-wide branch output is padded to 256 channels (full tiles)


def _inception_c_kernel(x_ref,
                        w_p1, b_p1,
                        w_a2, b_a2, w_a3, b_a3,
                        w_b2, b_b2, w_b3, b_b3, w_b4, b_b4, w_b5, b_b5,
                        w_pl, b_pl,
                        o_ref,
                        *, H, W, CIN, C7):
    """Whole InceptionC block for one batch element (channel-major layout).

    x_ref : (1, CIN, H*W) f32 input (NCHW with spatial flattened)
    w_*   : bf16 folded-BN weights, channel-major:
              w_p1 (256+2*C7, CIN)  fused [branch1x1 | 7x7_1 | 7x7dbl_1] 1x1
              w_a2/b2/b3/b4 (C7, 7*C7), w_a3/b5 (256, 7*C7), w_pl (256, CIN)
    b_*   : f32 biases, (Cout, 1)
    o_ref : (1, 4, 256, H*W) f32 -- one padded (256, HW) slab per branch
    """
    HW = H * W
    f32 = jnp.float32
    bf16 = jnp.bfloat16

    # Lane-position iotas, hoisted (computed once per grid step).
    hw7 = jax.lax.broadcasted_iota(jnp.int32, (C7, HW), 1)    # flat hw index
    col7 = hw7 % W                                            # column (w) index
    hwx = jax.lax.broadcasted_iota(jnp.int32, (CIN, HW), 1)
    colx = hwx % W

    def shift(t, d_lanes, valid):
        """out[:, i] = t[:, i + d_lanes] (zero where `valid` is False)."""
        r = pltpu.roll(t, (-d_lanes) % HW, 1)
        return jnp.where(valid, r, 0.0)

    def taps_w(t, col_idx):
        """(1,7) conv taps: shifts along W, zero outside the row."""
        taps = []
        for kw in range(7):
            d = kw - 3
            if d == 0:
                taps.append(t)
            elif d < 0:
                taps.append(shift(t, d, col_idx >= -d))
            else:
                taps.append(shift(t, d, col_idx < W - d))
        return jnp.concatenate(taps, axis=0)                  # (7*C7, HW)

    def taps_h(t, hw_idx):
        """(7,1) conv taps: shifts along H (whole rows), zero outside the image."""
        taps = []
        for kh in range(7):
            d = kh - 3
            if d == 0:
                taps.append(t)
            elif d < 0:
                taps.append(shift(t, d * W, hw_idx >= -d * W))
            else:
                taps.append(shift(t, d * W, hw_idx < HW - d * W))
        return jnp.concatenate(taps, axis=0)                  # (7*C7, HW)

    def cbr(w_ref, b_ref, act):
        """Conv (one matmul) + folded-BN bias + ReLU; bf16 inputs, f32 accumulate."""
        y = jnp.dot(w_ref[...], act.astype(bf16), preferred_element_type=f32)
        return jnp.maximum(y + b_ref[...], 0.0)

    x = x_ref[0]                                              # (CIN, HW) f32

    # --- branches 0/1/2: one fused 1x1 matmul from x --------------------------
    y = cbr(w_p1, b_p1, x)                                    # (256 + 2*C7, HW)
    o_ref[0, 0] = y[:_CPAD, :]                                # branch1x1 (pad rows are 0)
    t_a = y[_CPAD:_CPAD + C7, :]                              # branch7x7_1
    t_b = y[_CPAD + C7:_CPAD + 2 * C7, :]                     # branch7x7dbl_1

    # --- branch 1: 1x1 -> (1,7) -> (7,1) --------------------------------------
    t = cbr(w_a2, b_a2, taps_w(t_a, col7))
    o_ref[0, 1] = cbr(w_a3, b_a3, taps_h(t, hw7))

    # --- branch 2: 1x1 -> (7,1) -> (1,7) -> (7,1) -> (1,7) ---------------------
    t = cbr(w_b2, b_b2, taps_h(t_b, hw7))
    t = cbr(w_b3, b_b3, taps_w(t, col7))
    t = cbr(w_b4, b_b4, taps_h(t, hw7))
    o_ref[0, 2] = cbr(w_b5, b_b5, taps_w(t, col7))

    # --- branch 3: separable 3x3 avg pool (stride 1, pad 1, /9) -> 1x1 ---------
    hsum = x + shift(x, -1, colx >= 1) + shift(x, 1, colx < W - 1)
    vsum = hsum + shift(hsum, -W, hwx >= W) + shift(hsum, W, hwx < HW - W)
    o_ref[0, 3] = cbr(w_pl, b_pl, vsum * (1.0 / 9.0))


def _fold_cm(p):
    """Fold BN; return channel-major weight (Cout, taps*Cin) f32 and bias (Cout,1) f32."""
    w = p["w_oihw"].astype(jnp.float32)                       # (Cout, Cin, kh, kw)
    cout, cin, kh, kw = w.shape
    w = w * p["scale"].reshape(cout, 1, 1, 1)
    # column order: tap-major, channel-minor -> idx = (kh*KW + kw)*Cin + cin,
    # matching the in-kernel tap concatenation order.
    w = jnp.transpose(w, (0, 2, 3, 1)).reshape(cout, kh * kw * cin)
    b = p["bias"].reshape(cout, 1).astype(jnp.float32)
    return w, b


def _pad_cout(w, b, rows):
    pad = rows - w.shape[0]
    return jnp.pad(w, ((0, pad), (0, 0))), jnp.pad(b, ((0, pad), (0, 0)))


def _replicated_spec(shape):
    rank = len(shape)
    return pl.BlockSpec(tuple(shape), lambda n, _r=rank: (0,) * _r)


def inception_c_forward(x_nchw, params):
    """InceptionC forward: (N, Cin, H, W) -> (N, 768, H, W), NCHW like PyTorch."""
    N, CIN, H, W = x_nchw.shape
    C7 = params["branch7x7_1"]["w_oihw"].shape[0]
    HW = H * W

    # NCHW is already channel-major: flattening the spatial dims is free.
    x = x_nchw.reshape(N, CIN, HW).astype(jnp.float32)

    bf16 = jnp.bfloat16
    w1, b1 = _pad_cout(*_fold_cm(params["branch1x1"]), _CPAD)
    wa1, ba1 = _fold_cm(params["branch7x7_1"])
    wb1, bb1 = _fold_cm(params["branch7x7dbl_1"])
    w_p1 = jnp.concatenate([w1, wa1, wb1], axis=0)            # fused 1x1 pack
    b_p1 = jnp.concatenate([b1, ba1, bb1], axis=0)

    wa2, ba2 = _fold_cm(params["branch7x7_2"])
    wa3, ba3 = _pad_cout(*_fold_cm(params["branch7x7_3"]), _CPAD)
    wb2, bb2 = _fold_cm(params["branch7x7dbl_2"])
    wb3, bb3 = _fold_cm(params["branch7x7dbl_3"])
    wb4, bb4 = _fold_cm(params["branch7x7dbl_4"])
    wb5, bb5 = _pad_cout(*_fold_cm(params["branch7x7dbl_5"]), _CPAD)
    wpl, bpl = _pad_cout(*_fold_cm(params["branch_pool"]), _CPAD)

    inputs = [x]
    in_specs = [pl.BlockSpec((1, CIN, HW), lambda n: (n, 0, 0))]
    for w, b in ((w_p1, b_p1), (wa2, ba2), (wa3, ba3),
                 (wb2, bb2), (wb3, bb3), (wb4, bb4), (wb5, bb5),
                 (wpl, bpl)):
        w16 = w.astype(bf16)
        inputs += [w16, b]
        in_specs += [_replicated_spec(w16.shape), _replicated_spec(b.shape)]

    kernel = functools.partial(_inception_c_kernel, H=H, W=W, CIN=CIN, C7=C7)
    out = pl.pallas_call(
        kernel,
        out_shape=jax.ShapeDtypeStruct((N, 4, _CPAD, HW), jnp.float32),
        grid_spec=pltpu.PrefetchScalarGridSpec(
            num_scalar_prefetch=0,
            grid=(N,),
            in_specs=in_specs,
            out_specs=pl.BlockSpec((1, 4, _CPAD, HW), lambda n: (n, 0, 0, 0)),
        ),
        compiler_params=pltpu.CompilerParams(
            dimension_semantics=("parallel",)),   # batch across TCs on v7x
    )(*inputs)

    # (N, 4, 256, HW) -> drop channel padding -> NCHW (pure reshapes).
    return out[:, :, :192, :].reshape(N, 4 * 192, H, W)


def init_basic_conv(key, cin, cout, kh, kw, eps=1e-3):
    """Deterministic BasicConv2d params; BN (eval mode) folded to scale/bias."""
    k1, k2, k3, k4, k5 = jax.random.split(key, 5)
    w_oihw = 0.05 * jax.random.normal(k1, (cout, cin, kh, kw), jnp.float32)
    gamma = 1.0 + 0.1 * jax.random.normal(k2, (cout,), jnp.float32)
    beta = 0.1 * jax.random.normal(k3, (cout,), jnp.float32)
    mean = 0.1 * jax.random.normal(k4, (cout,), jnp.float32)
    var = jax.random.uniform(k5, (cout,), jnp.float32, minval=0.5, maxval=1.5)
    scale = gamma / jnp.sqrt(var + eps)
    bias = beta - mean * scale
    return {"w_oihw": w_oihw, "scale": scale.reshape(1, cout),
            "bias": bias.reshape(1, cout), "ksize": (kh, kw)}


def init_inception_c(key, in_channels, channels_7x7):
    c7 = channels_7x7
    specs = {
        "branch1x1":      (in_channels, 192, 1, 1),
        "branch7x7_1":    (in_channels, c7, 1, 1),
        "branch7x7_2":    (c7, c7, 1, 7),
        "branch7x7_3":    (c7, 192, 7, 1),
        "branch7x7dbl_1": (in_channels, c7, 1, 1),
        "branch7x7dbl_2": (c7, c7, 7, 1),
        "branch7x7dbl_3": (c7, c7, 1, 7),
        "branch7x7dbl_4": (c7, c7, 7, 1),
        "branch7x7dbl_5": (c7, 192, 1, 7),
        "branch_pool":    (in_channels, 192, 1, 1),
    }
    keys = jax.random.split(key, len(specs))
    return {name: init_basic_conv(k, *spec)
            for k, (name, spec) in zip(keys, specs.items())}


def _reference_inception_c(x_nchw, params):
    """Pure-JAX (XLA) reference of the same InceptionC forward, NCHW."""
    def bcr(name, inp):
        p = params[name]
        kh, kw = p["ksize"]
        y = jax.lax.conv_general_dilated(
            inp, p["w_oihw"], window_strides=(1, 1),
            padding=[(kh // 2, kh // 2), (kw // 2, kw // 2)],
            dimension_numbers=("NCHW", "OIHW", "NCHW"),
            precision=jax.lax.Precision.HIGHEST)
        y = y * p["scale"].reshape(1, -1, 1, 1) + p["bias"].reshape(1, -1, 1, 1)
        return jnp.maximum(y, 0.0)

    b1 = bcr("branch1x1", x_nchw)
    b7 = bcr("branch7x7_3", bcr("branch7x7_2", bcr("branch7x7_1", x_nchw)))
    bd = bcr("branch7x7dbl_1", x_nchw)
    bd = bcr("branch7x7dbl_2", bd)
    bd = bcr("branch7x7dbl_3", bd)
    bd = bcr("branch7x7dbl_4", bd)
    bd = bcr("branch7x7dbl_5", bd)
    pooled = jax.lax.reduce_window(
        x_nchw, 0.0, jax.lax.add, (1, 1, 3, 3), (1, 1, 1, 1),
        [(0, 0), (0, 0), (1, 1), (1, 1)]) / 9.0
    bp = bcr("branch_pool", pooled)
    return jnp.concatenate([b1, b7, bd, bp], axis=1)


if __name__ == "__main__":
    key = jax.random.PRNGKey(0)
    k_x, k_p = jax.random.split(key)

    N, C, H, W = 2, 4, 16, 16          # small shapes consistent with the module
    channels_7x7 = 8

    x = jax.random.normal(k_x, (N, C, H, W), jnp.float32)
    params = init_inception_c(k_p, C, channels_7x7)

    fwd = jax.jit(inception_c_forward)
    y = jax.block_until_ready(fwd(x, params))

    assert y.shape == (N, 4 * 192, H, W), y.shape
    assert y.dtype == jnp.float32

    # Validate against the pure-XLA reference of the same block.
    y_ref = jax.block_until_ready(_reference_inception_c(x, params))
    max_err = float(jnp.max(jnp.abs(y - y_ref)))
    assert max_err < 3e-2, f"max abs error vs reference: {max_err}"

    print("KERNEL_OK")
</pallas_src>

<mosaic_0001>
module attributes {stable_mosaic.version = 11 : i64} {
  func.func @_inception_c_kernel(%arg0: i32, %arg1: memref<1x4x256xf32, #tpu.memory_space<vmem>>, %arg2: memref<272x4xbf16, #tpu.memory_space<vmem>>, %arg3: memref<272x1xf32, #tpu.memory_space<vmem>>, %arg4: memref<8x56xbf16, #tpu.memory_space<vmem>>, %arg5: memref<8x1xf32, #tpu.memory_space<vmem>>, %arg6: memref<256x56xbf16, #tpu.memory_space<vmem>>, %arg7: memref<256x1xf32, #tpu.memory_space<vmem>>, %arg8: memref<8x56xbf16, #tpu.memory_space<vmem>>, %arg9: memref<8x1xf32, #tpu.memory_space<vmem>>, %arg10: memref<8x56xbf16, #tpu.memory_space<vmem>>, %arg11: memref<8x1xf32, #tpu.memory_space<vmem>>, %arg12: memref<8x56xbf16, #tpu.memory_space<vmem>>, %arg13: memref<8x1xf32, #tpu.memory_space<vmem>>, %arg14: memref<256x56xbf16, #tpu.memory_space<vmem>>, %arg15: memref<256x1xf32, #tpu.memory_space<vmem>>, %arg16: memref<256x4xbf16, #tpu.memory_space<vmem>>, %arg17: memref<256x1xf32, #tpu.memory_space<vmem>>, %arg18: memref<1x4x256x256xf32, #tpu.memory_space<vmem>>) attributes {dimension_semantics = [#tpu.dimension_semantics<parallel>], iteration_bounds = array<i64: 2>, scalar_prefetch = 0 : i64, scratch_operands = 0 : i64, tpu.core_type = #tpu.core_type<tc>, window_params = [{transform_indices = @transform_0, window_bounds = array<i64: 1, 4, 256>}, {pipeline_mode = #tpu.pipeline_mode<synchronous>, transform_indices = @transform_1, window_bounds = array<i64: 272, 4>}, {pipeline_mode = #tpu.pipeline_mode<synchronous>, transform_indices = @transform_2, window_bounds = array<i64: 272, 1>}, {pipeline_mode = #tpu.pipeline_mode<synchronous>, transform_indices = @transform_3, window_bounds = array<i64: 8, 56>}, {pipeline_mode = #tpu.pipeline_mode<synchronous>, transform_indices = @transform_4, window_bounds = array<i64: 8, 1>}, {pipeline_mode = #tpu.pipeline_mode<synchronous>, transform_indices = @transform_5, window_bounds = array<i64: 256, 56>}, {pipeline_mode = #tpu.pipeline_mode<synchronous>, transform_indices = @transform_6, window_bounds = array<i64: 256, 1>}, {pipeline_mode = #tpu.pipeline_mode<synchronous>, transform_indices = @transform_7, window_bounds = array<i64: 8, 56>}, {pipeline_mode = #tpu.pipeline_mode<synchronous>, transform_indices = @transform_8, window_bounds = array<i64: 8, 1>}, {pipeline_mode = #tpu.pipeline_mode<synchronous>, transform_indices = @transform_9, window_bounds = array<i64: 8, 56>}, {pipeline_mode = #tpu.pipeline_mode<synchronous>, transform_indices = @transform_10, window_bounds = array<i64: 8, 1>}, {pipeline_mode = #tpu.pipeline_mode<synchronous>, transform_indices = @transform_11, window_bounds = array<i64: 8, 56>}, {pipeline_mode = #tpu.pipeline_mode<synchronous>, transform_indices = @transform_12, window_bounds = array<i64: 8, 1>}, {pipeline_mode = #tpu.pipeline_mode<synchronous>, transform_indices = @transform_13, window_bounds = array<i64: 256, 56>}, {pipeline_mode = #tpu.pipeline_mode<synchronous>, transform_indices = @transform_14, window_bounds = array<i64: 256, 1>}, {pipeline_mode = #tpu.pipeline_mode<synchronous>, transform_indices = @transform_15, window_bounds = array<i64: 256, 4>}, {pipeline_mode = #tpu.pipeline_mode<synchronous>, transform_indices = @transform_16, window_bounds = array<i64: 256, 1>}, {transform_indices = @transform_17, window_bounds = array<i64: 1, 4, 256, 256>}]} {
    %0 = tpu.iota {dimensions = array<i32: 1>} : vector<8x256xi32>
    %c16_i32 = arith.constant 16 : i32
    %c0_i32 = arith.constant 0 : i32
    %1 = arith.cmpi eq, %c16_i32, %c0_i32 : i32
    %c1_i32 = arith.constant 1 : i32
    %2 = arith.select %1, %c1_i32, %c16_i32 : i32
    %3 = vector.broadcast %2 : i32 to vector<8x256xi32>
    %4 = arith.remsi %0, %3 : vector<8x256xi32>
    %c0_i32_0 = arith.constant 0 : i32
    %5 = vector.broadcast %c0_i32_0 : i32 to vector<8x256xi32>
    %6 = arith.cmpi ne, %4, %5 : vector<8x256xi32>
    %c0_i32_1 = arith.constant 0 : i32
    %7 = vector.broadcast %c0_i32_1 : i32 to vector<8x256xi32>
    %8 = arith.cmpi slt, %4, %7 : vector<8x256xi32>
    %c0_i32_2 = arith.constant 0 : i32
    %9 = arith.cmpi slt, %2, %c0_i32_2 : i32
    %10 = vector.broadcast %9 : i1 to vector<8x256xi1>
    %11 = vector.broadcast %10 : vector<8x256xi1> to vector<8x256xi1>
    %12 = arith.xori %8, %11 : vector<8x256xi1>
    %13 = arith.andi %12, %6 : vector<8x256xi1>
    %14 = vector.broadcast %2 : i32 to vector<8x256xi32>
    %15 = arith.addi %4, %14 : vector<8x256xi32>
    %16 = arith.select %13, %15, %4 : vector<8x256xi1>, vector<8x256xi32>
    %17 = tpu.iota {dimensions = array<i32: 1>} : vector<4x256xi32>
    %c16_i32_3 = arith.constant 16 : i32
    %c0_i32_4 = arith.constant 0 : i32
    %18 = arith.cmpi eq, %c16_i32_3, %c0_i32_4 : i32
    %c1_i32_5 = arith.constant 1 : i32
    %19 = arith.select %18, %c1_i32_5, %c16_i32_3 : i32
    %20 = vector.broadcast %19 : i32 to vector<4x256xi32>
    %21 = arith.remsi %17, %20 : vector<4x256xi32>
    %c0_i32_6 = arith.constant 0 : i32
    %22 = vector.broadcast %c0_i32_6 : i32 to vector<4x256xi32>
    %23 = arith.cmpi ne, %21, %22 : vector<4x256xi32>
    %c0_i32_7 = arith.constant 0 : i32
    %24 = vector.broadcast %c0_i32_7 : i32 to vector<4x256xi32>
    %25 = arith.cmpi slt, %21, %24 : vector<4x256xi32>
    %c0_i32_8 = arith.constant 0 : i32
    %26 = arith.cmpi slt, %19, %c0_i32_8 : i32
    %27 = vector.broadcast %26 : i1 to vector<4x256xi1>
    %28 = vector.broadcast %27 : vector<4x256xi1> to vector<4x256xi1>
    %29 = arith.xori %25, %28 : vector<4x256xi1>
    %30 = arith.andi %29, %23 : vector<4x256xi1>
    %31 = vector.broadcast %19 : i32 to vector<4x256xi32>
    %32 = arith.addi %21, %31 : vector<4x256xi32>
    %33 = arith.select %30, %32, %21 : vector<4x256xi1>, vector<4x256xi32>
    %c0 = arith.constant 0 : index
    %c0_9 = arith.constant 0 : index
    %c0_10 = arith.constant 0 : index
    %34 = vector.load %arg1[%c0, %c0_9, %c0_10] : memref<1x4x256xf32, #tpu.memory_space<vmem>>, vector<1x4x256xf32>
    %35 = vector.shape_cast %34 : vector<1x4x256xf32> to vector<4x256xf32>
    %c0_11 = arith.constant 0 : index
    %c0_12 = arith.constant 0 : index
    %36 = vector.load %arg2[%c0_11, %c0_12] : memref<272x4xbf16, #tpu.memory_space<vmem>>, vector<272x4xbf16>
    %37 = arith.truncf %35 : vector<4x256xf32> to vector<4x256xbf16>
    %cst = arith.constant dense<0.000000e+00> : vector<272x256xf32>
    %38 = tpu.matmul %36, %37, %cst {dimension_numbers = #tpu.dot_dimension_numbers<[1], [0], [0], [1], [0, 0, 1, 1], [], []>} : vector<272x4xbf16>, vector<4x256xbf16>, vector<272x256xf32> -> vector<272x256xf32>
    %c0_13 = arith.constant 0 : index
    %c0_14 = arith.constant 0 : index
    %39 = vector.load %arg3[%c0_13, %c0_14] : memref<272x1xf32, #tpu.memory_space<vmem>>, vector<272x1xf32>
    %40 = vector.broadcast %39 : vector<272x1xf32> to vector<272x256xf32>
    %41 = arith.addf %38, %40 : vector<272x256xf32>
    %cst_15 = arith.constant 0.000000e+00 : f32
    %42 = vector.broadcast %cst_15 : f32 to vector<272x256xf32>
    %43 = arith.maximumf %41, %42 : vector<272x256xf32>
    %44 = vector.extract_strided_slice %43 {offsets = [0, 0], sizes = [256, 256], strides = [1, 1]} : vector<272x256xf32> to vector<256x256xf32>
    %c0_16 = arith.constant 0 : index
    %c0_17 = arith.constant 0 : index
    %c0_18 = arith.constant 0 : index
    %c0_19 = arith.constant 0 : index
    %45 = vector.load %arg18[%c0_16, %c0_17, %c0_18, %c0_19] : memref<1x4x256x256xf32, #tpu.memory_space<vmem>>, vector<1x1x256x256xf32>
    %46 = vector.shape_cast %45 : vector<1x1x256x256xf32> to vector<256x256xf32>
    %47 = vector.shape_cast %44 : vector<256x256xf32> to vector<1x1x256x256xf32>
    tpu.vector_store %arg18[%c0_16, %c0_17, %c0_18, %c0_19], %47 {strides = array<i32>} : memref<1x4x256x256xf32, #tpu.memory_space<vmem>>, vector<1x1x256x256xf32>,
    %48 = vector.extract_strided_slice %43 {offsets = [256, 0], sizes = [8, 256], strides = [1, 1]} : vector<272x256xf32> to vector<8x256xf32>
    %49 = vector.extract_strided_slice %43 {offsets = [264, 0], sizes = [8, 256], strides = [1, 1]} : vector<272x256xf32> to vector<8x256xf32>
    %c3_i32 = arith.constant 3 : i32
    %50 = vector.broadcast %c3_i32 : i32 to vector<8x256xi32>
    %51 = arith.cmpi sge, %16, %50 : vector<8x256xi32>
    %c3_i32_20 = arith.constant 3 : i32
    %52 = tpu.dynamic_rotate %48 by %c3_i32_20 dim 1 : vector<8x256xf32>, i32 -> vector<8x256xf32>
    %cst_21 = arith.constant 0.000000e+00 : f32
    %53 = vector.broadcast %cst_21 : f32 to vector<8x256xf32>
    %54 = arith.select %51, %52, %53 : vector<8x256xi1>, vector<8x256xf32>
    %c2_i32 = arith.constant 2 : i32
    %55 = vector.broadcast %c2_i32 : i32 to vector<8x256xi32>
    %56 = arith.cmpi sge, %16, %55 : vector<8x256xi32>
    %c2_i32_22 = arith.constant 2 : i32
    %57 = tpu.dynamic_rotate %48 by %c2_i32_22 dim 1 : vector<8x256xf32>, i32 -> vector<8x256xf32>
    %cst_23 = arith.constant 0.000000e+00 : f32
    %58 = vector.broadcast %cst_23 : f32 to vector<8x256xf32>
    %59 = arith.select %56, %57, %58 : vector<8x256xi1>, vector<8x256xf32>
    %c1_i32_24 = arith.constant 1 : i32
    %60 = vector.broadcast %c1_i32_24 : i32 to vector<8x256xi32>
    %61 = arith.cmpi sge, %16, %60 : vector<8x256xi32>
    %c1_i32_25 = arith.constant 1 : i32
    %62 = tpu.dynamic_rotate %48 by %c1_i32_25 dim 1 : vector<8x256xf32>, i32 -> vector<8x256xf32>
    %cst_26 = arith.constant 0.000000e+00 : f32
    %63 = vector.broadcast %cst_26 : f32 to vector<8x256xf32>
    %64 = arith.select %61, %62, %63 : vector<8x256xi1>, vector<8x256xf32>
    %c15_i32 = arith.constant 15 : i32
    %65 = vector.broadcast %c15_i32 : i32 to vector<8x256xi32>
    %66 = arith.cmpi slt, %16, %65 : vector<8x256xi32>
    %c255_i32 = arith.constant 255 : i32
    %67 = tpu.dynamic_rotate %48 by %c255_i32 dim 1 : vector<8x256xf32>, i32 -> vector<8x256xf32>
    %cst_27 = arith.constant 0.000000e+00 : f32
    %68 = vector.broadcast %cst_27 : f32 to vector<8x256xf32>
    %69 = arith.select %66, %67, %68 : vector<8x256xi1>, vector<8x256xf32>
    %c14_i32 = arith.constant 14 : i32
    %70 = vector.broadcast %c14_i32 : i32 to vector<8x256xi32>
    %71 = arith.cmpi slt, %16, %70 : vector<8x256xi32>
    %c254_i32 = arith.constant 254 : i32
    %72 = tpu.dynamic_rotate %48 by %c254_i32 dim 1 : vector<8x256xf32>, i32 -> vector<8x256xf32>
    %cst_28 = arith.constant 0.000000e+00 : f32
    %73 = vector.broadcast %cst_28 : f32 to vector<8x256xf32>
    %74 = arith.select %71, %72, %73 : vector<8x256xi1>, vector<8x256xf32>
    %c13_i32 = arith.constant 13 : i32
    %75 = vector.broadcast %c13_i32 : i32 to vector<8x256xi32>
    %76 = arith.cmpi slt, %16, %75 : vector<8x256xi32>
    %c253_i32 = arith.constant 253 : i32
    %77 = tpu.dynamic_rotate %48 by %c253_i32 dim 1 : vector<8x256xf32>, i32 -> vector<8x256xf32>
    %cst_29 = arith.constant 0.000000e+00 : f32
    %78 = vector.broadcast %cst_29 : f32 to vector<8x256xf32>
    %79 = arith.select %76, %77, %78 : vector<8x256xi1>, vector<8x256xf32>
    %80 = tpu.concatenate %54, %59, %64, %48, %69, %74, %79 in 0 : vector<8x256xf32>, vector<8x256xf32>, vector<8x256xf32>, vector<8x256xf32>, vector<8x256xf32>, vector<8x256xf32>, vector<8x256xf32> -> vector<56x256xf32>
    %c0_30 = arith.constant 0 : index
    %c0_31 = arith.constant 0 : index
    %81 = vector.load %arg4[%c0_30, %c0_31] : memref<8x56xbf16, #tpu.memory_space<vmem>>, vector<8x56xbf16>
    %82 = arith.truncf %80 : vector<56x256xf32> to vector<56x256xbf16>
    %cst_32 = arith.constant dense<0.000000e+00> : vector<8x256xf32>
    %83 = tpu.matmul %81, %82, %cst_32 {dimension_numbers = #tpu.dot_dimension_numbers<[1], [0], [0], [1], [0, 0, 1, 1], [], []>} : vector<8x56xbf16>, vector<56x256xbf16>, vector<8x256xf32> -> vector<8x256xf32>
    %c0_33 = arith.constant 0 : index
    %c0_34 = arith.constant 0 : index
    %84 = vector.load %arg5[%c0_33, %c0_34] : memref<8x1xf32, #tpu.memory_space<vmem>>, vector<8x1xf32>
    %85 = vector.broadcast %84 : vector<8x1xf32> to vector<8x256xf32>
    %86 = arith.addf %83, %85 : vector<8x256xf32>
    %cst_35 = arith.constant 0.000000e+00 : f32
    %87 = vector.broadcast %cst_35 : f32 to vector<8x256xf32>
    %88 = arith.maximumf %86, %87 : vector<8x256xf32>
    %c48_i32 = arith.constant 48 : i32
    %89 = vector.broadcast %c48_i32 : i32 to vector<8x256xi32>
    %90 = arith.cmpi sge, %0, %89 : vector<8x256xi32>
    %c48_i32_36 = arith.constant 48 : i32
    %91 = tpu.dynamic_rotate %88 by %c48_i32_36 dim 1 : vector<8x256xf32>, i32 -> vector<8x256xf32>
    %cst_37 = arith.constant 0.000000e+00 : f32
    %92 = vector.broadcast %cst_37 : f32 to vector<8x256xf32>
    %93 = arith.select %90, %91, %92 : vector<8x256xi1>, vector<8x256xf32>
    %c32_i32 = arith.constant 32 : i32
    %94 = vector.broadcast %c32_i32 : i32 to vector<8x256xi32>
    %95 = arith.cmpi sge, %0, %94 : vector<8x256xi32>
    %c32_i32_38 = arith.constant 32 : i32
    %96 = tpu.dynamic_rotate %88 by %c32_i32_38 dim 1 : vector<8x256xf32>, i32 -> vector<8x256xf32>
    %cst_39 = arith.constant 0.000000e+00 : f32
    %97 = vector.broadcast %cst_39 : f32 to vector<8x256xf32>
    %98 = arith.select %95, %96, %97 : vector<8x256xi1>, vector<8x256xf32>
    %c16_i32_40 = arith.constant 16 : i32
    %99 = vector.broadcast %c16_i32_40 : i32 to vector<8x256xi32>
    %100 = arith.cmpi sge, %0, %99 : vector<8x256xi32>
    %c16_i32_41 = arith.constant 16 : i32
    %101 = tpu.dynamic_rotate %88 by %c16_i32_41 dim 1 : vector<8x256xf32>, i32 -> vector<8x256xf32>
    %cst_42 = arith.constant 0.000000e+00 : f32
    %102 = vector.broadcast %cst_42 : f32 to vector<8x256xf32>
    %103 = arith.select %100, %101, %102 : vector<8x256xi1>, vector<8x256xf32>
    %c240_i32 = arith.constant 240 : i32
    %104 = vector.broadcast %c240_i32 : i32 to vector<8x256xi32>
    %105 = arith.cmpi slt, %0, %104 : vector<8x256xi32>
    %c240_i32_43 = arith.constant 240 : i32
    %106 = tpu.dynamic_rotate %88 by %c240_i32_43 dim 1 : vector<8x256xf32>, i32 -> vector<8x256xf32>
    %cst_44 = arith.constant 0.000000e+00 : f32
    %107 = vector.broadcast %cst_44 : f32 to vector<8x256xf32>
    %108 = arith.select %105, %106, %107 : vector<8x256xi1>, vector<8x256xf32>
    %c224_i32 = arith.constant 224 : i32
    %109 = vector.broadcast %c224_i32 : i32 to vector<8x256xi32>
    %110 = arith.cmpi slt, %0, %109 : vector<8x256xi32>
    %c224_i32_45 = arith.constant 224 : i32
    %111 = tpu.dynamic_rotate %88 by %c224_i32_45 dim 1 : vector<8x256xf32>, i32 -> vector<8x256xf32>
    %cst_46 = arith.constant 0.000000e+00 : f32
    %112 = vector.broadcast %cst_46 : f32 to vector<8x256xf32>
    %113 = arith.select %110, %111, %112 : vector<8x256xi1>, vector<8x256xf32>
    %c208_i32 = arith.constant 208 : i32
    %114 = vector.broadcast %c208_i32 : i32 to vector<8x256xi32>
    %115 = arith.cmpi slt, %0, %114 : vector<8x256xi32>
    %c208_i32_47 = arith.constant 208 : i32
    %116 = tpu.dynamic_rotate %88 by %c208_i32_47 dim 1 : vector<8x256xf32>, i32 -> vector<8x256xf32>
    %cst_48 = arith.constant 0.000000e+00 : f32
    %117 = vector.broadcast %cst_48 : f32 to vector<8x256xf32>
    %118 = arith.select %115, %116, %117 : vector<8x256xi1>, vector<8x256xf32>
    %119 = tpu.concatenate %93, %98, %103, %88, %108, %113, %118 in 0 : vector<8x256xf32>, vector<8x256xf32>, vector<8x256xf32>, vector<8x256xf32>, vector<8x256xf32>, vector<8x256xf32>, vector<8x256xf32> -> vector<56x256xf32>
    %c0_49 = arith.constant 0 : index
    %c0_50 = arith.constant 0 : index
    %120 = vector.load %arg6[%c0_49, %c0_50] : memref<256x56xbf16, #tpu.memory_space<vmem>>, vector<256x56xbf16>
    %121 = arith.truncf %119 : vector<56x256xf32> to vector<56x256xbf16>
    %cst_51 = arith.constant dense<0.000000e+00> : vector<256x256xf32>
    %122 = tpu.matmul %120, %121, %cst_51 {dimension_numbers = #tpu.dot_dimension_numbers<[1], [0], [0], [1], [0, 0, 1, 1], [], []>} : vector<256x56xbf16>, vector<56x256xbf16>, vector<256x256xf32> -> vector<256x256xf32>
    %c0_52 = arith.constant 0 : index
    %c0_53 = arith.constant 0 : index
    %123 = vector.load %arg7[%c0_52, %c0_53] : memref<256x1xf32, #tpu.memory_space<vmem>>, vector<256x1xf32>
    %124 = vector.broadcast %123 : vector<256x1xf32> to vector<256x256xf32>
    %125 = arith.addf %122, %124 : vector<256x256xf32>
    %cst_54 = arith.constant 0.000000e+00 : f32
    %126 = vector.broadcast %cst_54 : f32 to vector<256x256xf32>
    %127 = arith.maximumf %125, %126 : vector<256x256xf32>
    %c0_55 = arith.constant 0 : index
    %c1 = arith.constant 1 : index
    %c0_56 = arith.constant 0 : index
    %c0_57 = arith.constant 0 : index
    %128 = vector.load %arg18[%c0_55, %c1, %c0_56, %c0_57] : memref<1x4x256x256xf32, #tpu.memory_space<vmem>>, vector<1x1x256x256xf32>
    %129 = vector.shape_cast %128 : vector<1x1x256x256xf32> to vector<256x256xf32>
    %130 = vector.shape_cast %127 : vector<256x256xf32> to vector<1x1x256x256xf32>
    tpu.vector_store %arg18[%c0_55, %c1, %c0_56, %c0_57], %130 {strides = array<i32>} : memref<1x4x256x256xf32, #tpu.memory_space<vmem>>, vector<1x1x256x256xf32>,
    %c48_i32_58 = arith.constant 48 : i32
    %131 = vector.broadcast %c48_i32_58 : i32 to vector<8x256xi32>
    %132 = arith.cmpi sge, %0, %131 : vector<8x256xi32>
    %c48_i32_59 = arith.constant 48 : i32
    %133 = tpu.dynamic_rotate %49 by %c48_i32_59 dim 1 : vector<8x256xf32>, i32 -> vector<8x256xf32>
    %cst_60 = arith.constant 0.000000e+00 : f32
    %134 = vector.broadcast %cst_60 : f32 to vector<8x256xf32>
    %135 = arith.select %132, %133, %134 : vector<8x256xi1>, vector<8x256xf32>
    %c32_i32_61 = arith.constant 32 : i32
    %136 = vector.broadcast %c32_i32_61 : i32 to vector<8x256xi32>
    %137 = arith.cmpi sge, %0, %136 : vector<8x256xi32>
    %c32_i32_62 = arith.constant 32 : i32
    %138 = tpu.dynamic_rotate %49 by %c32_i32_62 dim 1 : vector<8x256xf32>, i32 -> vector<8x256xf32>
    %cst_63 = arith.constant 0.000000e+00 : f32
    %139 = vector.broadcast %cst_63 : f32 to vector<8x256xf32>
    %140 = arith.select %137, %138, %139 : vector<8x256xi1>, vector<8x256xf32>
    %c16_i32_64 = arith.constant 16 : i32
    %141 = vector.broadcast %c16_i32_64 : i32 to vector<8x256xi32>
    %142 = arith.cmpi sge, %0, %141 : vector<8x256xi32>
    %c16_i32_65 = arith.constant 16 : i32
    %143 = tpu.dynamic_rotate %49 by %c16_i32_65 dim 1 : vector<8x256xf32>, i32 -> vector<8x256xf32>
    %cst_66 = arith.constant 0.000000e+00 : f32
    %144 = vector.broadcast %cst_66 : f32 to vector<8x256xf32>
    %145 = arith.select %142, %143, %144 : vector<8x256xi1>, vector<8x256xf32>
    %c240_i32_67 = arith.constant 240 : i32
    %146 = vector.broadcast %c240_i32_67 : i32 to vector<8x256xi32>
    %147 = arith.cmpi slt, %0, %146 : vector<8x256xi32>
    %c240_i32_68 = arith.constant 240 : i32
    %148 = tpu.dynamic_rotate %49 by %c240_i32_68 dim 1 : vector<8x256xf32>, i32 -> vector<8x256xf32>
    %cst_69 = arith.constant 0.000000e+00 : f32
    %149 = vector.broadcast %cst_69 : f32 to vector<8x256xf32>
    %150 = arith.select %147, %148, %149 : vector<8x256xi1>, vector<8x256xf32>
    %c224_i32_70 = arith.constant 224 : i32
    %151 = vector.broadcast %c224_i32_70 : i32 to vector<8x256xi32>
    %152 = arith.cmpi slt, %0, %151 : vector<8x256xi32>
    %c224_i32_71 = arith.constant 224 : i32
    %153 = tpu.dynamic_rotate %49 by %c224_i32_71 dim 1 : vector<8x256xf32>, i32 -> vector<8x256xf32>
    %cst_72 = arith.constant 0.000000e+00 : f32
    %154 = vector.broadcast %cst_72 : f32 to vector<8x256xf32>
    %155 = arith.select %152, %153, %154 : vector<8x256xi1>, vector<8x256xf32>
    %c208_i32_73 = arith.constant 208 : i32
    %156 = vector.broadcast %c208_i32_73 : i32 to vector<8x256xi32>
    %157 = arith.cmpi slt, %0, %156 : vector<8x256xi32>
    %c208_i32_74 = arith.constant 208 : i32
    %158 = tpu.dynamic_rotate %49 by %c208_i32_74 dim 1 : vector<8x256xf32>, i32 -> vector<8x256xf32>
    %cst_75 = arith.constant 0.000000e+00 : f32
    %159 = vector.broadcast %cst_75 : f32 to vector<8x256xf32>
    %160 = arith.select %157, %158, %159 : vector<8x256xi1>, vector<8x256xf32>
    %161 = tpu.concatenate %135, %140, %145, %49, %150, %155, %160 in 0 : vector<8x256xf32>, vector<8x256xf32>, vector<8x256xf32>, vector<8x256xf32>, vector<8x256xf32>, vector<8x256xf32>, vector<8x256xf32> -> vector<56x256xf32>
    %c0_76 = arith.constant 0 : index
    %c0_77 = arith.constant 0 : index
    %162 = vector.load %arg8[%c0_76, %c0_77] : memref<8x56xbf16, #tpu.memory_space<vmem>>, vector<8x56xbf16>
    %163 = arith.truncf %161 : vector<56x256xf32> to vector<56x256xbf16>
    %cst_78 = arith.constant dense<0.000000e+00> : vector<8x256xf32>
    %164 = tpu.matmul %162, %163, %cst_78 {dimension_numbers = #tpu.dot_dimension_numbers<[1], [0], [0], [1], [0, 0, 1, 1], [], []>} : vector<8x56xbf16>, vector<56x256xbf16>, vector<8x256xf32> -> vector<8x256xf32>
    %c0_79 = arith.constant 0 : index
    %c0_80 = arith.constant 0 : index
    %165 = vector.load %arg9[%c0_79, %c0_80] : memref<8x1xf32, #tpu.memory_space<vmem>>, vector<8x1xf32>
    %166 = vector.broadcast %165 : vector<8x1xf32> to vector<8x256xf32>
    %167 = arith.addf %164, %166 : vector<8x256xf32>
    %cst_81 = arith.constant 0.000000e+00 : f32
    %168 = vector.broadcast %cst_81 : f32 to vector<8x256xf32>
    %169 = arith.maximumf %167, %168 : vector<8x256xf32>
    %c3_i32_82 = arith.constant 3 : i32
    %170 = vector.broadcast %c3_i32_82 : i32 to vector<8x256xi32>
    %171 = arith.cmpi sge, %16, %170 : vector<8x256xi32>
    %c3_i32_83 = arith.constant 3 : i32
    %172 = tpu.dynamic_rotate %169 by %c3_i32_83 dim 1 : vector<8x256xf32>, i32 -> vector<8x256xf32>
    %cst_84 = arith.constant 0.000000e+00 : f32
    %173 = vector.broadcast %cst_84 : f32 to vector<8x256xf32>
    %174 = arith.select %171, %172, %173 : vector<8x256xi1>, vector<8x256xf32>
    %c2_i32_85 = arith.constant 2 : i32
    %175 = vector.broadcast %c2_i32_85 : i32 to vector<8x256xi32>
    %176 = arith.cmpi sge, %16, %175 : vector<8x256xi32>
    %c2_i32_86 = arith.constant 2 : i32
    %177 = tpu.dynamic_rotate %169 by %c2_i32_86 dim 1 : vector<8x256xf32>, i32 -> vector<8x256xf32>
    %cst_87 = arith.constant 0.000000e+00 : f32
    %178 = vector.broadcast %cst_87 : f32 to vector<8x256xf32>
    %179 = arith.select %176, %177, %178 : vector<8x256xi1>, vector<8x256xf32>
    %c1_i32_88 = arith.constant 1 : i32
    %180 = vector.broadcast %c1_i32_88 : i32 to vector<8x256xi32>
    %181 = arith.cmpi sge, %16, %180 : vector<8x256xi32>
    %c1_i32_89 = arith.constant 1 : i32
    %182 = tpu.dynamic_rotate %169 by %c1_i32_89 dim 1 : vector<8x256xf32>, i32 -> vector<8x256xf32>
    %cst_90 = arith.constant 0.000000e+00 : f32
    %183 = vector.broadcast %cst_90 : f32 to vector<8x256xf32>
    %184 = arith.select %181, %182, %183 : vector<8x256xi1>, vector<8x256xf32>
    %c15_i32_91 = arith.constant 15 : i32
    %185 = vector.broadcast %c15_i32_91 : i32 to vector<8x256xi32>
    %186 = arith.cmpi slt, %16, %185 : vector<8x256xi32>
    %c255_i32_92 = arith.constant 255 : i32
    %187 = tpu.dynamic_rotate %169 by %c255_i32_92 dim 1 : vector<8x256xf32>, i32 -> vector<8x256xf32>
    %cst_93 = arith.constant 0.000000e+00 : f32
    %188 = vector.broadcast %cst_93 : f32 to vector<8x256xf32>
    %189 = arith.select %186, %187, %188 : vector<8x256xi1>, vector<8x256xf32>
    %c14_i32_94 = arith.constant 14 : i32
    %190 = vector.broadcast %c14_i32_94 : i32 to vector<8x256xi32>
    %191 = arith.cmpi slt, %16, %190 : vector<8x256xi32>
    %c254_i32_95 = arith.constant 254 : i32
    %192 = tpu.dynamic_rotate %169 by %c254_i32_95 dim 1 : vector<8x256xf32>, i32 -> vector<8x256xf32>
    %cst_96 = arith.constant 0.000000e+00 : f32
    %193 = vector.broadcast %cst_96 : f32 to vector<8x256xf32>
    %194 = arith.select %191, %192, %193 : vector<8x256xi1>, vector<8x256xf32>
    %c13_i32_97 = arith.constant 13 : i32
    %195 = vector.broadcast %c13_i32_97 : i32 to vector<8x256xi32>
    %196 = arith.cmpi slt, %16, %195 : vector<8x256xi32>
    %c253_i32_98 = arith.constant 253 : i32
    %197 = tpu.dynamic_rotate %169 by %c253_i32_98 dim 1 : vector<8x256xf32>, i32 -> vector<8x256xf32>
    %cst_99 = arith.constant 0.000000e+00 : f32
    %198 = vector.broadcast %cst_99 : f32 to vector<8x256xf32>
    %199 = arith.select %196, %197, %198 : vector<8x256xi1>, vector<8x256xf32>
    %200 = tpu.concatenate %174, %179, %184, %169, %189, %194, %199 in 0 : vector<8x256xf32>, vector<8x256xf32>, vector<8x256xf32>, vector<8x256xf32>, vector<8x256xf32>, vector<8x256xf32>, vector<8x256xf32> -> vector<56x256xf32>
    %c0_100 = arith.constant 0 : index
    %c0_101 = arith.constant 0 : index
    %201 = vector.load %arg10[%c0_100, %c0_101] : memref<8x56xbf16, #tpu.memory_space<vmem>>, vector<8x56xbf16>
    %202 = arith.truncf %200 : vector<56x256xf32> to vector<56x256xbf16>
    %cst_102 = arith.constant dense<0.000000e+00> : vector<8x256xf32>
    %203 = tpu.matmul %201, %202, %cst_102 {dimension_numbers = #tpu.dot_dimension_numbers<[1], [0], [0], [1], [0, 0, 1, 1], [], []>} : vector<8x56xbf16>, vector<56x256xbf16>, vector<8x256xf32> -> vector<8x256xf32>
    %c0_103 = arith.constant 0 : index
    %c0_104 = arith.constant 0 : index
    %204 = vector.load %arg11[%c0_103, %c0_104] : memref<8x1xf32, #tpu.memory_space<vmem>>, vector<8x1xf32>
    %205 = vector.broadcast %204 : vector<8x1xf32> to vector<8x256xf32>
    %206 = arith.addf %203, %205 : vector<8x256xf32>
    %cst_105 = arith.constant 0.000000e+00 : f32
    %207 = vector.broadcast %cst_105 : f32 to vector<8x256xf32>
    %208 = arith.maximumf %206, %207 : vector<8x256xf32>
    %c48_i32_106 = arith.constant 48 : i32
    %209 = vector.broadcast %c48_i32_106 : i32 to vector<8x256xi32>
    %210 = arith.cmpi sge, %0, %209 : vector<8x256xi32>
    %c48_i32_107 = arith.constant 48 : i32
    %211 = tpu.dynamic_rotate %208 by %c48_i32_107 dim 1 : vector<8x256xf32>, i32 -> vector<8x256xf32>
    %cst_108 = arith.constant 0.000000e+00 : f32
    %212 = vector.broadcast %cst_108 : f32 to vector<8x256xf32>
    %213 = arith.select %210, %211, %212 : vector<8x256xi1>, vector<8x256xf32>
    %c32_i32_109 = arith.constant 32 : i32
    %214 = vector.broadcast %c32_i32_109 : i32 to vector<8x256xi32>
    %215 = arith.cmpi sge, %0, %214 : vector<8x256xi32>
    %c32_i32_110 = arith.constant 32 : i32
    %216 = tpu.dynamic_rotate %208 by %c32_i32_110 dim 1 : vector<8x256xf32>, i32 -> vector<8x256xf32>
    %cst_111 = arith.constant 0.000000e+00 : f32
    %217 = vector.broadcast %cst_111 : f32 to vector<8x256xf32>
    %218 = arith.select %215, %216, %217 : vector<8x256xi1>, vector<8x256xf32>
    %c16_i32_112 = arith.constant 16 : i32
    %219 = vector.broadcast %c16_i32_112 : i32 to vector<8x256xi32>
    %220 = arith.cmpi sge, %0, %219 : vector<8x256xi32>
    %c16_i32_113 = arith.constant 16 : i32
    %221 = tpu.dynamic_rotate %208 by %c16_i32_113 dim 1 : vector<8x256xf32>, i32 -> vector<8x256xf32>
    %cst_114 = arith.constant 0.000000e+00 : f32
    %222 = vector.broadcast %cst_114 : f32 to vector<8x256xf32>
    %223 = arith.select %220, %221, %222 : vector<8x256xi1>, vector<8x256xf32>
    %c240_i32_115 = arith.constant 240 : i32
    %224 = vector.broadcast %c240_i32_115 : i32 to vector<8x256xi32>
    %225 = arith.cmpi slt, %0, %224 : vector<8x256xi32>
    %c240_i32_116 = arith.constant 240 : i32
    %226 = tpu.dynamic_rotate %208 by %c240_i32_116 dim 1 : vector<8x256xf32>, i32 -> vector<8x256xf32>
    %cst_117 = arith.constant 0.000000e+00 : f32
    %227 = vector.broadcast %cst_117 : f32 to vector<8x256xf32>
    %228 = arith.select %225, %226, %227 : vector<8x256xi1>, vector<8x256xf32>
    %c224_i32_118 = arith.constant 224 : i32
    %229 = vector.broadcast %c224_i32_118 : i32 to vector<8x256xi32>
    %230 = arith.cmpi slt, %0, %229 : vector<8x256xi32>
    %c224_i32_119 = arith.constant 224 : i32
    %231 = tpu.dynamic_rotate %208 by %c224_i32_119 dim 1 : vector<8x256xf32>, i32 -> vector<8x256xf32>
    %cst_120 = arith.constant 0.000000e+00 : f32
    %232 = vector.broadcast %cst_120 : f32 to vector<8x256xf32>
    %233 = arith.select %230, %231, %232 : vector<8x256xi1>, vector<8x256xf32>
    %c208_i32_121 = arith.constant 208 : i32
    %234 = vector.broadcast %c208_i32_121 : i32 to vector<8x256xi32>
    %235 = arith.cmpi slt, %0, %234 : vector<8x256xi32>
    %c208_i32_122 = arith.constant 208 : i32
    %236 = tpu.dynamic_rotate %208 by %c208_i32_122 dim 1 : vector<8x256xf32>, i32 -> vector<8x256xf32>
    %cst_123 = arith.constant 0.000000e+00 : f32
    %237 = vector.broadcast %cst_123 : f32 to vector<8x256xf32>
    %238 = arith.select %235, %236, %237 : vector<8x256xi1>, vector<8x256xf32>
    %239 = tpu.concatenate %213, %218, %223, %208, %228, %233, %238 in 0 : vector<8x256xf32>, vector<8x256xf32>, vector<8x256xf32>, vector<8x256xf32>, vector<8x256xf32>, vector<8x256xf32>, vector<8x256xf32> -> vector<56x256xf32>
    %c0_124 = arith.constant 0 : index
    %c0_125 = arith.constant 0 : index
    %240 = vector.load %arg12[%c0_124, %c0_125] : memref<8x56xbf16, #tpu.memory_space<vmem>>, vector<8x56xbf16>
    %241 = arith.truncf %239 : vector<56x256xf32> to vector<56x256xbf16>
    %cst_126 = arith.constant dense<0.000000e+00> : vector<8x256xf32>
    %242 = tpu.matmul %240, %241, %cst_126 {dimension_numbers = #tpu.dot_dimension_numbers<[1], [0], [0], [1], [0, 0, 1, 1], [], []>} : vector<8x56xbf16>, vector<56x256xbf16>, vector<8x256xf32> -> vector<8x256xf32>
    %c0_127 = arith.constant 0 : index
    %c0_128 = arith.constant 0 : index
    %243 = vector.load %arg13[%c0_127, %c0_128] : memref<8x1xf32, #tpu.memory_space<vmem>>, vector<8x1xf32>
    %244 = vector.broadcast %243 : vector<8x1xf32> to vector<8x256xf32>
    %245 = arith.addf %242, %244 : vector<8x256xf32>
    %cst_129 = arith.constant 0.000000e+00 : f32
    %246 = vector.broadcast %cst_129 : f32 to vector<8x256xf32>
    %247 = arith.maximumf %245, %246 : vector<8x256xf32>
    %c3_i32_130 = arith.constant 3 : i32
    %248 = vector.broadcast %c3_i32_130 : i32 to vector<8x256xi32>
    %249 = arith.cmpi sge, %16, %248 : vector<8x256xi32>
    %c3_i32_131 = arith.constant 3 : i32
    %250 = tpu.dynamic_rotate %247 by %c3_i32_131 dim 1 : vector<8x256xf32>, i32 -> vector<8x256xf32>
    %cst_132 = arith.constant 0.000000e+00 : f32
    %251 = vector.broadcast %cst_132 : f32 to vector<8x256xf32>
    %252 = arith.select %249, %250, %251 : vector<8x256xi1>, vector<8x256xf32>
    %c2_i32_133 = arith.constant 2 : i32
    %253 = vector.broadcast %c2_i32_133 : i32 to vector<8x256xi32>
    %254 = arith.cmpi sge, %16, %253 : vector<8x256xi32>
    %c2_i32_134 = arith.constant 2 : i32
    %255 = tpu.dynamic_rotate %247 by %c2_i32_134 dim 1 : vector<8x256xf32>, i32 -> vector<8x256xf32>
    %cst_135 = arith.constant 0.000000e+00 : f32
    %256 = vector.broadcast %cst_135 : f32 to vector<8x256xf32>
    %257 = arith.select %254, %255, %256 : vector<8x256xi1>, vector<8x256xf32>
    %c1_i32_136 = arith.constant 1 : i32
    %258 = vector.broadcast %c1_i32_136 : i32 to vector<8x256xi32>
    %259 = arith.cmpi sge, %16, %258 : vector<8x256xi32>
    %c1_i32_137 = arith.constant 1 : i32
    %260 = tpu.dynamic_rotate %247 by %c1_i32_137 dim 1 : vector<8x256xf32>, i32 -> vector<8x256xf32>
    %cst_138 = arith.constant 0.000000e+00 : f32
    %261 = vector.broadcast %cst_138 : f32 to vector<8x256xf32>
    %262 = arith.select %259, %260, %261 : vector<8x256xi1>, vector<8x256xf32>
    %c15_i32_139 = arith.constant 15 : i32
    %263 = vector.broadcast %c15_i32_139 : i32 to vector<8x256xi32>
    %264 = arith.cmpi slt, %16, %263 : vector<8x256xi32>
    %c255_i32_140 = arith.constant 255 : i32
    %265 = tpu.dynamic_rotate %247 by %c255_i32_140 dim 1 : vector<8x256xf32>, i32 -> vector<8x256xf32>
    %cst_141 = arith.constant 0.000000e+00 : f32
    %266 = vector.broadcast %cst_141 : f32 to vector<8x256xf32>
    %267 = arith.select %264, %265, %266 : vector<8x256xi1>, vector<8x256xf32>
    %c14_i32_142 = arith.constant 14 : i32
    %268 = vector.broadcast %c14_i32_142 : i32 to vector<8x256xi32>
    %269 = arith.cmpi slt, %16, %268 : vector<8x256xi32>
    %c254_i32_143 = arith.constant 254 : i32
    %270 = tpu.dynamic_rotate %247 by %c254_i32_143 dim 1 : vector<8x256xf32>, i32 -> vector<8x256xf32>
    %cst_144 = arith.constant 0.000000e+00 : f32
    %271 = vector.broadcast %cst_144 : f32 to vector<8x256xf32>
    %272 = arith.select %269, %270, %271 : vector<8x256xi1>, vector<8x256xf32>
    %c13_i32_145 = arith.constant 13 : i32
    %273 = vector.broadcast %c13_i32_145 : i32 to vector<8x256xi32>
    %274 = arith.cmpi slt, %16, %273 : vector<8x256xi32>
    %c253_i32_146 = arith.constant 253 : i32
    %275 = tpu.dynamic_rotate %247 by %c253_i32_146 dim 1 : vector<8x256xf32>, i32 -> vector<8x256xf32>
    %cst_147 = arith.constant 0.000000e+00 : f32
    %276 = vector.broadcast %cst_147 : f32 to vector<8x256xf32>
    %277 = arith.select %274, %275, %276 : vector<8x256xi1>, vector<8x256xf32>
    %278 = tpu.concatenate %252, %257, %262, %247, %267, %272, %277 in 0 : vector<8x256xf32>, vector<8x256xf32>, vector<8x256xf32>, vector<8x256xf32>, vector<8x256xf32>, vector<8x256xf32>, vector<8x256xf32> -> vector<56x256xf32>
    %c0_148 = arith.constant 0 : index
    %c0_149 = arith.constant 0 : index
    %279 = vector.load %arg14[%c0_148, %c0_149] : memref<256x56xbf16, #tpu.memory_space<vmem>>, vector<256x56xbf16>
    %280 = arith.truncf %278 : vector<56x256xf32> to vector<56x256xbf16>
    %cst_150 = arith.constant dense<0.000000e+00> : vector<256x256xf32>
    %281 = tpu.matmul %279, %280, %cst_150 {dimension_numbers = #tpu.dot_dimension_numbers<[1], [0], [0], [1], [0, 0, 1, 1], [], []>} : vector<256x56xbf16>, vector<56x256xbf16>, vector<256x256xf32> -> vector<256x256xf32>
    %c0_151 = arith.constant 0 : index
    %c0_152 = arith.constant 0 : index
    %282 = vector.load %arg15[%c0_151, %c0_152] : memref<256x1xf32, #tpu.memory_space<vmem>>, vector<256x1xf32>
    %283 = vector.broadcast %282 : vector<256x1xf32> to vector<256x256xf32>
    %284 = arith.addf %281, %283 : vector<256x256xf32>
    %cst_153 = arith.constant 0.000000e+00 : f32
    %285 = vector.broadcast %cst_153 : f32 to vector<256x256xf32>
    %286 = arith.maximumf %284, %285 : vector<256x256xf32>
    %c0_154 = arith.constant 0 : index
    %c2 = arith.constant 2 : index
    %c0_155 = arith.constant 0 : index
    %c0_156 = arith.constant 0 : index
    %287 = vector.load %arg18[%c0_154, %c2, %c0_155, %c0_156] : memref<1x4x256x256xf32, #tpu.memory_space<vmem>>, vector<1x1x256x256xf32>
    %288 = vector.shape_cast %287 : vector<1x1x256x256xf32> to vector<256x256xf32>
    %289 = vector.shape_cast %286 : vector<256x256xf32> to vector<1x1x256x256xf32>
    tpu.vector_store %arg18[%c0_154, %c2, %c0_155, %c0_156], %289 {strides = array<i32>} : memref<1x4x256x256xf32, #tpu.memory_space<vmem>>, vector<1x1x256x256xf32>,
    %c1_i32_157 = arith.constant 1 : i32
    %290 = vector.broadcast %c1_i32_157 : i32 to vector<4x256xi32>
    %291 = arith.cmpi sge, %33, %290 : vector<4x256xi32>
    %c1_i32_158 = arith.constant 1 : i32
    %292 = tpu.dynamic_rotate %35 by %c1_i32_158 dim 1 : vector<4x256xf32>, i32 -> vector<4x256xf32>
    %cst_159 = arith.constant 0.000000e+00 : f32
    %293 = vector.broadcast %cst_159 : f32 to vector<4x256xf32>
    %294 = arith.select %291, %292, %293 : vector<4x256xi1>, vector<4x256xf32>
    %295 = arith.addf %35, %294 : vector<4x256xf32>
    %c15_i32_160 = arith.constant 15 : i32
    %296 = vector.broadcast %c15_i32_160 : i32 to vector<4x256xi32>
    %297 = arith.cmpi slt, %33, %296 : vector<4x256xi32>
    %c255_i32_161 = arith.constant 255 : i32
    %298 = tpu.dynamic_rotate %35 by %c255_i32_161 dim 1 : vector<4x256xf32>, i32 -> vector<4x256xf32>
    %cst_162 = arith.constant 0.000000e+00 : f32
    %299 = vector.broadcast %cst_162 : f32 to vector<4x256xf32>
    %300 = arith.select %297, %298, %299 : vector<4x256xi1>, vector<4x256xf32>
    %301 = arith.addf %295, %300 : vector<4x256xf32>
    %c16_i32_163 = arith.constant 16 : i32
    %302 = vector.broadcast %c16_i32_163 : i32 to vector<4x256xi32>
    %303 = arith.cmpi sge, %17, %302 : vector<4x256xi32>
    %c16_i32_164 = arith.constant 16 : i32
    %304 = tpu.dynamic_rotate %301 by %c16_i32_164 dim 1 : vector<4x256xf32>, i32 -> vector<4x256xf32>
    %cst_165 = arith.constant 0.000000e+00 : f32
    %305 = vector.broadcast %cst_165 : f32 to vector<4x256xf32>
    %306 = arith.select %303, %304, %305 : vector<4x256xi1>, vector<4x256xf32>
    %307 = arith.addf %301, %306 : vector<4x256xf32>
    %c240_i32_166 = arith.constant 240 : i32
    %308 = vector.broadcast %c240_i32_166 : i32 to vector<4x256xi32>
    %309 = arith.cmpi slt, %17, %308 : vector<4x256xi32>
    %c240_i32_167 = arith.constant 240 : i32
    %310 = tpu.dynamic_rotate %301 by %c240_i32_167 dim 1 : vector<4x256xf32>, i32 -> vector<4x256xf32>
    %cst_168 = arith.constant 0.000000e+00 : f32
    %311 = vector.broadcast %cst_168 : f32 to vector<4x256xf32>
    %312 = arith.select %309, %310, %311 : vector<4x256xi1>, vector<4x256xf32>
    %313 = arith.addf %307, %312 : vector<4x256xf32>
    %cst_169 = arith.constant 0.111111112 : f32
    %314 = vector.broadcast %cst_169 : f32 to vector<4x256xf32>
    %315 = arith.mulf %313, %314 : vector<4x256xf32>
    %c0_170 = arith.constant 0 : index
    %c0_171 = arith.constant 0 : index
    %316 = vector.load %arg16[%c0_170, %c0_171] : memref<256x4xbf16, #tpu.memory_space<vmem>>, vector<256x4xbf16>
    %317 = arith.truncf %315 : vector<4x256xf32> to vector<4x256xbf16>
    %cst_172 = arith.constant dense<0.000000e+00> : vector<256x256xf32>
    %318 = tpu.matmul %316, %317, %cst_172 {dimension_numbers = #tpu.dot_dimension_numbers<[1], [0], [0], [1], [0, 0, 1, 1], [], []>} : vector<256x4xbf16>, vector<4x256xbf16>, vector<256x256xf32> -> vector<256x256xf32>
    %c0_173 = arith.constant 0 : index
    %c0_174 = arith.constant 0 : index
    %319 = vector.load %arg17[%c0_173, %c0_174] : memref<256x1xf32, #tpu.memory_space<vmem>>, vector<256x1xf32>
    %320 = vector.broadcast %319 : vector<256x1xf32> to vector<256x256xf32>
    %321 = arith.addf %318, %320 : vector<256x256xf32>
    %cst_175 = arith.constant 0.000000e+00 : f32
    %322 = vector.broadcast %cst_175 : f32 to vector<256x256xf32>
    %323 = arith.maximumf %321, %322 : vector<256x256xf32>
    %c0_176 = arith.constant 0 : index
    %c3 = arith.constant 3 : index
    %c0_177 = arith.constant 0 : index
    %c0_178 = arith.constant 0 : index
    %324 = vector.load %arg18[%c0_176, %c3, %c0_177, %c0_178] : memref<1x4x256x256xf32, #tpu.memory_space<vmem>>, vector<1x1x256x256xf32>
    %325 = vector.shape_cast %324 : vector<1x1x256x256xf32> to vector<256x256xf32>
    %326 = vector.shape_cast %323 : vector<256x256xf32> to vector<1x1x256x256xf32>
    tpu.vector_store %arg18[%c0_176, %c3, %c0_177, %c0_178], %326 {strides = array<i32>} : memref<1x4x256x256xf32, #tpu.memory_space<vmem>>, vector<1x1x256x256xf32>,
    return
  }
  func.func @transform_0(%arg0: i32) -> (i32, i32, i32) {
    %c0_i32 = arith.constant 0 : i32
    %c0_i32_0 = arith.constant 0 : i32
    %c0_i32_1 = arith.constant 0 : i32
    return %arg0, %c0_i32, %c0_i32_0 : i32, i32, i32
  }
  func.func @transform_1(%arg0: i32) -> (i32, i32) {
    %c0_i32 = arith.constant 0 : i32
    %c0_i32_0 = arith.constant 0 : i32
    %c0_i32_1 = arith.constant 0 : i32
    return %c0_i32, %c0_i32_0 : i32, i32
  }
  func.func @transform_2(%arg0: i32) -> (i32, i32) {
    %c0_i32 = arith.constant 0 : i32
    %c0_i32_0 = arith.constant 0 : i32
    %c0_i32_1 = arith.constant 0 : i32
    return %c0_i32, %c0_i32_0 : i32, i32
  }
  func.func @transform_3(%arg0: i32) -> (i32, i32) {
    %c0_i32 = arith.constant 0 : i32
    %c0_i32_0 = arith.constant 0 : i32
    %c0_i32_1 = arith.constant 0 : i32
    return %c0_i32, %c0_i32_0 : i32, i32
  }
  func.func @transform_4(%arg0: i32) -> (i32, i32) {
    %c0_i32 = arith.constant 0 : i32
    %c0_i32_0 = arith.constant 0 : i32
    %c0_i32_1 = arith.constant 0 : i32
    return %c0_i32, %c0_i32_0 : i32, i32
  }
  func.func @transform_5(%arg0: i32) -> (i32, i32) {
    %c0_i32 = arith.constant 0 : i32
    %c0_i32_0 = arith.constant 0 : i32
    %c0_i32_1 = arith.constant 0 : i32
    return %c0_i32, %c0_i32_0 : i32, i32
  }
  func.func @transform_6(%arg0: i32) -> (i32, i32) {
    %c0_i32 = arith.constant 0 : i32
    %c0_i32_0 = arith.constant 0 : i32
    %c0_i32_1 = arith.constant 0 : i32
    return %c0_i32, %c0_i32_0 : i32, i32
  }
  func.func @transform_7(%arg0: i32) -> (i32, i32) {
    %c0_i32 = arith.constant 0 : i32
    %c0_i32_0 = arith.constant 0 : i32
    %c0_i32_1 = arith.constant 0 : i32
    return %c0_i32, %c0_i32_0 : i32, i32
  }
  func.func @transform_8(%arg0: i32) -> (i32, i32) {
    %c0_i32 = arith.constant 0 : i32
    %c0_i32_0 = arith.constant 0 : i32
    %c0_i32_1 = arith.constant 0 : i32
    return %c0_i32, %c0_i32_0 : i32, i32
  }
  func.func @transform_9(%arg0: i32) -> (i32, i32) {
    %c0_i32 = arith.constant 0 : i32
    %c0_i32_0 = arith.constant 0 : i32
    %c0_i32_1 = arith.constant 0 : i32
    return %c0_i32, %c0_i32_0 : i32, i32
  }
  func.func @transform_10(%arg0: i32) -> (i32, i32) {
    %c0_i32 = arith.constant 0 : i32
    %c0_i32_0 = arith.constant 0 : i32
    %c0_i32_1 = arith.constant 0 : i32
    return %c0_i32, %c0_i32_0 : i32, i32
  }
  func.func @transform_11(%arg0: i32) -> (i32, i32) {
    %c0_i32 = arith.constant 0 : i32
    %c0_i32_0 = arith.constant 0 : i32
    %c0_i32_1 = arith.constant 0 : i32
    return %c0_i32, %c0_i32_0 : i32, i32
  }
  func.func @transform_12(%arg0: i32) -> (i32, i32) {
    %c0_i32 = arith.constant 0 : i32
    %c0_i32_0 = arith.constant 0 : i32
    %c0_i32_1 = arith.constant 0 : i32
    return %c0_i32, %c0_i32_0 : i32, i32
  }
  func.func @transform_13(%arg0: i32) -> (i32, i32) {
    %c0_i32 = arith.constant 0 : i32
    %c0_i32_0 = arith.constant 0 : i32
    %c0_i32_1 = arith.constant 0 : i32
    return %c0_i32, %c0_i32_0 : i32, i32
  }
  func.func @transform_14(%arg0: i32) -> (i32, i32) {
    %c0_i32 = arith.constant 0 : i32
    %c0_i32_0 = arith.constant 0 : i32
    %c0_i32_1 = arith.constant 0 : i32
    return %c0_i32, %c0_i32_0 : i32, i32
  }
  func.func @transform_15(%arg0: i32) -> (i32, i32) {
    %c0_i32 = arith.constant 0 : i32
    %c0_i32_0 = arith.constant 0 : i32
    %c0_i32_1 = arith.constant 0 : i32
    return %c0_i32, %c0_i32_0 : i32, i32
  }
  func.func @transform_16(%arg0: i32) -> (i32, i32) {
    %c0_i32 = arith.constant 0 : i32
    %c0_i32_0 = arith.constant 0 : i32
    %c0_i32_1 = arith.constant 0 : i32
    return %c0_i32, %c0_i32_0 : i32, i32
  }
  func.func @transform_17(%arg0: i32) -> (i32, i32, i32, i32) {
    %c0_i32 = arith.constant 0 : i32
    %c0_i32_0 = arith.constant 0 : i32
    %c0_i32_1 = arith.constant 0 : i32
    %c0_i32_2 = arith.constant 0 : i32
    return %arg0, %c0_i32, %c0_i32_0, %c0_i32_1 : i32, i32, i32, i32
  }
}

</mosaic_0001>

<bundles_post_ra>
// kernel: inception_c_forward.1
= control target key start
LH: loop header
LB: loop body
LE: loop exit
PB: predicated region body
PF: predicated region fallthrough
CT: control target
= control target key end

     0   :  { %s4877_s24 = smov 0   ;;  %s6891_s0 = inlined_call_operand.vmem [shape: f32[2,4,256], index: 0, kind: input, shape index: {}]   ;;  %s6892_s1 = inlined_call_operand.vmem [shape: bf16[272,4], index: 1, kind: input, shape index: {}]   ;;  %s6893_s2 = inlined_call_operand.vmem [shape: f32[272,1], index: 2, kind: input, shape index: {}]   ;;  %s6894_s3 = inlined_call_operand.vmem [shape: bf16[8,56], index: 3, kind: input, shape index: {}]   ;;  %s6895_s4 = inlined_call_operand.vmem [shape: f32[8,1], index: 4, kind: input, shape index: {}]   ;;  %s6896_s5 = inlined_call_operand.vmem [shape: bf16[256,56], index: 5, kind: input, shape index: {}]   ;;  %s6897_s6 = inlined_call_operand.vmem [shape: f32[256,1], index: 6, kind: input, shape index: {}]   ;;  %s6898_s7 = inlined_call_operand.vmem [shape: bf16[8,56], index: 7, kind: input, shape index: {}]   ;;  %s6899_s8 = inlined_call_operand.vmem [shape: f32[8,1], index: 8, kind: input, shape index: {}]   ;;  %s6900_s9 = inlined_call_operand.vmem [shape: bf16[8,56], index: 9, kind: input, shape index: {}]   ;;  %s6901_s10 = inlined_call_operand.vmem [shape: f32[8,1], index: 10, kind: input, shape index: {}]   ;;  %s6902_s11 = inlined_call_operand.vmem [shape: bf16[8,56], index: 11, kind: input, shape index: {}]   ;;  %s6903_s12 = inlined_call_operand.vmem [shape: f32[8,1], index: 12, kind: input, shape index: {}]   ;;  %s6904_s13 = inlined_call_operand.vmem [shape: bf16[256,56], index: 13, kind: input, shape index: {}]   ;;  %s6905_s14 = inlined_call_operand.vmem [shape: f32[256,1], index: 14, kind: input, shape index: {}]   ;;  %s6906_s15 = inlined_call_operand.vmem [shape: bf16[256,4], index: 15, kind: input, shape index: {}]   ;;  %s6907_s16 = inlined_call_operand.vmem [shape: f32[256,1], index: 16, kind: input, shape index: {}]   ;;  %s6908_s17 = inlined_call_operand.vmem [shape: f32[2,4,256,256], index: 17, kind: output, shape index: {}]  }
   0x1   :  { %6958 = sst [smem:[#allocation37_spill]] %s6891_s0 }
   0x2   :  { %6959 = sst [smem:[#allocation38_spill]] %s6892_s1 }
   0x3   :  { %6960 = sst [smem:[#allocation39_spill]] %s6894_s3 }
   0x4   :  { %6961 = sst [smem:[#allocation40_spill]] %s6895_s4 }
   0x5 LB: > { %s4066_s25 = sadd.s32 4294967295, %s4771_s24   ;;  %p4070_p0 = scmp.ge.s32.totalorder %s4771_s24, 1  ;;  %s4771_s24 = sphi %s4877_s24, %s27_s24  }
   0x6   : > { %p487_p1 = scmp.lt.s32.totalorder %s4771_s24, 3 }
   0x8   : > { %p488_p2 = pnand %p4070_p0, %p487_p1 }
   0xa   : > { %491 = sbr.rel (%p488_p2) target bundleno = 1926 (0x786), region = 88 }
  0x11   : > { %p539_p3 = scmp.lt.s32.totalorder %s4066_s25, 1  ;;  %v6910_v0 = vmov 0   ;;  %s6962_s29 = sld [smem:[#allocation37_spill]]  ;;  %vm6919_vm0 = vcmask 1041408   ;;  %vm6912_vm1 = vcmask 31744   ;;  %v650_v18 = vld [vmem:[%s6893_s2 + $0x108] sm:$0xff] }
  0x12   : > { %997 = vmatprep.mubr.bf16.mxu0 %v6910_v0  ;;  %4516 = vset.pattern.permute.xlu0 %v6910_v0  ;;  %s6963_s19 = sld [smem:[#allocation38_spill]]  ;;  %s4774_s20 = smov 32   ;;  %vm4780_vm13 = vmmov 1  }
  0x13   : > { %s7256_s25 = smov (!%p539_p3, %s4066_s25), 1  ;;  %4547 = vset.pattern.permute.xlu1 %v6910_v0  ;;  %1424 = vmatprep.mubr.bf16.mxu1 %v6910_v0  ;;  %s4775_s21 = smov 48  }
  0x14   : > { %s4492_s26 = sshll.u32 %s7256_s25, 3  ;;  %818 = vperm.xlu0 %4516, %v650_v18   ;;  %s6917_s22 = smov 16  }
  0x15   : > { %s6951_s23 = smov 112   ;;  %s6915_s27 = smov 80  }
  0x16   : > { %s6946_s1 = smov 2   ;;  %s6943_s28 = smov 3  }
  0x17   : > { %s4895_s0 = scalar_lea.vmem %s6962_s29, %s4492_s26  ;;  %s6913_s26 = smov 96  }
  0x18   : > { %v577_v1 = vld [vmem:[%s4895_s0] sm:$0xff]  ;;  %v4700_v7 = vld [vmem:[%s6963_s19 + $0x8] sm:$0xff]   ;;  %v4701_v8 = vld [vmem:[%s6963_s19 + $0x10] sm:$0xff]   ;;  %s6947_s29 = smov 127   ;;  %s6949_s30 = smov 1  }
  0x19   : > { %v4898_v2 = vcombine.high %v577_v1, %v577_v1  ;;  %v615_v3 = vpack.c.bf16 %v577_v1, %v577_v1  ;;  %v4699_v6 = vld [vmem:[%s6963_s19] sm:$0xff]   ;;  %v4702_v9 = vld [vmem:[%s6963_s19 + $0x18] sm:$0xff]   ;;  %v4704_v11 = vld [vmem:[%s6963_s19 + $0x28] sm:$0xff]   ;;  %s6941_s18 = smov 125   ;;  %s7023_s3 = sld [smem:[#allocation39_spill]] }
  0x1a   : > { %v4703_v10 = vld [vmem:[%s6963_s19 + $0x20] sm:$0xff]   ;;  %v4705_v12 = vld [vmem:[%s6963_s19 + $0x30] sm:$0xff]   ;;  %v4706_v13 = vld [vmem:[%s6963_s19 + $0x38] sm:$0xff]   ;;  %s7025_s4 = sld [smem:[#allocation40_spill]] }
  0x1b   : > { %v616_v4 = vpack.c.bf16 %v4898_v2, %v4898_v2  ;;  %v960_v5 = vsel %vm6919_vm0, %v615_v3, 0  ;;  %v4707_v14 = vld [vmem:[%s6963_s19 + $0x40] sm:$0xff]   ;;  %v4708_v15 = vld [vmem:[%s6963_s19 + $0x48] sm:$0xff]   ;;  %v4709_v16 = vld [vmem:[%s6963_s19 + $0x50] sm:$0xff]  }
  0x1c   : > { %v4710_v17 = vld [vmem:[%s6963_s19 + $0x58] sm:$0xff]   ;;  %v4711_v19 = vld [vmem:[%s6963_s19 + $0x60] sm:$0xff]   ;;  %v4712_v20 = vld [vmem:[%s6963_s19 + $0x68] sm:$0xff]  }
  0x1d   : > { %4092 = vmatprep.subr.msk.bf16.mxu0 %vm6919_vm0, %v616_v4  ;;  %v4713_v21 = vld [vmem:[%s6963_s19 + $0x70] sm:$0xff]   ;;  %v4714_v22 = vld [vmem:[%s6963_s19 + $0x78] sm:$0xff]   ;;  %v4715_v23 = vld [vmem:[%s6963_s19 + $0x80] sm:$0xff]  }
  0x1e   : > { %966 = vmatpush1.bf16.msra.mxu0 %v960_v5 }
  0x21   : > { %4093 = vmatmul.mubr.msk.bf16.vlgmr.msra.gmra.mrb[0].mxu0 %vm6912_vm1, %v4699_v6 }
  0x22   : > { %1007 = vmatprep.mubr.bf16.mxu0 %v6910_v0 }
  0x29   : > { %4094 = vmatmul.mubr.msk.bf16.gmra.mrb[4].mxu0 %vm6912_vm1, %v4700_v7 }
  0x2a   : > { %1017 = vmatprep.mubr.bf16.mxu0 %v6910_v0 }
  0x31   : > { %4095 = vmatmul.mubr.msk.bf16.gmra.mrb[8].mxu0 %vm6912_vm1, %v4701_v8 }
  0x32   : > { %1027 = vmatprep.mubr.bf16.mxu0 %v6910_v0 }
  0x39   : > { %4096 = vmatmul.mubr.msk.bf16.gmra.mrb[12].mxu0 %vm6912_vm1, %v4702_v9 }
  0x3a   : > { %1037 = vmatprep.mubr.bf16.mxu0 %v6910_v0 }
  0x41   : > { %4097 = vmatmul.mubr.msk.bf16.gmra.mrb[16].mxu0 %vm6912_vm1, %v4703_v10 }
  0x42   : > { %1047 = vmatprep.mubr.bf16.mxu0 %v6910_v0 }
  0x49   : > { %4098 = vmatmul.mubr.msk.bf16.gmra.mrb[20].mxu0 %vm6912_vm1, %v4704_v11 }
  0x4a   : > { %1057 = vmatprep.mubr.bf16.mxu0 %v6910_v0 }
  0x51   : > { %4099 = vmatmul.mubr.msk.bf16.gmra.mrb[24].mxu0 %vm6912_vm1, %v4705_v12 }
  0x52   : > { %1067 = vmatprep.mubr.bf16.mxu0 %v6910_v0 }
  0x59   : > { %4100 = vmatmul.mubr.msk.bf16.gmra.mrb[28].mxu0 %vm6912_vm1, %v4706_v13 }
  0x5a   : > { %1077 = vmatprep.mubr.bf16.mxu0 %v6910_v0 }
  0x61   : > { %4101 = vmatmul.mubr.msk.bf16.gmra.mrb[32].mxu0 %vm6912_vm1, %v4707_v14 }
  0x62   : > { %1087 = vmatprep.mubr.bf16.mxu0 %v6910_v0 }
  0x69   : > { %4102 = vmatmul.mubr.msk.bf16.gmra.mrb[36].mxu0 %vm6912_vm1, %v4708_v15 }
  0x6a   : > { %1097 = vmatprep.mubr.bf16.mxu0 %v6910_v0 }
  0x71   : > { %4103 = vmatmul.mubr.msk.bf16.gmra.mrb[40].mxu0 %vm6912_vm1, %v4709_v16 }
  0x72   : > { %1107 = vmatprep.mubr.bf16.mxu0 %v6910_v0 }
  0x79   : > { %4104 = vmatmul.mubr.msk.bf16.gmra.mrb[44].mxu0 %vm6912_vm1, %v4710_v17 }
  0x7a   : > { %1117 = vmatprep.mubr.bf16.mxu0 %v6910_v0 }
  0x81   : > { %4105 = vmatmul.mubr.msk.bf16.gmra.mrb[48].mxu0 %vm6912_vm1, %v4711_v19 }
  0x82   : > { %1127 = vmatprep.mubr.bf16.mxu0 %v6910_v0 }
  0x89   : > { %4106 = vmatmul.mubr.msk.bf16.gmra.mrb[52].mxu0 %vm6912_vm1, %v4712_v20 }
  0x8a   : > { %1137 = vmatprep.mubr.bf16.mxu0 %v6910_v0 }
  0x91   : > { %4107 = vmatmul.mubr.msk.bf16.gmra.mrb[56].mxu0 %vm6912_vm1, %v4713_v21 }
  0x92   : > { %1147 = vmatprep.mubr.bf16.mxu0 %v6910_v0 }
  0x99   : > { %4108 = vmatmul.mubr.msk.bf16.gmra.mrb[60].mxu0 %vm6912_vm1, %v4714_v22 }
  0x9a   : > { %1157 = vmatprep.mubr.bf16.mxu0 %v6910_v0 }
  0xa1   : > { %4109 = vmatmul.mubr.msk.bf16.gmra.mrb[64].mxu0 %vm6912_vm1, %v4715_v23  ;;  %vm6933_vm1 = vcmask 1043456  }
  0xa2   : > { %2293 = vmatprep.mubr.bf16.mxu0 %v6910_v0 }
  0xf4   : > { %v4992_v24 = vpop.f32.mrb[0].mxu0 }
  0xf5   : > { %v4994_v25 = vpop.f32.mrb[1].mxu0 }
  0xf6   : > { %v4996_v26 = vpop.f32.mrb[2].mxu0 }
  0xf7   : > { %v4998_v27 = vpop.f32.mrb[3].mxu0 }
  0xfc   : > { %v5000_v28 = vpop.f32.mrb[4].mxu0 }
  0xfd   : > { %v5002_v29 = vpop.f32.mrb[5].mxu0 }
  0xfe   : > { %v5004_v30 = vpop.f32.mrb[6].mxu0 }
  0xff   : > { %v5006_v31 = vpop.f32.mrb[7].mxu0 }
 0x104   : > { %v5008_v32 = vpop.f32.mrb[8].mxu0 }
 0x105   : > { %v5010_v33 = vpop.f32.mrb[9].mxu0 }
 0x106   : > { %v5012_v34 = vpop.f32.mrb[10].mxu0 }
 0x107   : > { %v5014_v35 = vpop.f32.mrb[11].mxu0 }
 0x10c   : > { %v5016_v36 = vpop.f32.mrb[12].mxu0 }
 0x10d   : > { %v5018_v37 = vpop.f32.mrb[13].mxu0 }
 0x10e   : > { %v5020_v38 = vpop.f32.mrb[14].mxu0 }
 0x10f   : > { %v5022_v39 = vpop.f32.mrb[15].mxu0 }
 0x114   : > { %v5024_v40 = vpop.f32.mrb[16].mxu0 }
 0x115   : > { %v5026_v41 = vpop.f32.mrb[17].mxu0 }
 0x116   : > { %v5028_v42 = vpop.f32.mrb[18].mxu0 }
 0x117   : > { %v5030_v43 = vpop.f32.mrb[19].mxu0 }
 0x11c   : > { %v5032_v44 = vpop.f32.mrb[20].mxu0 }
 0x11d   : > { %v5034_v45 = vpop.f32.mrb[21].mxu0 }
 0x11e   : > { %v5036_v46 = vpop.f32.mrb[22].mxu0 }
 0x11f   : > { %v5038_v47 = vpop.f32.mrb[23].mxu0 }
 0x124   : > { %v5040_v48 = vpop.f32.mrb[24].mxu0 }
 0x125   : > { %v5042_v49 = vpop.f32.mrb[25].mxu0 }
 0x126   : > { %v5044_v50 = vpop.f32.mrb[26].mxu0 }
 0x127   : > { %v5046_v51 = vpop.f32.mrb[27].mxu0 }
 0x12c   : > { %v5048_v52 = vpop.f32.mrb[28].mxu0 }
 0x12d   : > { %v5050_v53 = vpop.f32.mrb[29].mxu0 }
 0x12e   : > { %6964 = vst [vmem:[#allocation2_spill] sm:$0xff] %v5050_v53  ;;  %v5052_v54 = vpop.f32.mrb[30].mxu0 }
 0x12f   : > { %v5054_v55 = vpop.f32.mrb[31].mxu0 }
 0x134   : > { %v5056_v56 = vpop.f32.mrb[32].mxu0 }
 0x135   : > { %6965 = vst [vmem:[#allocation3_spill] sm:$0xff] %v5056_v56  ;;  %v5058_v57 = vpop.f32.mrb[33].mxu0 }
 0x136   : > { %6966 = vst [vmem:[#allocation4_spill] sm:$0xff] %v5058_v57  ;;  %v5060_v58 = vpop.f32.mrb[34].mxu0 }
 0x137   : > { %6967 = vst [vmem:[#allocation5_spill] sm:$0xff] %v5060_v58  ;;  %v5062_v59 = vpop.f32.mrb[35].mxu0 }
 0x138   : > { %6968 = vst [vmem:[#allocation6_spill] sm:$0xff] %v5062_v59 }
 0x13c   : > { %v5064_v60 = vpop.f32.mrb[36].mxu0 }
 0x13d   : > { %6969 = vst [vmem:[#allocation7_spill] sm:$0xff] %v5064_v60  ;;  %v5066_v61 = vpop.f32.mrb[37].mxu0 }
 0x13e   : > { %6970 = vst [vmem:[#allocation8_spill] sm:$0xff] %v5066_v61  ;;  %v5068_v62 = vpop.f32.mrb[38].mxu0 }
 0x13f   : > { %6971 = vst [vmem:[#allocation9_spill] sm:$0xff] %v5068_v62  ;;  %v5070_v63 = vpop.f32.mrb[39].mxu0 }
 0x140   : > { %6972 = vst [vmem:[#allocation10_spill] sm:$0xff] %v5070_v63 }
 0x144   : > { %v5072_v1 = vpop.f32.mrb[40].mxu0 }
 0x145   : > { %6973 = vst [vmem:[#allocation11_spill] sm:$0xff] %v5072_v1  ;;  %v5074_v3 = vpop.f32.mrb[41].mxu0 }
 0x146   : > { %6974 = vst [vmem:[#allocation12_spill] sm:$0xff] %v5074_v3  ;;  %v5076_v4 = vpop.f32.mrb[42].mxu0 }
 0x147   : > { %6975 = vst [vmem:[#allocation13_spill] sm:$0xff] %v5076_v4  ;;  %v5078_v5 = vpop.f32.mrb[43].mxu0 }
 0x148   : > { %6976 = vst [vmem:[#allocation14_spill] sm:$0xff] %v5078_v5 }
 0x14c   : > { %v5080_v6 = vpop.f32.mrb[44].mxu0 }
 0x14d   : > { %6977 = vst [vmem:[#allocation15_spill] sm:$0xff] %v5080_v6  ;;  %v5082_v7 = vpop.f32.mrb[45].mxu0 }
 0x14e   : > { %6978 = vst [vmem:[#allocation16_spill] sm:$0xff] %v5082_v7  ;;  %v5084_v8 = vpop.f32.mrb[46].mxu0 }
 0x14f   : > { %6979 = vst [vmem:[#allocation17_spill] sm:$0xff] %v5084_v8  ;;  %v5086_v9 = vpop.f32.mrb[47].mxu0 }
 0x150   : > { %6980 = vst [vmem:[#allocation18_spill] sm:$0xff] %v5086_v9 }
 0x154   : > { %v5088_v10 = vpop.f32.mrb[48].mxu0 }
 0x155   : > { %6981 = vst [vmem:[#allocation19_spill] sm:$0xff] %v5088_v10  ;;  %v5090_v11 = vpop.f32.mrb[49].mxu0 }
 0x156   : > { %6982 = vst [vmem:[#allocation20_spill] sm:$0xff] %v5090_v11  ;;  %v5092_v12 = vpop.f32.mrb[50].mxu0 }
 0x157   : > { %6983 = vst [vmem:[#allocation21_spill] sm:$0xff] %v5092_v12  ;;  %v5094_v13 = vpop.f32.mrb[51].mxu0 }
 0x158   : > { %6984 = vst [vmem:[#allocation22_spill] sm:$0xff] %v5094_v13 }
 0x15c   : > { %v5096_v14 = vpop.f32.mrb[52].mxu0 }
 0x15d   : > { %6985 = vst [vmem:[#allocation23_spill] sm:$0xff] %v5096_v14  ;;  %v5098_v15 = vpop.f32.mrb[53].mxu0 }
 0x15e   : > { %6986 = vst [vmem:[#allocation24_spill] sm:$0xff] %v5098_v15  ;;  %v5100_v16 = vpop.f32.mrb[54].mxu0 }
 0x15f   : > { %6987 = vst [vmem:[#allocation25_spill] sm:$0xff] %v5100_v16  ;;  %v5102_v17 = vpop.f32.mrb[55].mxu0  ;;  %v819_v16 = vpop.permute.xlu0 %818 }
 0x160   : > { %6988 = vst [vmem:[#allocation26_spill] sm:$0xff] %v5102_v17 }
 0x164   : > { %v5104_v18 = vpop.f32.mrb[56].mxu0 }
 0x165   : > { %6989 = vst [vmem:[#allocation27_spill] sm:$0xff] %v5104_v18  ;;  %v5106_v19 = vpop.f32.mrb[57].mxu0 }
 0x166   : > { %6990 = vst [vmem:[#allocation28_spill] sm:$0xff] %v5106_v19  ;;  %v5108_v20 = vpop.f32.mrb[58].mxu0 }
 0x167   : > { %6991 = vst [vmem:[#allocation29_spill] sm:$0xff] %v5108_v20  ;;  %v5110_v21 = vpop.f32.mrb[59].mxu0 }
 0x168   : > { %6992 = vst [vmem:[#allocation30_spill] sm:$0xff] %v5110_v21 }
 0x16c   : > { %v5112_v22 = vpop.f32.mrb[60].mxu0 }
 0x16d   : > { %6993 = vst [vmem:[#allocation31_spill] sm:$0xff] %v5112_v22  ;;  %v5114_v23 = vpop.f32.mrb[61].mxu0 }
 0x16e   : > { %6994 = vst [vmem:[#allocation32_spill] sm:$0xff] %v5114_v23  ;;  %v5116_v0 = vpop.f32.mrb[62].mxu0 }
 0x16f   : > { %6995 = vst [vmem:[#allocation33_spill] sm:$0xff] %v5116_v0  ;;  %v5118_v13 = vpop.f32.mrb[63].mxu0 }
 0x170   : > { %6996 = vst [vmem:[#allocation34_spill] sm:$0xff] %v5118_v13 }
 0x174   : > { %v5120_v12 = vpop.f32.mrb[64].mxu0 }
 0x175   : > { %v5122_v17 = vpop.f32.mrb[65].mxu0 }
 0x176   : > { %v1163_v18 = vpop.f32.mrb[66].mxu0 }
 0x177   : > { %v1164_v15 = vadd.f32 %v1163_v18, %v819_v16  ;;  %v1165_v19 = vpop.f32.mrb[67].mxu0 }
 0x178   : > { %v1166_v14 = vadd.f32 %v1165_v19, %v819_v16 }
 0x179   : > { %v1234_v20 = vmax.f32 %v1164_v15, 0.0  ;;  %v550_v15 = vlaneseq }
 0x17a   : > { %v1235_v9 = vmax.f32 %v1166_v14, 0.0  ;;  %v649_v14 = vld [vmem:[%s6893_s2 + $0x100] sm:$0xff] }
 0x17b   : > { %v5133_v16 = vand.u32 127, %v550_v15 }
 0x17c   : > { %v4522_v21 = vpack.i.bf16 %v1235_v9, %v1234_v20 }
 0x17d   : > { %vm6929_vm2 = vcmp.lt.s32.totalorder %v5133_v16, 32  ;;  %vm6927_vm3 = vcmp.lt.s32.totalorder %v5133_v16, 48  ;;  %vm1435_vm4 = vcmp.ge.s32.totalorder %v5133_v16, 48  ;;  %vm1446_vm5 = vcmp.ge.s32.totalorder %v5133_v16, 32 }
 0x17e   : > { %4523 = vrot.lane.b32.xlu1 %v4522_v21, %s4774_s20  ;;  %4518 = vrot.lane.b32.xlu0 %v4522_v21, %s4775_s21  ;;  %v5140_v22 = vadd.s32 128, %v5133_v16  ;;  %vm6926_vm6 = vcmp.lt.s32.totalorder %v5133_v16, 16  ;;  %vm5155_vm7 = vmpackc.low %vm1446_vm5, %vm1435_vm4  ;;  %vm6921_vm8 = vcmp.ge.s32.totalorder %v5133_v16, 16  ;;  %vm6925_vm9 = vcmp.lt.s32.totalorder %v5133_v16, 112 }
 0x17f   : > { %vm6923_vm10 = vcmp.lt.s32.totalorder %v5133_v16, 96  ;;  %vm6924_vm11 = vcmp.lt.s32.totalorder %v5133_v16, 80  ;;  %vm5173_vm14 = vmpackc.low %vm4780_vm13, %vm6921_vm8  ;;  %vm6930_vm0 = vcmp.lt.s32.totalorder %v5133_v16, 3 }
 0x180   : > { %vm6920_vm12 = vcmp.lt.s32.totalorder %v5140_v22, 240  ;;  %vm1480_vm15 = vcmp.lt.s32.totalorder %v5140_v22, 224  ;;  %vm6922_vm4 = vcmp.lt.s32.totalorder %v5140_v22, 208 }
 0x181   : > { %vm5193_vm5 = vmpackc.low %vm1480_vm15, %vm6920_vm12  ;;  %vm6932_vm15 = vcmask 457728   ;;  %vm6931_vm12 = vcmp.lt.s32.totalorder %v5133_v16, 2 }
 0x182   : > { %4528 = vrot.lane.b32.xlu1 %v4522_v21, %s6917_s22  ;;  %4533 = vrot.lane.b32.xlu0 %v4522_v21, %s6951_s23  ;;  %s7039_s22 = smov 16  }
 0x186   : > { %4538 = vrot.lane.b32.xlu1 %v4522_v21, %s6913_s26  ;;  %4543 = vrot.lane.b32.xlu0 %v4522_v21, %s6915_s27  ;;  %s6942_s26 = smov 126   ;;  %s7040_s27 = smov 80  }
 0x18a   : > { %813 = vperm.xlu1 %4547, %v649_v14  }
 0x1f0   : > { %v4524_v18 = vpop.permute.xlu1 %4523  ;;  %v4519_v19 = vpop.permute.xlu0 %4518 }
 0x1f1   : > { %v4526_v13 = vunpack.i.h.bf16 %v4524_v18  ;;  %v4525_v21 = vunpack.i.l.bf16 %v4524_v18  ;;  %v4521_v0 = vunpack.i.h.bf16 %v4519_v19  ;;  %v4520_v23 = vunpack.i.l.bf16 %v4519_v19 }
 0x1f3   : > { %v2202_v14 = vsel %vm6929_vm2, %v4526_v13, %v4525_v21  ;;  %v2194_v15 = vsel %vm6927_vm3, %v4521_v0, %v4520_v23  ;;  %v2193_v8 = vsel %vm6927_vm3, %v4520_v23, %v4521_v0  ;;  %v2201_v11 = vsel %vm6929_vm2, %v4525_v21, %v4526_v13 }
 0x1f4   : > { %v4237_v10 = vpack.c.bf16 %v2202_v14, %v2194_v15  ;;  %v4529_v18 = vpop.permute.xlu1 %4528  ;;  %v4534_v19 = vpop.permute.xlu0 %4533  ;;  %v2239_v5 = vpack.c.bf16 %v2201_v11, %v2193_v8 }
 0x1f5   : > { %v4531_v7 = vunpack.i.h.bf16 %v4529_v18  ;;  %v4530_v6 = vunpack.i.l.bf16 %v4529_v18  ;;  %v4536_v0 = vunpack.i.h.bf16 %v4534_v19  ;;  %v4535_v13 = vunpack.i.l.bf16 %v4534_v19 }
 0x1f6   : > { %2261 = vmatprep.subr.bf16.mxu0 %v2239_v5 }
 0x1f7   : > { %v2210_v8 = vsel %vm6926_vm6, %v4531_v7, %v4530_v6  ;;  %4238 = vmatpush1.bf16.msk.msra.mxu0 %vm5155_vm7, %v4237_v10  ;;  %v2209_v11 = vsel %vm6926_vm6, %v4530_v6, %v4531_v7  ;;  %vm6934_vm6 = vcmp.lt.s32.totalorder %v5133_v16, 1 }
 0x1f8   : > { %v4240_v23 = vpack.c.bf16 %v1234_v20, %v2210_v8  ;;  %v4539_v21 = vpop.permute.xlu1 %4538  ;;  %v4544_v14 = vpop.permute.xlu0 %4543  ;;  %v2241_v15 = vpack.c.bf16 %v1235_v9, %v2209_v11  ;;  %v2217_v20 = vsel %vm6925_vm9, %v4535_v13, %v4536_v0  ;;  %v2218_v9 = vsel %vm6925_vm9, %v4536_v0, %v4535_v13 }
 0x1f9   : > { %v4541_v10 = vunpack.i.h.bf16 %v4539_v21  ;;  %v4540_v6 = vunpack.i.l.bf16 %v4539_v21  ;;  %v4546_v7 = vunpack.i.h.bf16 %v4544_v14  ;;  %v4545_v18 = vunpack.i.l.bf16 %v4544_v14 }
 0x1fa   : > { %2263 = vmatprep.subr.bf16.mxu0 %v2241_v15  ;;  %vm6937_vm9 = vcmp.lt.s32.totalorder %v5133_v16, 127 }
 0x1fb   : > { %v2225_v19 = vsel %vm6923_vm10, %v4540_v6, %v4541_v10  ;;  %v2226_v8 = vsel %vm6923_vm10, %v4541_v10, %v4540_v6  ;;  %v2234_v11 = vsel %vm6924_vm11, %v4546_v7, %v4545_v18  ;;  %4241 = vmatpush1.bf16.msk.msra.mxu0 %vm5173_vm14, %v4240_v23  ;;  %v2233_v0 = vsel %vm6924_vm11, %v4545_v18, %v4546_v7  ;;  %v2237_v7 = vld [vmem:[%s6898_s7] sm:$0xf] }
 0x1fc   : > { %v4243_v13 = vpack.c.bf16 %v2226_v8, %v2218_v9  ;;  %v2242_v14 = vpack.c.bf16 %v2225_v19, %v2217_v20  ;;  %v2236_v15 = vsel %vm6922_vm4, %v2234_v11, 0.0  ;;  %v2244_v6 = vpack.c.bf16 %v2233_v0, %v2233_v0 }
 0x1fd   : > { %v2245_v10 = vpack.c.bf16 %v2236_v15, %v2236_v15  ;;  %v7003_v18 = vmov 0  }
 0x1fe   : > { %4244 = vmatprep.subr.msk.bf16.mxu0 %vm5193_vm5, %v4243_v13  ;;  %v2256_v23 = vsel %vm6933_vm1, %v2244_v6, 0  ;;  %v5233_v13 = vand.u32 15, %v5133_v16 }
 0x1ff   : > { %2266 = vmatpush1.bf16.msra.mxu0 %v2242_v14 }
 0x200   : > { %4245 = vmatprep.subr.msk.bf16.mxu0 %vm6933_vm1, %v2245_v10  ;;  %vm1300_vm10 = vcmp.ge.s32.totalorder %v5233_v13, 3  ;;  %vm1311_vm11 = vcmp.ge.s32.totalorder %v5233_v13, 2 }
 0x201   : > { %vm5259_vm2 = vmpackc.low %vm1311_vm11, %vm1300_vm10  ;;  %vm6944_vm11 = vcmp.lt.s32.totalorder %v5233_v13, 13  ;;  %vm1344_vm10 = vcmp.lt.s32.totalorder %v5233_v13, 14 }
 0x203   : > { %2268 = vmatpush1.bf16.msra.mxu0 %v2256_v23 }
 0x206   : > { %4246 = vmatmul.mubr.msk.bf16.vlgmr.msra.gmra.mrb[68].mxu0 %vm6932_vm15, %v2237_v7 }
 0x207   : > { %2408 = vmatprep.mubr.bf16.mxu0 %v7003_v18 }
 0x209   : > { %v814_v20 = vpop.permute.xlu1 %813 }
 0x20a   : > { %v5211_v9 = vadd.f32 %v5120_v12, %v814_v20  ;;  %v5214_v19 = vadd.f32 %v5122_v17, %v814_v20  ;;  %v2246_v12 = vld [vmem:[%s6899_s8] sm:$0xff]  ;;  %v5230_v17 = vand.u32 15, %v5140_v22 }
 0x20c   : > { %v6928_v8 = vmax.f32 %v5211_v9, 0.0  ;;  %v1233_v11 = vmax.f32 %v5214_v19, 0.0  ;;  %vm1301_vm8 = vcmp.ge.s32.totalorder %v5230_v17, 3  ;;  %vm1312_vm4 = vcmp.ge.s32.totalorder %v5230_v17, 2 }
 0x20d   : > { %vm5247_vm3 = vmpackc.low %vm1312_vm4, %vm1301_vm8  ;;  %vm1361_vm8 = vcmp.lt.s32.totalorder %v5133_v16, 125  ;;  %vm6935_vm4 = vcmp.ge.s32.totalorder %v5230_v17, 1  ;;  %vm6945_vm1 = vcmp.lt.s32.totalorder %v5230_v17, 13 }
 0x20e   : > { %v4553_v0 = vpack.i.bf16 %v1233_v11, %v6928_v8  ;;  %vm5280_vm15 = vmpackc.low %vm4780_vm13, %vm6935_vm4  ;;  %vm6939_vm4 = vcmp.lt.s32.totalorder %v5233_v13, 15 }
 0x210   : > { %4554 = vrot.lane.b32.xlu1 %v4553_v0, %s6946_s1  ;;  %4549 = vrot.lane.b32.xlu0 %v4553_v0, %s6943_s28 }
 0x214   : > { %4564 = vrot.lane.b32.xlu1 %v4553_v0, %s6947_s29  ;;  %4559 = vrot.lane.b32.xlu0 %v4553_v0, %s6949_s30 }
 0x218   : > { %4574 = vrot.lane.b32.xlu1 %v4553_v0, %s6941_s18  ;;  %4569 = vrot.lane.b32.xlu0 %v4553_v0, %s6942_s26  ;;  %v7004_v0 = vmov 0 }
 0x219   : > { %v7005_v0 = vsel %vm5247_vm3, 4294967295, %v7004_v0 }
 0x21a   : > { %7006 = vst [vmem:[#allocation35_spill] sm:$0xff] %v7005_v0 }
 0x21c   : > { %2249 = vperm.xlu0 %4516, %v2246_v12  }
 0x282   : > { %v4555_v14 = vpop.permute.xlu1 %4554  ;;  %v4550_v15 = vpop.permute.xlu0 %4549 }
 0x283   : > { %v4557_v10 = vunpack.i.h.bf16 %v4555_v14  ;;  %v4556_v6 = vunpack.i.l.bf16 %v4555_v14  ;;  %v4552_v23 = vunpack.i.h.bf16 %v4550_v15  ;;  %v4551_v7 = vunpack.i.l.bf16 %v4550_v15 }
 0x285   : > { %v1307_v20 = vsel %vm6930_vm0, %v4551_v7, %v4552_v23  ;;  %v1318_v19 = vsel %vm6931_vm12, %v4556_v6, %v4557_v10  ;;  %v1308_v12 = vsel %vm6930_vm0, %v4552_v23, %v4551_v7  ;;  %v1319_v14 = vsel %vm6931_vm12, %v4557_v10, %v4556_v6 }
 0x286   : > { %v4565_v15 = vpop.permute.xlu1 %4564  ;;  %v4560_v8 = vpop.permute.xlu0 %4559  ;;  %v4111_v63 = vpack.c.bf16 %v1318_v19, %v1307_v20  ;;  %v4114_v3 = vpack.c.bf16 %v1319_v14, %v1308_v12  ;;  %vm6938_vm0 = vcmp.lt.s32.totalorder %v5133_v16, 126  ;;  %vm6936_vm12 = vcmp.ge.s32.totalorder %v5233_v13, 1 }
 0x287   : > { %v4562_v23 = vunpack.i.h.bf16 %v4560_v8  ;;  %v4561_v7 = vunpack.i.l.bf16 %v4560_v8  ;;  %v4567_v10 = vunpack.i.h.bf16 %v4565_v15  ;;  %v4566_v6 = vunpack.i.l.bf16 %v4565_v15  ;;  %v2649_v15 = vld [vmem:[%s6905_s14 + $0xd8] sm:$0xff] }
 0x288   : > { %4112 = vmatprep.subr.msk.bf16.mxu1 %vm5247_vm3, %v4111_v63 }
 0x289   : > { %v1329_v20 = vsel %vm6934_vm6, %v4561_v7, %v4562_v23  ;;  %v1330_v19 = vsel %vm6934_vm6, %v4562_v23, %v4561_v7  ;;  %4115 = vmatpush1.bf16.msk.msra.mxu1 %vm5259_vm2, %v4114_v3  ;;  %vm5289_vm6 = vmpackc.low %vm4780_vm13, %vm6936_vm12  ;;  %v7013_v3 = vmax.f32 %v5211_v9, 0.0  ;;  %vm7014_vm13 = vcmp.lt.s32.totalorder %v5230_v17, 15 }
 0x28a   : > { %v4575_v63 = vpop.permute.xlu1 %4574  ;;  %v4570_v12 = vpop.permute.xlu0 %4569  ;;  %v4117_v14 = vpack.c.bf16 %v1233_v11, %v1329_v20  ;;  %v1340_v11 = vsel %vm6937_vm9, %v4566_v6, %v4567_v10  ;;  %v1341_v20 = vsel %vm6937_vm9, %v4567_v10, %v4566_v6  ;;  %vm7015_vm12 = vcmp.lt.s32.totalorder %v5230_v17, 14 }
 0x28b   : > { %v4120_v23 = vpack.c.bf16 %v7013_v3, %v1330_v19  ;;  %v4577_v7 = vunpack.i.h.bf16 %v4575_v63  ;;  %v4576_v1 = vunpack.i.l.bf16 %v4575_v63  ;;  %v4572_v61 = vunpack.i.h.bf16 %v4570_v12  ;;  %vm5315_vm9 = vmpackc.low %vm7015_vm12, %vm7014_vm13 }
 0x28c   : > { %v4571_v60 = vunpack.i.l.bf16 %v4570_v12  ;;  %4118 = vmatprep.subr.msk.bf16.mxu1 %vm5280_vm15, %v4117_v14  ;;  %vm7021_vm12 = vcmask 1043456   ;;  %vm7024_vm13 = vcmask 457728  }
 0x28d   : > { %v1363_v9 = vsel %vm1361_vm8, %v4577_v7, %v4576_v1  ;;  %4121 = vmatpush1.bf16.msk.msra.mxu1 %vm5289_vm6, %v4120_v23  ;;  %v1362_v6 = vsel %vm1361_vm8, %v4576_v1, %v4577_v7 }
 0x28e   : > { %v1351_v19 = vsel %vm6938_vm0, %v4571_v60, %v4572_v61  ;;  %v1352_v63 = vsel %vm6938_vm0, %v4572_v61, %v4571_v60  ;;  %vm5325_vm0 = vmpackc.low %vm1344_vm10, %vm6939_vm4  ;;  %v7018_v60 = vmov 0  ;;  %v1365_v14 = vsel %vm6945_vm1, %v1363_v9, 0.0 }
 0x28f   : > { %v4123_v12 = vpack.c.bf16 %v1352_v63, %v1341_v20  ;;  %v7019_v60 = vsel %vm5325_vm0, 4294967295, %v7018_v60  ;;  %v4126_v61 = vpack.c.bf16 %v1351_v19, %v1340_v11  ;;  %v1364_v3 = vsel %vm6944_vm11, %v1362_v6, 0.0  ;;  %vm7022_vm10 = vmmov %vm7021_vm12  ;;  %v1366_v11 = vld [vmem:[%s7023_s3] sm:$0xf]  ;;  %s7167_s3 = smov 125  }
 0x290   : > { %7020 = vst [vmem:[#allocation36_spill] sm:$0xff] %v7019_v60  ;;  %v1374_v23 = vpack.c.bf16 %v1365_v14, %v1365_v14  ;;  %v1373_v1 = vpack.c.bf16 %v1364_v3, %v1364_v3 }
 0x291   : > { %4124 = vmatprep.subr.msk.bf16.mxu1 %vm5315_vm9, %v4123_v12 }
 0x292   : > { %4127 = vmatpush1.bf16.msk.msra.mxu1 %vm5325_vm0, %v4126_v61  ;;  %v1387_v7 = vsel %vm7022_vm10, %v1373_v1, 0  ;;  %v1375_v1 = vld [vmem:[%s7025_s4] sm:$0xff]  ;;  %s4493_s4 = sshll.u32 %s7256_s25, 11  ;;  %s7164_s25 = smov 2  }
 0x293   : > { %4128 = vmatprep.subr.msk.bf16.mxu1 %vm7021_vm12, %v1374_v23  ;;  %vm7026_vm12 = vcmp.lt.s32.totalorder %v5133_v16, 2 }
 0x294   : > { %vm7027_vm10 = vmmov %vm7026_vm12 }
 0x296   : > { %1399 = vmatpush1.bf16.msra.mxu1 %v1387_v7 }
 0x299   : > { %4129 = vmatmul.mubr.msk.bf16.vlgmr.msra.gmra.mrb[0].mxu1 %vm7024_vm13, %v1366_v11  ;;  %vm7028_vm13 = vcmp.lt.s32.totalorder %v5133_v16, 3 }
 0x29a   : > { %1899 = vmatprep.mubr.bf16.mxu1 %v7003_v18  ;;  %vm7029_vm4 = vmmov %vm7028_vm13 }
 0x29b   : > { %v2250_v20 = vpop.permute.xlu0 %2249 }
 0x2d9   : > { %v2295_v9 = vpop.f32.mrb[68].mxu0 }
 0x2da   : > { %v2296_v19 = vadd.f32 %v2295_v9, %v2250_v20  ;;  %v2297_v63 = vpop.f32.mrb[69].mxu0 }
 0x2db   : > { %v2298_v6 = vadd.f32 %v2297_v63, %v2250_v20  ;;  %v2299_v12 = vpop.f32.mrb[70].mxu0 }
 0x2dc   : > { %v2302_v61 = vmax.f32 %v2296_v19, 0.0  ;;  %v2300_v14 = vpop.f32.mrb[71].mxu0 }
 0x2dd   : > { %v2303_v3 = vmax.f32 %v2298_v6, 0.0 }
 0x2df   : > { %v4583_v23 = vpack.i.bf16 %v2303_v3, %v2302_v61 }
 0x2e1   : > { %4584 = vrot.lane.b32.xlu0 %v4583_v23, %s6946_s1  ;;  %4579 = vrot.lane.b32.xlu1 %v4583_v23, %s6943_s28 }
 0x2e5   : > { %4594 = vrot.lane.b32.xlu0 %v4583_v23, %s6947_s29  ;;  %4589 = vrot.lane.b32.xlu1 %v4583_v23, %s6949_s30 }
 0x2e9   : > { %4604 = vrot.lane.b32.xlu0 %v4583_v23, %s6941_s18  ;;  %4599 = vrot.lane.b32.xlu1 %v4583_v23, %s6942_s26  ;;  %s7041_s18 = smov 96   ;;  %s7166_s26 = smov 126  }
 0x2ed   : > { %1378 = vperm.xlu1 %4547, %v1375_v1  }
 0x353   : > { %v4585_v7 = vpop.permute.xlu0 %4584  ;;  %v4580_v11 = vpop.permute.xlu1 %4579 }
 0x354   : > { %v4587_v20 = vunpack.i.h.bf16 %v4585_v7  ;;  %v4586_v9 = vunpack.i.l.bf16 %v4585_v7  ;;  %v4582_v19 = vunpack.i.h.bf16 %v4580_v11  ;;  %v4581_v63 = vunpack.i.l.bf16 %v4580_v11 }
 0x356   : > { %v2316_v6 = vsel %vm7026_vm12, %v4586_v9, %v4587_v20  ;;  %v2317_v12 = vsel %vm7027_vm10, %v4587_v20, %v4586_v9  ;;  %v2308_v14 = vsel %vm7028_vm13, %v4581_v63, %v4582_v19  ;;  %v2309_v23 = vsel %vm7029_vm4, %v4582_v19, %v4581_v63 }
 0x357   : > { %v4251_v57 = vpack.c.bf16 %v2317_v12, %v2309_v23  ;;  %v4595_v1 = vpop.permute.xlu0 %4594  ;;  %v4590_v56 = vpop.permute.xlu1 %4589  ;;  %v4248_v59 = vpack.c.bf16 %v2316_v6, %v2308_v14  ;;  %vm7030_vm12 = vcmp.lt.s32.totalorder %v5133_v16, 1  ;;  %vm7032_vm4 = vcmp.lt.s32.totalorder %v5133_v16, 127 }
 0x358   : > { %v4592_v58 = vunpack.i.h.bf16 %v4590_v56  ;;  %v4591_v7 = vunpack.i.l.bf16 %v4590_v56  ;;  %v4597_v53 = vunpack.i.h.bf16 %v4595_v1  ;;  %v4596_v11 = vunpack.i.l.bf16 %v4595_v1  ;;  %vm7031_vm10 = vmmov %vm7030_vm12 }
 0x359   : > { %4249 = vmatprep.subr.msk.bf16.mxu0 %vm5247_vm3, %v4248_v59  ;;  %vm7033_vm13 = vmmov %vm7032_vm4 }
 0x35a   : > { %v2324_v20 = vsel %vm7030_vm12, %v4591_v7, %v4592_v58  ;;  %v2325_v9 = vsel %vm7031_vm10, %v4592_v58, %v4591_v7  ;;  %4252 = vmatpush1.bf16.msk.msra.mxu0 %vm5259_vm2, %v4251_v57  ;;  %v2332_v59 = vsel %vm7032_vm4, %v4596_v11, %v4597_v53  ;;  %v2333_v0 = vsel %vm7033_vm13, %v4597_v53, %v4596_v11 }
 0x35b   : > { %v4257_v19 = vpack.c.bf16 %v2302_v61, %v2325_v9  ;;  %v4605_v63 = vpop.permute.xlu0 %4604  ;;  %v4600_v12 = vpop.permute.xlu1 %4599  ;;  %v4254_v6 = vpack.c.bf16 %v2303_v3, %v2324_v20  ;;  %vm7034_vm12 = vcmp.lt.s32.totalorder %v5133_v16, 126  ;;  %vm7036_vm4 = vcmask 1043456  }
 0x35c   : > { %v4607_v14 = vunpack.i.h.bf16 %v4605_v63  ;;  %v4606_v56 = vunpack.i.l.bf16 %v4605_v63  ;;  %v4602_v23 = vunpack.i.h.bf16 %v4600_v12  ;;  %v4601_v1 = vunpack.i.l.bf16 %v4600_v12  ;;  %vm7035_vm10 = vmmov %vm7034_vm12 }
 0x35d   : > { %4255 = vmatprep.subr.msk.bf16.mxu0 %vm5280_vm15, %v4254_v6  ;;  %vm7037_vm13 = vmmov %vm7036_vm4 }
 0x35e   : > { %v2349_v57 = vsel %vm1361_vm8, %v4607_v14, %v4606_v56  ;;  %v2340_v58 = vsel %vm7034_vm12, %v4601_v1, %v4602_v23  ;;  %v2341_v61 = vsel %vm7035_vm10, %v4602_v23, %v4601_v1  ;;  %4258 = vmatpush1.bf16.msk.msra.mxu0 %vm5289_vm6, %v4257_v19  ;;  %v2348_v3 = vsel %vm1361_vm8, %v4606_v56, %v4607_v14 }
 0x35f   : > { %v4263_v7 = vpack.c.bf16 %v2340_v58, %v2332_v59  ;;  %v4260_v53 = vpack.c.bf16 %v2341_v61, %v2333_v0  ;;  %v2351_v11 = vsel %vm6945_vm1, %v2349_v57, 0.0  ;;  %v2350_v20 = vsel %vm6944_vm11, %v2348_v3, 0.0  ;;  %v2352_v0 = vld [vmem:[%s6900_s9] sm:$0xf] }
 0x360   : > { %v2360_v9 = vpack.c.bf16 %v2351_v11, %v2351_v11  ;;  %v2359_v63 = vpack.c.bf16 %v2350_v20, %v2350_v20  ;;  %vm7038_vm12 = vcmask 457728   ;;  %v2361_v3 = vld [vmem:[%s6901_s10] sm:$0xff]  ;;  %vm7042_vm10 = vcmp.lt.s32.totalorder %v5133_v16, 32 }
 0x361   : > { %4261 = vmatprep.subr.msk.bf16.mxu0 %vm5315_vm9, %v4260_v53 }
 0x362   : > { %4264 = vmatpush1.bf16.msk.msra.mxu0 %vm5325_vm0, %v4263_v7  ;;  %v2371_v19 = vsel %vm7037_vm13, %v2359_v63, 0 }
 0x363   : > { %4265 = vmatprep.subr.msk.bf16.mxu0 %vm7036_vm4, %v2360_v9  ;;  %vm7043_vm4 = vcmp.lt.s32.totalorder %v5133_v16, 48 }
 0x364   : > { %vm7044_vm13 = vmmov %vm7043_vm4 }
 0x366   : > { %2383 = vmatpush1.bf16.msra.mxu0 %v2371_v19 }
 0x369   : > { %4266 = vmatmul.mubr.msk.bf16.vlgmr.msra.gmra.mrb[72].mxu0 %vm7038_vm12, %v2352_v0  ;;  %vm7045_vm12 = vmmov %vm7042_vm10 }
 0x36a   : > { %2980 = vmatprep.mubr.bf16.mxu0 %v7003_v18 }
 0x36c   : > { %v1426_v12 = vpop.f32.mrb[0].mxu1  ;;  %v1379_v14 = vpop.permute.xlu1 %1378 }
 0x36d   : > { %v1428_v6 = vpop.f32.mrb[1].mxu1  ;;  %v1427_v56 = vadd.f32 %v1426_v12, %v1379_v14 }
 0x36e   : > { %v1429_v23 = vadd.f32 %v1428_v6, %v1379_v14  ;;  %v1430_v1 = vpop.f32.mrb[2].mxu1 }
 0x36f   : > { %v1431_v59 = vpop.f32.mrb[3].mxu1  ;;  %v1433_v57 = vmax.f32 %v1427_v56, 0.0 }
 0x370   : > { %v1434_v58 = vmax.f32 %v1429_v23, 0.0 }
 0x372   : > { %v4613_v61 = vpack.i.bf16 %v1434_v58, %v1433_v57 }
 0x374   : > { %4614 = vrot.lane.b32.xlu1 %v4613_v61, %s4774_s20  ;;  %4609 = vrot.lane.b32.xlu0 %v4613_v61, %s4775_s21 }
 0x378   : > { %4624 = vrot.lane.b32.xlu1 %v4613_v61, %s6951_s23  ;;  %4619 = vrot.lane.b32.xlu0 %v4613_v61, %s7039_s22  ;;  %s7066_s23 = smov 112  }
 0x37c   : > { %4634 = vrot.lane.b32.xlu1 %v4613_v61, %s7040_s27  ;;  %4629 = vrot.lane.b32.xlu0 %v4613_v61, %s7041_s18 }
 0x380   : > { %2364 = vperm.xlu0 %4516, %v2361_v3  }
 0x3e6   : > { %v4615_v7 = vpop.permute.xlu1 %4614  ;;  %v4610_v53 = vpop.permute.xlu0 %4609 }
 0x3e7   : > { %v4617_v11 = vunpack.i.h.bf16 %v4615_v7  ;;  %v4616_v20 = vunpack.i.l.bf16 %v4615_v7  ;;  %v4612_v9 = vunpack.i.h.bf16 %v4610_v53  ;;  %v4611_v63 = vunpack.i.l.bf16 %v4610_v53 }
 0x3e9   : > { %v1454_v19 = vsel %vm7042_vm10, %v4617_v11, %v4616_v20  ;;  %v1443_v0 = vsel %vm7043_vm4, %v4612_v9, %v4611_v63  ;;  %v1442_v12 = vsel %vm7044_vm13, %v4611_v63, %v4612_v9  ;;  %v1453_v6 = vsel %vm7045_vm12, %v4616_v20, %v4617_v11 }
 0x3ea   : > { %v4147_v14 = vpack.c.bf16 %v1454_v19, %v1443_v0  ;;  %v4625_v56 = vpop.permute.xlu1 %4624  ;;  %v4620_v23 = vpop.permute.xlu0 %4619  ;;  %v1534_v1 = vpack.c.bf16 %v1453_v6, %v1442_v12  ;;  %vm7046_vm10 = vcmp.lt.s32.totalorder %v5133_v16, 16  ;;  %vm7048_vm13 = vcmp.lt.s32.totalorder %v5133_v16, 112 }
 0x3eb   : > { %v4622_v59 = vunpack.i.h.bf16 %v4620_v23  ;;  %v4621_v61 = vunpack.i.l.bf16 %v4620_v23  ;;  %v4627_v3 = vunpack.i.h.bf16 %v4625_v56  ;;  %v4626_v7 = vunpack.i.l.bf16 %v4625_v56  ;;  %vm7047_vm4 = vmmov %vm7046_vm10 }
 0x3ec   : > { %1867 = vmatprep.subr.bf16.mxu1 %v1534_v1  ;;  %vm7049_vm12 = vmmov %vm7048_vm13 }
 0x3ed   : > { %v1465_v53 = vsel %vm7046_vm10, %v4622_v59, %v4621_v61  ;;  %4148 = vmatpush1.bf16.msk.msra.mxu1 %vm5155_vm7, %v4147_v14  ;;  %v1464_v9 = vsel %vm7047_vm4, %v4621_v61, %v4622_v59  ;;  %v1475_v56 = vsel %vm7048_vm13, %v4626_v7, %v4627_v3  ;;  %v1476_v1 = vsel %vm7049_vm12, %v4627_v3, %v4626_v7 }
 0x3ee   : > { %v4150_v63 = vpack.c.bf16 %v1433_v57, %v1465_v53  ;;  %v4635_v11 = vpop.permute.xlu1 %4634  ;;  %v4630_v20 = vpop.permute.xlu0 %4629  ;;  %v1536_v19 = vpack.c.bf16 %v1434_v58, %v1464_v9  ;;  %vm7050_vm10 = vcmp.lt.s32.totalorder %v5133_v16, 80  ;;  %vm7051_vm4 = vcmp.lt.s32.totalorder %v5133_v16, 96 }
 0x3ef   : > { %v4637_v0 = vunpack.i.h.bf16 %v4635_v11  ;;  %v4636_v12 = vunpack.i.l.bf16 %v4635_v11  ;;  %v4632_v6 = vunpack.i.h.bf16 %v4630_v20  ;;  %v4631_v23 = vunpack.i.l.bf16 %v4630_v20  ;;  %vm7052_vm11 = vmmov %vm7051_vm4  ;;  %v4717_v20 = vld [vmem:[%s6896_s5 + $0x8] sm:$0xff]  }
 0x3f0   : > { %1869 = vmatprep.subr.bf16.mxu1 %v1536_v19  ;;  %vm7053_vm1 = vmmov %vm7050_vm10  ;;  %vm7054_vm13 = vcmp.lt.s32.totalorder %v5140_v22, 208  ;;  %vm7055_vm12 = vcmask 1043456   ;;  %v4718_v19 = vld [vmem:[%s6896_s5 + $0x10] sm:$0xff]  }
 0x3f1   : > { %v1498_v14 = vsel %vm7050_vm10, %v4637_v0, %v4636_v12  ;;  %v1486_v57 = vsel %vm7051_vm4, %v4631_v23, %v4632_v6  ;;  %v1487_v58 = vsel %vm7052_vm11, %v4632_v6, %v4631_v23  ;;  %4151 = vmatpush1.bf16.msk.msra.mxu1 %vm5173_vm14, %v4150_v63  ;;  %v1497_v59 = vsel %vm7053_vm1, %v4636_v12, %v4637_v0  ;;  %vm7056_vm11 = vmmov %vm7055_vm12  ;;  %v4716_v63 = vld [vmem:[%s6896_s5] sm:$0xff]   ;;  %v4719_v0 = vld [vmem:[%s6896_s5 + $0x18] sm:$0xff]  }
 0x3f2   : > { %v4153_v61 = vpack.c.bf16 %v1487_v58, %v1476_v1  ;;  %v1537_v53 = vpack.c.bf16 %v1486_v57, %v1475_v56  ;;  %v1500_v3 = vsel %vm7054_vm13, %v1498_v14, 0.0  ;;  %v1539_v9 = vpack.c.bf16 %v1497_v59, %v1497_v59  ;;  %v4720_v12 = vld [vmem:[%s6896_s5 + $0x20] sm:$0xff]   ;;  %v4721_v6 = vld [vmem:[%s6896_s5 + $0x28] sm:$0xff]   ;;  %v4722_v23 = vld [vmem:[%s6896_s5 + $0x30] sm:$0xff]  }
 0x3f3   : > { %v1540_v7 = vpack.c.bf16 %v1500_v3, %v1500_v3  ;;  %vm7057_vm1 = vcmask 457728   ;;  %v4723_v56 = vld [vmem:[%s6896_s5 + $0x38] sm:$0xff]   ;;  %v4724_v1 = vld [vmem:[%s6896_s5 + $0x40] sm:$0xff]  }
 0x3f4   : > { %4154 = vmatprep.subr.msk.bf16.mxu1 %vm5193_vm5, %v4153_v61  ;;  %v1862_v11 = vsel %vm7056_vm11, %v1539_v9, 0  ;;  %vm7058_vm10 = vmmov %vm7057_vm1  ;;  %v4725_v9 = vld [vmem:[%s6896_s5 + $0x48] sm:$0xff]  }
 0x3f5   : > { %1872 = vmatpush1.bf16.msra.mxu1 %v1537_v53  ;;  %vm7059_vm4 = vmmov %vm7057_vm1 }
 0x3f6   : > { %4155 = vmatprep.subr.msk.bf16.mxu1 %vm7055_vm12, %v1540_v7  ;;  %vm7060_vm13 = vmmov %vm7057_vm1 }
 0x3f7   : > { %vm7061_vm12 = vmmov %vm7057_vm1 }
 0x3f8   : > { %vm7062_vm11 = vmmov %vm7057_vm1 }
 0x3f9   : > { %1874 = vmatpush1.bf16.msra.mxu1 %v1862_v11 }
 0x3fc   : > { %4156 = vmatmul.mubr.msk.bf16.vlgmr.msra.gmra.mrb[4].mxu1 %vm7057_vm1, %v4716_v63 }
 0x3fd   : > { %1909 = vmatprep.mubr.bf16.mxu1 %v7003_v18 }
 0x3ff   : > { %v2365_v14 = vpop.permute.xlu0 %2364 }
 0x404   : > { %4157 = vmatmul.mubr.msk.bf16.gmra.mrb[8].mxu1 %vm7058_vm10, %v4717_v20  ;;  %vm7063_vm10 = vmmov %vm7057_vm1  ;;  %v4726_v20 = vld [vmem:[%s6896_s5 + $0x50] sm:$0xff]  }
 0x405   : > { %1919 = vmatprep.mubr.bf16.mxu1 %v7003_v18 }
 0x40c   : > { %4158 = vmatmul.mubr.msk.bf16.gmra.mrb[12].mxu1 %vm7059_vm4, %v4718_v19  ;;  %vm7064_vm4 = vmmov %vm7057_vm1  ;;  %v618_v19 = vld [vmem:[%s6893_s2 + $0x8] sm:$0xff] }
 0x40d   : > { %1929 = vmatprep.mubr.bf16.mxu1 %v7003_v18 }
 0x414   : > { %4159 = vmatmul.mubr.msk.bf16.gmra.mrb[16].mxu1 %vm7060_vm13, %v4719_v0  ;;  %vm7065_vm13 = vmmov %vm7057_vm1  ;;  %v617_v0 = vld [vmem:[%s6893_s2] sm:$0xff] }
 0x415   : > { %1939 = vmatprep.mubr.bf16.mxu1 %v7003_v18 }
 0x41c   : > { %4160 = vmatmul.mubr.msk.bf16.gmra.mrb[20].mxu1 %vm7061_vm12, %v4720_v12  ;;  %vm7067_vm12 = vmmov %vm7057_vm1  ;;  %v4727_v12 = vld [vmem:[%s6896_s5 + $0x58] sm:$0xff]  }
 0x41d   : > { %1949 = vmatprep.mubr.bf16.mxu1 %v7003_v18 }
 0x424   : > { %4161 = vmatmul.mubr.msk.bf16.gmra.mrb[24].mxu1 %vm7062_vm11, %v4721_v6  ;;  %v620_v6 = vld [vmem:[%s6893_s2 + $0x18] sm:$0xff]  ;;  %vm7068_vm11 = vmmov %vm7057_vm1 }
 0x425   : > { %1959 = vmatprep.mubr.bf16.mxu1 %v7003_v18 }
 0x42c   : > { %4162 = vmatmul.mubr.msk.bf16.gmra.mrb[28].mxu1 %vm7057_vm1, %v4722_v23  ;;  %v619_v23 = vld [vmem:[%s6893_s2 + $0x10] sm:$0xff] }
 0x42d   : > { %1969 = vmatprep.mubr.bf16.mxu1 %v7003_v18 }
 0x434   : > { %4163 = vmatmul.mubr.msk.bf16.gmra.mrb[32].mxu1 %vm7063_vm10, %v4723_v56  ;;  %v622_v56 = vld [vmem:[%s6893_s2 + $0x28] sm:$0xff]  ;;  %vm7069_vm10 = vmmov %vm7057_vm1 }
 0x435   : > { %1979 = vmatprep.mubr.bf16.mxu1 %v7003_v18 }
 0x43c   : > { %4164 = vmatmul.mubr.msk.bf16.gmra.mrb[36].mxu1 %vm7064_vm4, %v4724_v1  ;;  %v2410_v57 = vpop.f32.mrb[72].mxu0  ;;  %v621_v1 = vld [vmem:[%s6893_s2 + $0x20] sm:$0xff]  ;;  %vm7070_vm4 = vmmov %vm7057_vm1 }
 0x43d   : > { %1989 = vmatprep.mubr.bf16.mxu1 %v7003_v18  ;;  %v5488_v58 = vadd.f32 %v2410_v57, %v2365_v14  ;;  %v2412_v59 = vpop.f32.mrb[73].mxu0  ;;  %v624_v57 = vld [vmem:[%s6893_s2 + $0x38] sm:$0xff] }
 0x43e   : > { %v5490_v61 = vadd.f32 %v2412_v59, %v2365_v14  ;;  %v2414_v53 = vpop.f32.mrb[74].mxu0  ;;  %v4728_v14 = vld [vmem:[%s6896_s5 + $0x60] sm:$0xff]   ;;  %v623_v59 = vld [vmem:[%s6893_s2 + $0x30] sm:$0xff] }
 0x43f   : > { %v6954_v3 = vmax.f32 %v5488_v58, 0.0  ;;  %v2415_v7 = vpop.f32.mrb[75].mxu0  ;;  %v626_v53 = vld [vmem:[%s6893_s2 + $0x48] sm:$0xff] }
 0x440   : > { %v6953_v11 = vmax.f32 %v5490_v61, 0.0  ;;  %v625_v7 = vld [vmem:[%s6893_s2 + $0x40] sm:$0xff] }
 0x442   : > { %v4643_v63 = vpack.i.bf16 %v6953_v11, %v6954_v3 }
 0x444   : > { %4165 = vmatmul.mubr.msk.bf16.gmra.mrb[40].mxu1 %vm7065_vm13, %v4725_v9  ;;  %4644 = vrot.lane.b32.xlu0 %v4643_v63, %s4774_s20  ;;  %v4729_v9 = vld [vmem:[%s6896_s5 + $0x68] sm:$0xff]   ;;  %vm7071_vm13 = vmmov %vm7057_vm1 }
 0x445   : > { %4639 = vrot.lane.b32.xlu1 %v4643_v63, %s4775_s21  ;;  %1999 = vmatprep.mubr.bf16.mxu1 %v7003_v18  ;;  %s5704_s21 = scalar_lea.vmem %s6908_s17, %s4493_s4 }
 0x448   : > { %4654 = vrot.lane.b32.xlu0 %v4643_v63, %s7066_s23 }
 0x449   : > { %4649 = vrot.lane.b32.xlu1 %v4643_v63, %s7039_s22 }
 0x44c   : > { %4166 = vmatmul.mubr.msk.bf16.gmra.mrb[44].mxu1 %vm7067_vm12, %v4726_v20  ;;  %4664 = vrot.lane.b32.xlu0 %v4643_v63, %s7040_s27  ;;  %v627_v20 = vld [vmem:[%s6893_s2 + $0x50] sm:$0xff]  ;;  %s7072_s27 = smov 1   ;;  %vm7074_vm12 = vcmp.lt.s32.totalorder %v5133_v16, 32 }
 0x44d   : > { %4659 = vrot.lane.b32.xlu1 %v4643_v63, %s7041_s18  ;;  %2009 = vmatprep.mubr.bf16.mxu1 %v7003_v18  ;;  %v628_v63 = vld [vmem:[%s6893_s2 + $0x58] sm:$0xff]  ;;  %s7073_s18 = smov 127  }
 0x450   : > { %658 = vperm.xlu0 %4516, %v618_v19   ;;  %v630_v19 = vld [vmem:[%s6893_s2 + $0x68] sm:$0xff] }
 0x451   : > { %653 = vperm.xlu1 %4547, %v617_v0   ;;  %v629_v0 = vld [vmem:[%s6893_s2 + $0x60] sm:$0xff] }
 0x454   : > { %4167 = vmatmul.mubr.msk.bf16.gmra.mrb[48].mxu1 %vm7068_vm11, %v4727_v12  ;;  %668 = vperm.xlu0 %4516, %v620_v6   ;;  %v4730_v12 = vld [vmem:[%s6896_s5 + $0x70] sm:$0xff]   ;;  %v632_v6 = vld [vmem:[%s6893_s2 + $0x78] sm:$0xff]  ;;  %vm7075_vm11 = vcmp.lt.s32.totalorder %v5133_v16, 48 }
 0x455   : > { %663 = vperm.xlu1 %4547, %v619_v23   ;;  %2019 = vmatprep.mubr.bf16.mxu1 %v7003_v18  ;;  %v631_v23 = vld [vmem:[%s6893_s2 + $0x70] sm:$0xff] }
 0x458   : > { %678 = vperm.xlu0 %4516, %v622_v56   ;;  %v634_v56 = vld [vmem:[%s6893_s2 + $0x88] sm:$0xff] }
 0x459   : > { %673 = vperm.xlu1 %4547, %v621_v1   ;;  %v633_v1 = vld [vmem:[%s6893_s2 + $0x80] sm:$0xff] }
 0x45c   : > { %4168 = vmatmul.mubr.msk.bf16.gmra.mrb[52].mxu1 %vm7057_vm1, %v4728_v14  ;;  %688 = vperm.xlu0 %4516, %v624_v57   ;;  %v4731_v14 = vld [vmem:[%s6896_s5 + $0x78] sm:$0xff]   ;;  %v2476_v57 = vld [vmem:[%s6903_s12] sm:$0xff]  ;;  %vm7076_vm1 = vmmov %vm7075_vm11 }
 0x45d   : > { %683 = vperm.xlu1 %4547, %v623_v59   ;;  %2029 = vmatprep.mubr.bf16.mxu1 %v7003_v18  ;;  %v5596_v59 = vld [vmem:[%s4895_s0] sm:$0xff] }
 0x460   : > { %698 = vperm.xlu0 %4516, %v626_v53   ;;  %v635_v53 = vld [vmem:[%s6893_s2 + $0x90] sm:$0xff] }
 0x461   : > { %693 = vperm.xlu1 %4547, %v625_v7   ;;  %v637_v7 = vld [vmem:[%s6893_s2 + $0xa0] sm:$0xff] }
 0x464   : > { %4169 = vmatmul.mubr.msk.bf16.gmra.mrb[56].mxu1 %vm7069_vm10, %v4729_v9  ;;  %708 = vperm.xlu0 %4516, %v628_v63   ;;  %v636_v9 = vld [vmem:[%s6893_s2 + $0x98] sm:$0xff]  ;;  %v639_v63 = vld [vmem:[%s6893_s2 + $0xb0] sm:$0xff]  ;;  %vm7077_vm10 = vmmov %vm7074_vm12 }
 0x465   : > { %703 = vperm.xlu1 %4547, %v627_v20   ;;  %2039 = vmatprep.mubr.bf16.mxu1 %v7003_v18  ;;  %v638_v20 = vld [vmem:[%s6893_s2 + $0xa8] sm:$0xff] }
 0x468   : > { %718 = vperm.xlu0 %4516, %v630_v19   ;;  %v640_v19 = vld [vmem:[%s6893_s2 + $0xb8] sm:$0xff] }
 0x469   : > { %713 = vperm.xlu1 %4547, %v629_v0   ;;  %v643_v0 = vld [vmem:[%s6893_s2 + $0xd0] sm:$0xff] }
 0x46c   : > { %4170 = vmatmul.mubr.msk.bf16.gmra.mrb[60].mxu1 %vm7070_vm4, %v4730_v12  ;;  %728 = vperm.xlu0 %4516, %v632_v6   ;;  %v642_v12 = vld [vmem:[%s6893_s2 + $0xc8] sm:$0xff]  ;;  %v645_v6 = vld [vmem:[%s6893_s2 + $0xe0] sm:$0xff]  ;;  %vm7078_vm4 = vcmp.lt.s32.totalorder %v5133_v16, 16 }
 0x46d   : > { %723 = vperm.xlu1 %4547, %v631_v23   ;;  %2049 = vmatprep.mubr.bf16.mxu1 %v7003_v18  ;;  %v644_v23 = vld [vmem:[%s6893_s2 + $0xd8] sm:$0xff] }
 0x470   : > { %738 = vperm.xlu0 %4516, %v634_v56   ;;  %v647_v56 = vld [vmem:[%s6893_s2 + $0xf0] sm:$0xff] }
 0x471   : > { %733 = vperm.xlu1 %4547, %v633_v1   ;;  %v646_v1 = vld [vmem:[%s6893_s2 + $0xe8] sm:$0xff] }
 0x474   : > { %4171 = vmatmul.mubr.msk.bf16.gmra.mrb[64].mxu1 %vm7071_vm13, %v4731_v14  ;;  %3270 = vrot.lane.b32.xlu0 %v5596_v59, %s7072_s27  ;;  %v648_v14 = vld [vmem:[%s6893_s2 + $0xf8] sm:$0xff]  ;;  %vm7079_vm13 = vmmov %vm7078_vm4 }
 0x475   : > { %2479 = vperm.xlu1 %4547, %v2476_v57   ;;  %2523 = vmatprep.mubr.bf16.mxu1 %v7003_v18 }
 0x478   : > { %3283 = vrot.lane.b32.xlu0 %v5596_v59, %s7073_s18 }
 0x479   : > { %3272 = vrot.lane.b32.xlu1 %v4898_v2, %s7072_s27 }
 0x47c   : > { %743 = vperm.xlu0 %4516, %v635_v53  }
 0x47d   : > { %3285 = vrot.lane.b32.xlu1 %v4898_v2, %s7073_s18  ;;  %v641_v2 = vld [vmem:[%s6893_s2 + $0xc0] sm:$0xff] }
 0x480   : > { %753 = vperm.xlu0 %4516, %v637_v7  }
 0x481   : > { %748 = vperm.xlu1 %4547, %v636_v9  }
 0x484   : > { %763 = vperm.xlu0 %4516, %v639_v63  }
 0x485   : > { %758 = vperm.xlu1 %4547, %v638_v20  }
 0x488   : > { %773 = vperm.xlu0 %4516, %v641_v2  }
 0x489   : > { %768 = vperm.xlu1 %4547, %v640_v19  }
 0x48c   : > { %783 = vperm.xlu0 %4516, %v643_v0  }
 0x48d   : > { %778 = vperm.xlu1 %4547, %v642_v12  }
 0x490   : > { %793 = vperm.xlu0 %4516, %v645_v6  }
 0x491   : > { %788 = vperm.xlu1 %4547, %v644_v23  }
 0x494   : > { %803 = vperm.xlu0 %4516, %v647_v56  }
 0x495   : > { %798 = vperm.xlu1 %4547, %v646_v1  }
 0x499   : > { %808 = vperm.xlu1 %4547, %v648_v14  }
 0x4b6   : > { %v4645_v57 = vpop.permute.xlu0 %4644 }
 0x4b7   : > { %v4640_v53 = vpop.permute.xlu1 %4639  ;;  %v4647_v7 = vunpack.i.h.bf16 %v4645_v57  ;;  %v4646_v9 = vunpack.i.l.bf16 %v4645_v57 }
 0x4b8   : > { %v4642_v63 = vunpack.i.h.bf16 %v4640_v53  ;;  %v4641_v20 = vunpack.i.l.bf16 %v4640_v53 }
 0x4b9   : > { %v2432_v2 = vsel %vm7074_vm12, %v4647_v7, %v4646_v9  ;;  %v2431_v12 = vsel %vm7077_vm10, %v4646_v9, %v4647_v7  ;;  %v7080_v7 = vmax.f32 %v5488_v58, 0.0  ;;  %vm7082_vm12 = vcmp.lt.s32.totalorder %v5133_v16, 112 }
 0x4ba   : > { %v2424_v19 = vsel %vm7075_vm11, %v4642_v63, %v4641_v20  ;;  %v2423_v0 = vsel %vm7076_vm1, %v4641_v20, %v4642_v63  ;;  %v4655_v23 = vpop.permute.xlu0 %4654  ;;  %vm7084_vm11 = vcmp.lt.s32.totalorder %v5133_v16, 80  ;;  %vm7085_vm1 = vcmp.lt.s32.totalorder %v5133_v16, 96 }
 0x4bb   : > { %v4268_v6 = vpack.c.bf16 %v2432_v2, %v2424_v19  ;;  %v4650_v56 = vpop.permute.xlu1 %4649  ;;  %v2469_v1 = vpack.c.bf16 %v2431_v12, %v2423_v0  ;;  %v4657_v11 = vunpack.i.h.bf16 %v4655_v23  ;;  %v4656_v53 = vunpack.i.l.bf16 %v4655_v23  ;;  %vm7086_vm10 = vmmov %vm7085_vm1 }
 0x4bc   : > { %v4652_v14 = vunpack.i.h.bf16 %v4650_v56  ;;  %v4651_v57 = vunpack.i.l.bf16 %v4650_v56  ;;  %v7081_v19 = vmax.f32 %v5490_v61, 0.0 }
 0x4bd   : > { %2491 = vmatprep.subr.bf16.mxu1 %v2469_v1  ;;  %v2447_v60 = vsel %vm7082_vm12, %v4656_v53, %v4657_v11 }
 0x4be   : > { %v2440_v3 = vsel %vm7078_vm4, %v4652_v14, %v4651_v57  ;;  %4269 = vmatpush1.bf16.msk.msra.mxu1 %vm5155_vm7, %v4268_v6  ;;  %v2439_v63 = vsel %vm7079_vm13, %v4651_v57, %v4652_v14  ;;  %v4665_v20 = vpop.permute.xlu0 %4664  ;;  %vm7083_vm7 = vmmov %vm7082_vm12  ;;  %vm7088_vm13 = vcmp.lt.s32.totalorder %v5140_v22, 208  ;;  %vm7089_vm12 = vcmask 1043456  }
 0x4bf   : > { %v4271_v9 = vpack.c.bf16 %v7080_v7, %v2440_v3  ;;  %v4660_v2 = vpop.permute.xlu1 %4659  ;;  %v2471_v0 = vpack.c.bf16 %v7081_v19, %v2439_v63  ;;  %v4667_v12 = vunpack.i.h.bf16 %v4665_v20  ;;  %v4666_v23 = vunpack.i.l.bf16 %v4665_v20  ;;  %vm7087_vm4 = vmmov %vm7084_vm11  ;;  %v2467_v7 = vld [vmem:[%s6902_s11] sm:$0xf] }
 0x4c0   : > { %v4662_v56 = vunpack.i.h.bf16 %v4660_v2  ;;  %v4661_v1 = vunpack.i.l.bf16 %v4660_v2  ;;  %v2448_v4 = vsel %vm7083_vm7, %v4657_v11, %v4656_v53  ;;  %vm7090_vm7 = vmmov %vm7089_vm12 }
 0x4c1   : > { %2493 = vmatprep.subr.bf16.mxu1 %v2471_v0  ;;  %v2464_v58 = vsel %vm7084_vm11, %v4667_v12, %v4666_v23  ;;  %v2463_v6 = vsel %vm7087_vm4, %v4666_v23, %v4667_v12  ;;  %vm7103_vm4 = vcmp.lt.s32.totalorder %v5133_v16, 127 }
 0x4c2   : > { %v2455_v3 = vsel %vm7085_vm1, %v4661_v1, %v4662_v56  ;;  %v2456_v61 = vsel %vm7086_vm10, %v4662_v56, %v4661_v1  ;;  %4272 = vmatpush1.bf16.msk.msra.mxu1 %vm5173_vm14, %v4271_v9  ;;  %v2466_v11 = vsel %vm7088_vm13, %v2464_v58, 0.0  ;;  %v2474_v63 = vpack.c.bf16 %v2463_v6, %v2463_v6  ;;  %vm7104_vm13 = vmmov %vm7103_vm4 }
 0x4c3   : > { %v4274_v14 = vpack.c.bf16 %v2456_v61, %v2448_v4  ;;  %v2472_v57 = vpack.c.bf16 %v2455_v3, %v2447_v60  ;;  %v2475_v53 = vpack.c.bf16 %v2466_v11, %v2466_v11  ;;  %vm7091_vm14 = vcmask 457728  }
 0x4c4   : > { %v2486_v5 = vsel %vm7090_vm7, %v2474_v63, 0  ;;  %vm7099_vm1 = vcmp.ge.s32.totalorder %v5233_v13, 1  ;;  %vm7100_vm10 = vcmp.ge.s32.totalorder %v5230_v17, 1  ;;  %vm7106_vm7 = vcmp.lt.s32.totalorder %v5230_v17, 15 }
 0x4c5   : > { %4275 = vmatprep.subr.msk.bf16.mxu1 %vm5193_vm5, %v4274_v14  ;;  %vm7097_vm5 = vcmp.lt.s32.totalorder %v5133_v16, 1 }
 0x4c6   : > { %2496 = vmatpush1.bf16.msra.mxu1 %v2472_v57  ;;  %vm7098_vm11 = vmmov %vm7097_vm5 }
 0x4c7   : > { %4276 = vmatprep.subr.msk.bf16.mxu1 %vm7089_vm12, %v2475_v53  ;;  %vm7105_vm12 = vcmp.lt.s32.totalorder %v5233_v13, 15 }
 0x4ca   : > { %2498 = vmatpush1.bf16.msra.mxu1 %v2486_v5 }
 0x4cd   : > { %4277 = vmatmul.mubr.msk.bf16.vlgmr.msra.gmra.mrb[68].mxu1 %vm7091_vm14, %v2467_v7  ;;  %vm7168_vm14 = vcmp.lt.s32.totalorder %v5133_v16, 16 }
 0x4ce   : > { %3721 = vmatprep.mubr.bf16.mxu1 %v7003_v18 }
 0x4cf   : > { %v5693_v60 = vpop.f32.mrb[4].mxu1  ;;  %v659_v21 = vpop.permute.xlu0 %658 }
 0x4d0   : > { %v654_v9 = vpop.permute.xlu1 %653  ;;  %v1004_v20 = vadd.f32 %v4996_v26, %v659_v21  ;;  %v1006_v2 = vadd.f32 %v4998_v27, %v659_v21  ;;  %v5699_v12 = vpop.f32.mrb[5].mxu1 }
 0x4d1   : > { %v1000_v19 = vadd.f32 %v4992_v24, %v654_v9  ;;  %v1002_v0 = vadd.f32 %v4994_v25, %v654_v9  ;;  %v5706_v23 = vpop.f32.mrb[6].mxu1 }
 0x4d2   : > { %v1170_v26 = vmax.f32 %v1004_v20, 0.0  ;;  %v1171_v56 = vmax.f32 %v1006_v2, 0.0  ;;  %v5708_v24 = vpop.f32.mrb[7].mxu1 }
 0x4d3   : > { %v1168_v27 = vmax.f32 %v1000_v19, 0.0  ;;  %v1169_v1 = vmax.f32 %v1002_v0, 0.0  ;;  %v669_v25 = vpop.permute.xlu0 %668 }
 0x4d4   : > { %v664_v4 = vpop.permute.xlu1 %663  ;;  %1238 = vst [vmem:[%s5704_s21 + $0x10] sm:$0xff] %v1170_v26  ;;  %1239 = vst [vmem:[%s5704_s21 + $0x18] sm:$0xff] %v1171_v56  ;;  %v1014_v58 = vadd.f32 %v5004_v30, %v669_v25  ;;  %v1016_v3 = vadd.f32 %v5006_v31, %v669_v25 }
 0x4d5   : > { %1236 = vst [vmem:[%s5704_s21] sm:$0xff] %v1168_v27  ;;  %1237 = vst [vmem:[%s5704_s21 + $0x8] sm:$0xff] %v1169_v1  ;;  %v1010_v61 = vadd.f32 %v5000_v28, %v664_v4  ;;  %v1012_v6 = vadd.f32 %v5002_v29, %v664_v4 }
 0x4d6   : > { %v1174_v14 = vmax.f32 %v1014_v58, 0.0  ;;  %v1175_v57 = vmax.f32 %v1016_v3, 0.0 }
 0x4d7   : > { %v1172_v11 = vmax.f32 %v1010_v61, 0.0  ;;  %v1173_v53 = vmax.f32 %v1012_v6, 0.0  ;;  %v5718_v63 = vpop.f32.mrb[8].mxu1  ;;  %v679_v5 = vpop.permute.xlu0 %678 }
 0x4d8   : > { %v674_v7 = vpop.permute.xlu1 %673  ;;  %1242 = vst [vmem:[%s5704_s21 + $0x30] sm:$0xff] %v1174_v14  ;;  %1243 = vst [vmem:[%s5704_s21 + $0x38] sm:$0xff] %v1175_v57  ;;  %v1024_v30 = vadd.f32 %v5012_v34, %v679_v5  ;;  %v1026_v28 = vadd.f32 %v5014_v35, %v679_v5  ;;  %v5728_v21 = vpop.f32.mrb[9].mxu1 }
 0x4d9   : > { %1240 = vst [vmem:[%s5704_s21 + $0x20] sm:$0xff] %v1172_v11  ;;  %1241 = vst [vmem:[%s5704_s21 + $0x28] sm:$0xff] %v1173_v53  ;;  %v1020_v29 = vadd.f32 %v5008_v32, %v674_v7  ;;  %v1022_v31 = vadd.f32 %v5010_v33, %v674_v7  ;;  %v5730_v9 = vpop.f32.mrb[10].mxu1 }
 0x4da   : > { %v1178_v20 = vmax.f32 %v1024_v30, 0.0  ;;  %v1179_v2 = vmax.f32 %v1026_v28, 0.0  ;;  %v5732_v26 = vpop.f32.mrb[11].mxu1 }
 0x4db   : > { %v1176_v19 = vmax.f32 %v1020_v29, 0.0  ;;  %v1177_v0 = vmax.f32 %v1022_v31, 0.0  ;;  %v689_v56 = vpop.permute.xlu0 %688 }
 0x4dc   : > { %v684_v27 = vpop.permute.xlu1 %683  ;;  %1246 = vst [vmem:[%s5704_s21 + $0x50] sm:$0xff] %v1178_v20  ;;  %1247 = vst [vmem:[%s5704_s21 + $0x58] sm:$0xff] %v1179_v2  ;;  %v1034_v32 = vadd.f32 %v5020_v38, %v689_v56  ;;  %v1036_v33 = vadd.f32 %v5022_v39, %v689_v56 }
 0x4dd   : > { %1244 = vst [vmem:[%s5704_s21 + $0x40] sm:$0xff] %v1176_v19  ;;  %1245 = vst [vmem:[%s5704_s21 + $0x48] sm:$0xff] %v1177_v0  ;;  %v1030_v34 = vadd.f32 %v5016_v36, %v684_v27  ;;  %v1032_v35 = vadd.f32 %v5018_v37, %v684_v27 }
 0x4de   : > { %v1182_v1 = vmax.f32 %v1034_v32, 0.0  ;;  %v1183_v25 = vmax.f32 %v1036_v33, 0.0 }
 0x4df   : > { %v1180_v4 = vmax.f32 %v1030_v34, 0.0  ;;  %v1181_v58 = vmax.f32 %v1032_v35, 0.0  ;;  %v5742_v3 = vpop.f32.mrb[12].mxu1  ;;  %v699_v61 = vpop.permute.xlu0 %698 }
 0x4e0   : > { %v694_v6 = vpop.permute.xlu1 %693  ;;  %1250 = vst [vmem:[%s5704_s21 + $0x70] sm:$0xff] %v1182_v1  ;;  %1251 = vst [vmem:[%s5704_s21 + $0x78] sm:$0xff] %v1183_v25  ;;  %v1044_v38 = vadd.f32 %v5028_v42, %v699_v61  ;;  %v1046_v36 = vadd.f32 %v5030_v43, %v699_v61  ;;  %v5752_v14 = vpop.f32.mrb[13].mxu1 }
 0x4e1   : > { %1248 = vst [vmem:[%s5704_s21 + $0x60] sm:$0xff] %v1180_v4  ;;  %1249 = vst [vmem:[%s5704_s21 + $0x68] sm:$0xff] %v1181_v58  ;;  %v1040_v37 = vadd.f32 %v5024_v40, %v694_v6  ;;  %v1042_v39 = vadd.f32 %v5026_v41, %v694_v6  ;;  %v5754_v57 = vpop.f32.mrb[14].mxu1 }
 0x4e2   : > { %v1186_v11 = vmax.f32 %v1044_v38, 0.0  ;;  %v1187_v53 = vmax.f32 %v1046_v36, 0.0  ;;  %v5756_v30 = vpop.f32.mrb[15].mxu1 }
 0x4e3   : > { %v1184_v5 = vmax.f32 %v1040_v37, 0.0  ;;  %v1185_v7 = vmax.f32 %v1042_v39, 0.0  ;;  %v709_v28 = vpop.permute.xlu0 %708 }
 0x4e4   : > { %v704_v29 = vpop.permute.xlu1 %703  ;;  %1254 = vst [vmem:[%s5704_s21 + $0x90] sm:$0xff] %v1186_v11  ;;  %1255 = vst [vmem:[%s5704_s21 + $0x98] sm:$0xff] %v1187_v53  ;;  %v1054_v40 = vadd.f32 %v5036_v46, %v709_v28  ;;  %v1056_v41 = vadd.f32 %v5038_v47, %v709_v28  ;;  %v7095_v28 = vld [vmem:[#allocation3_spill] sm:$0xff] }
 0x4e5   : > { %1252 = vst [vmem:[%s5704_s21 + $0x80] sm:$0xff] %v1184_v5  ;;  %1253 = vst [vmem:[%s5704_s21 + $0x88] sm:$0xff] %v1185_v7  ;;  %v1050_v42 = vadd.f32 %v5032_v44, %v704_v29  ;;  %v1052_v43 = vadd.f32 %v5034_v45, %v704_v29 }
 0x4e6   : > { %v1190_v31 = vmax.f32 %v1054_v40, 0.0  ;;  %v1191_v20 = vmax.f32 %v1056_v41, 0.0  ;;  %v7096_v40 = vld [vmem:[#allocation4_spill] sm:$0xff] }
 0x4e7   : > { %v1188_v2 = vmax.f32 %v1050_v42, 0.0  ;;  %v1189_v19 = vmax.f32 %v1052_v43, 0.0  ;;  %v5766_v0 = vpop.f32.mrb[16].mxu1  ;;  %v719_v56 = vpop.permute.xlu0 %718 }
 0x4e8   : > { %v714_v27 = vpop.permute.xlu1 %713  ;;  %1258 = vst [vmem:[%s5704_s21 + $0xb0] sm:$0xff] %v1190_v31  ;;  %1259 = vst [vmem:[%s5704_s21 + $0xb8] sm:$0xff] %v1191_v20  ;;  %v1064_v46 = vadd.f32 %v5044_v50, %v719_v56  ;;  %v1066_v44 = vadd.f32 %v5046_v51, %v719_v56  ;;  %v5776_v32 = vpop.f32.mrb[17].mxu1  ;;  %v7092_v51 = vld [vmem:[#allocation2_spill] sm:$0xff] }
 0x4e9   : > { %1256 = vst [vmem:[%s5704_s21 + $0xa0] sm:$0xff] %v1188_v2  ;;  %1257 = vst [vmem:[%s5704_s21 + $0xa8] sm:$0xff] %v1189_v19  ;;  %v1060_v45 = vadd.f32 %v5040_v48, %v714_v27  ;;  %v1062_v47 = vadd.f32 %v5042_v49, %v714_v27  ;;  %v5778_v33 = vpop.f32.mrb[18].mxu1 }
 0x4ea   : > { %v1194_v34 = vmax.f32 %v1064_v46, 0.0  ;;  %v1195_v35 = vmax.f32 %v1066_v44, 0.0  ;;  %v5780_v4 = vpop.f32.mrb[19].mxu1 }
 0x4eb   : > { %v1192_v1 = vmax.f32 %v1060_v45, 0.0  ;;  %v1193_v25 = vmax.f32 %v1062_v47, 0.0  ;;  %v729_v58 = vpop.permute.xlu0 %728 }
 0x4ec   : > { %v724_v61 = vpop.permute.xlu1 %723  ;;  %1262 = vst [vmem:[%s5704_s21 + $0xd0] sm:$0xff] %v1194_v34  ;;  %1263 = vst [vmem:[%s5704_s21 + $0xd8] sm:$0xff] %v1195_v35  ;;  %v1074_v48 = vadd.f32 %v5052_v54, %v729_v58  ;;  %v1076_v49 = vadd.f32 %v5054_v55, %v729_v58  ;;  %v7093_v54 = vld [vmem:[#allocation5_spill] sm:$0xff] }
 0x4ed   : > { %1260 = vst [vmem:[%s5704_s21 + $0xc0] sm:$0xff] %v1192_v1  ;;  %1261 = vst [vmem:[%s5704_s21 + $0xc8] sm:$0xff] %v1193_v25  ;;  %v1070_v50 = vadd.f32 %v5048_v52, %v724_v61  ;;  %v1072_v6 = vadd.f32 %v7092_v51, %v724_v61  ;;  %v7094_v52 = vld [vmem:[#allocation6_spill] sm:$0xff] }
 0x4ee   : > { %v1198_v38 = vmax.f32 %v1074_v48, 0.0  ;;  %v1199_v36 = vmax.f32 %v1076_v49, 0.0 }
 0x4ef   : > { %v1196_v37 = vmax.f32 %v1070_v50, 0.0  ;;  %v1197_v39 = vmax.f32 %v1072_v6, 0.0  ;;  %v5790_v11 = vpop.f32.mrb[20].mxu1  ;;  %v739_v53 = vpop.permute.xlu0 %738  ;;  %v7101_v6 = vld [vmem:[#allocation7_spill] sm:$0xff] }
 0x4f0   : > { %v734_v5 = vpop.permute.xlu1 %733  ;;  %1266 = vst [vmem:[%s5704_s21 + $0xf0] sm:$0xff] %v1198_v38  ;;  %1267 = vst [vmem:[%s5704_s21 + $0xf8] sm:$0xff] %v1199_v36  ;;  %v1084_v55 = vadd.f32 %v7093_v54, %v739_v53  ;;  %v1086_v7 = vadd.f32 %v7094_v52, %v739_v53  ;;  %v5800_v42 = vpop.f32.mrb[21].mxu1  ;;  %v7102_v36 = vld [vmem:[#allocation8_spill] sm:$0xff] }
 0x4f1   : > { %1264 = vst [vmem:[%s5704_s21 + $0xe0] sm:$0xff] %v1196_v37  ;;  %1265 = vst [vmem:[%s5704_s21 + $0xe8] sm:$0xff] %v1197_v39  ;;  %v1080_v29 = vadd.f32 %v7095_v28, %v734_v5  ;;  %v1082_v41 = vadd.f32 %v7096_v40, %v734_v5  ;;  %v5802_v43 = vpop.f32.mrb[22].mxu1 }
 0x4f2   : > { %v1202_v31 = vmax.f32 %v1084_v55, 0.0  ;;  %v1203_v20 = vmax.f32 %v1086_v7, 0.0  ;;  %v5804_v56 = vpop.f32.mrb[23].mxu1 }
 0x4f3   : > { %v1200_v2 = vmax.f32 %v1080_v29, 0.0  ;;  %v1201_v19 = vmax.f32 %v1082_v41, 0.0  ;;  %v3271_v27 = vpop.permute.xlu0 %3270 }
 0x4f4   : > { %v5806_v46 = vpop.permute.xlu1 %2479  ;;  %1270 = vst [vmem:[%s5704_s21 + $0x110] sm:$0xff] %v1202_v31  ;;  %1271 = vst [vmem:[%s5704_s21 + $0x118] sm:$0xff] %v1203_v20  ;;  %v7107_v31 = vld [vmem:[#allocation11_spill] sm:$0xff]  ;;  %v7108_v20 = vld [vmem:[#allocation12_spill] sm:$0xff] }
 0x4f5   : > { %1268 = vst [vmem:[%s5704_s21 + $0x100] sm:$0xff] %v1200_v2  ;;  %1269 = vst [vmem:[%s5704_s21 + $0x108] sm:$0xff] %v1201_v19  ;;  %v7109_v19 = vld [vmem:[#allocation9_spill] sm:$0xff] }
 0x4f7   : > { %v5812_v44 = vpop.f32.mrb[24].mxu1  ;;  %v3284_v45 = vpop.permute.xlu0 %3283 }
 0x4f8   : > { %v3273_v47 = vpop.permute.xlu1 %3272  ;;  %v5818_v1 = vpop.f32.mrb[25].mxu1 }
 0x4f9   : > { %v3274_v34 = vsel %vm7097_vm5, %v3271_v27, %v3273_v47  ;;  %v3275_v35 = vsel %vm7098_vm11, %v3273_v47, %v3271_v27  ;;  %v5824_v61 = vpop.f32.mrb[26].mxu1  ;;  %vm7169_vm5 = vmmov %vm7168_vm14  ;;  %vm7170_vm11 = vcmp.ge.s32.totalorder %v5133_v16, 16 }
 0x4fa   : > { %v3276_v25 = vsel %vm7099_vm1, %v3275_v35, 0.0  ;;  %v3277_v58 = vsel %vm7100_vm10, %v3274_v34, 0.0  ;;  %v5826_v49 = vpop.f32.mrb[27].mxu1  ;;  %vm7171_vm1 = vcmp.lt.s32.totalorder %v5133_v16, 2 }
 0x4fb   : > { %v3280_v48 = vcombine.low %v3276_v25, %v3277_v58  ;;  %v744_v50 = vpop.permute.xlu0 %743  ;;  %vm7172_vm10 = vmmov %vm7171_vm1 }
 0x4fc   : > { %v3286_v51 = vpop.permute.xlu1 %3285  ;;  %v1090_v38 = vadd.f32 %v7101_v6, %v744_v50  ;;  %v1092_v37 = vadd.f32 %v7102_v36, %v744_v50 }
 0x4fd   : > { %v3287_v39 = vsel %vm7103_vm4, %v3284_v45, %v3286_v51  ;;  %v3282_v53 = vadd.f32 %v5596_v59, %v3280_v48  ;;  %v3288_v5 = vsel %vm7104_vm13, %v3286_v51, %v3284_v45  ;;  %v7110_v45 = vld [vmem:[#allocation10_spill] sm:$0xff]  ;;  %vm7173_vm4 = vcmp.lt.s32.totalorder %v5133_v16, 3 }
 0x4fe   : > { %v3289_v54 = vsel %vm7105_vm12, %v3287_v39, 0.0  ;;  %v1204_v55 = vmax.f32 %v1090_v38, 0.0  ;;  %v1205_v52 = vmax.f32 %v1092_v37, 0.0  ;;  %v3290_v7 = vsel %vm7106_vm7, %v3288_v5, 0.0  ;;  %v7111_v39 = vld [vmem:[#allocation15_spill] sm:$0xff]  ;;  %v7112_v5 = vld [vmem:[#allocation16_spill] sm:$0xff]  ;;  %vm7174_vm13 = vmmov %vm7173_vm4 }
 0x4ff   : > { %v5839_v28 = vpop.f32.mrb[28].mxu1  ;;  %v3293_v29 = vcombine.low %v3289_v54, %v3290_v7  ;;  %v754_v40 = vpop.permute.xlu0 %753  ;;  %v7114_v7 = vld [vmem:[#allocation14_spill] sm:$0xff]  ;;  %vm7175_vm12 = vcmp.lt.s32.totalorder %v5133_v16, 112 }
 0x500   : > { %v749_v41 = vpop.permute.xlu1 %748  ;;  %1272 = vst [vmem:[%s5704_s21 + $0x120] sm:$0xff] %v1204_v55  ;;  %1273 = vst [vmem:[%s5704_s21 + $0x128] sm:$0xff] %v1205_v52  ;;  %v1100_v59 = vadd.f32 %v7107_v31, %v754_v40  ;;  %v1102_v2 = vadd.f32 %v7108_v20, %v754_v40  ;;  %v5847_v34 = vpop.f32.mrb[29].mxu1  ;;  %v7113_v55 = vld [vmem:[#allocation13_spill] sm:$0xff] }
 0x501   : > { %v1094_v27 = vadd.f32 %v7109_v19, %v749_v41  ;;  %v1096_v47 = vadd.f32 %v7110_v45, %v749_v41  ;;  %v5849_v35 = vpop.f32.mrb[30].mxu1  ;;  %v5851_v25 = vadd.f32 %v3293_v29, %v3282_v53  ;;  %vm7176_vm7 = vmmov %vm7175_vm12 }
 0x502   : > { %v1208_v58 = vmax.f32 %v1100_v59, 0.0  ;;  %v1209_v48 = vmax.f32 %v1102_v2, 0.0  ;;  %v5853_v6 = vpop.f32.mrb[31].mxu1 }
 0x503   : > { %v1206_v50 = vmax.f32 %v1094_v27, 0.0  ;;  %v1207_v51 = vmax.f32 %v1096_v47, 0.0  ;;  %v764_v38 = vpop.permute.xlu0 %763  ;;  %3299 = vrot.lane.b32.xlu0 %v5851_v25, %s7039_s22  ;;  %v5859_v37 = vcombine.high %v5851_v25, %v5851_v25  ;;  %v7115_v27 = vld [vmem:[#allocation19_spill] sm:$0xff]  ;;  %v7116_v47 = vld [vmem:[#allocation20_spill] sm:$0xff] }
 0x504   : > { %v759_v36 = vpop.permute.xlu1 %758  ;;  %1276 = vst [vmem:[%s5704_s21 + $0x140] sm:$0xff] %v1208_v58  ;;  %1277 = vst [vmem:[%s5704_s21 + $0x148] sm:$0xff] %v1209_v48  ;;  %v1110_v53 = vadd.f32 %v7111_v39, %v764_v38  ;;  %v1112_v54 = vadd.f32 %v7112_v5, %v764_v38  ;;  %v7117_v48 = vld [vmem:[#allocation17_spill] sm:$0xff] }
 0x505   : > { %1274 = vst [vmem:[%s5704_s21 + $0x130] sm:$0xff] %v1206_v50  ;;  %1275 = vst [vmem:[%s5704_s21 + $0x138] sm:$0xff] %v1207_v51  ;;  %v1104_v52 = vadd.f32 %v7113_v55, %v759_v36  ;;  %v1106_v29 = vadd.f32 %v7114_v7, %v759_v36  ;;  %3301 = vrot.lane.b32.xlu1 %v5859_v37, %s7039_s22  ;;  %v7118_v51 = vld [vmem:[#allocation18_spill] sm:$0xff]  ;;  %s7165_s22 = smov 3  }
 0x506   : > { %v1212_v40 = vmax.f32 %v1110_v53, 0.0  ;;  %v1213_v41 = vmax.f32 %v1112_v54, 0.0 }
 0x507   : > { %v1210_v31 = vmax.f32 %v1104_v52, 0.0  ;;  %v1211_v59 = vmax.f32 %v1106_v29, 0.0  ;;  %v5871_v20 = vpop.f32.mrb[32].mxu1  ;;  %v774_v2 = vpop.permute.xlu0 %773  ;;  %3312 = vrot.lane.b32.xlu0 %v5851_v25, %s7066_s23 }
 0x508   : > { %v769_v19 = vpop.permute.xlu1 %768  ;;  %1280 = vst [vmem:[%s5704_s21 + $0x160] sm:$0xff] %v1212_v40  ;;  %1281 = vst [vmem:[%s5704_s21 + $0x168] sm:$0xff] %v1213_v41  ;;  %v1120_v45 = vadd.f32 %v7115_v27, %v774_v2  ;;  %v1122_v58 = vadd.f32 %v7116_v47, %v774_v2  ;;  %v5883_v36 = vpop.f32.mrb[33].mxu1  ;;  %v7119_v40 = vld [vmem:[#allocation23_spill] sm:$0xff]  ;;  %v7121_v2 = vld [vmem:[#allocation21_spill] sm:$0xff] }
 0x509   : > { %1278 = vst [vmem:[%s5704_s21 + $0x150] sm:$0xff] %v1210_v31  ;;  %1279 = vst [vmem:[%s5704_s21 + $0x158] sm:$0xff] %v1211_v59  ;;  %v1114_v50 = vadd.f32 %v7117_v48, %v769_v19  ;;  %v1116_v38 = vadd.f32 %v7118_v51, %v769_v19  ;;  %v5885_v39 = vpop.f32.mrb[34].mxu1  ;;  %v7120_v31 = vld [vmem:[#allocation24_spill] sm:$0xff]  ;;  %v7122_v27 = vld [vmem:[#allocation22_spill] sm:$0xff] }
 0x50a   : > { %v1216_v53 = vmax.f32 %v1120_v45, 0.0  ;;  %v1217_v5 = vmax.f32 %v1122_v58, 0.0  ;;  %v5887_v52 = vpop.f32.mrb[35].mxu1 }
 0x50b   : > { %v1214_v54 = vmax.f32 %v1114_v50, 0.0  ;;  %v1215_v55 = vmax.f32 %v1116_v38, 0.0  ;;  %v784_v7 = vpop.permute.xlu0 %783 }
 0x50c   : > { %v779_v29 = vpop.permute.xlu1 %778  ;;  %1284 = vst [vmem:[%s5704_s21 + $0x180] sm:$0xff] %v1216_v53  ;;  %1285 = vst [vmem:[%s5704_s21 + $0x188] sm:$0xff] %v1217_v5  ;;  %v1130_v41 = vadd.f32 %v7119_v40, %v784_v7  ;;  %v1132_v59 = vadd.f32 %v7120_v31, %v784_v7  ;;  %v7123_v5 = vld [vmem:[#allocation27_spill] sm:$0xff] }
 0x50d   : > { %1282 = vst [vmem:[%s5704_s21 + $0x170] sm:$0xff] %v1214_v54  ;;  %1283 = vst [vmem:[%s5704_s21 + $0x178] sm:$0xff] %v1215_v55  ;;  %v1124_v19 = vadd.f32 %v7121_v2, %v779_v29  ;;  %v1126_v45 = vadd.f32 %v7122_v27, %v779_v29  ;;  %v7124_v55 = vld [vmem:[#allocation28_spill] sm:$0xff]  ;;  %v7125_v29 = vld [vmem:[#allocation25_spill] sm:$0xff] }
 0x50e   : > { %v1220_v47 = vmax.f32 %v1130_v41, 0.0  ;;  %v1221_v58 = vmax.f32 %v1132_v59, 0.0  ;;  %v7126_v41 = vld [vmem:[#allocation26_spill] sm:$0xff] }
 0x50f   : > { %v1218_v48 = vmax.f32 %v1124_v19, 0.0  ;;  %v1219_v50 = vmax.f32 %v1126_v45, 0.0  ;;  %v5897_v51 = vpop.f32.mrb[36].mxu1  ;;  %v794_v38 = vpop.permute.xlu0 %793 }
 0x510   : > { %v789_v53 = vpop.permute.xlu1 %788  ;;  %1288 = vst [vmem:[%s5704_s21 + $0x1a0] sm:$0xff] %v1220_v47  ;;  %1289 = vst [vmem:[%s5704_s21 + $0x1a8] sm:$0xff] %v1221_v58  ;;  %v1140_v54 = vadd.f32 %v7123_v5, %v794_v38  ;;  %v1142_v7 = vadd.f32 %v7124_v55, %v794_v38  ;;  %v5907_v59 = vpop.f32.mrb[37].mxu1  ;;  %v7130_v38 = vld [vmem:[#allocation31_spill] sm:$0xff]  ;;  %v7131_v5 = vld [vmem:[#allocation32_spill] sm:$0xff] }
 0x511   : > { %1286 = vst [vmem:[%s5704_s21 + $0x190] sm:$0xff] %v1218_v48  ;;  %1287 = vst [vmem:[%s5704_s21 + $0x198] sm:$0xff] %v1219_v50  ;;  %v1134_v40 = vadd.f32 %v7125_v29, %v789_v53  ;;  %v1136_v31 = vadd.f32 %v7126_v41, %v789_v53  ;;  %v5909_v2 = vpop.f32.mrb[38].mxu1  ;;  %v7133_v29 = vld [vmem:[#allocation30_spill] sm:$0xff] }
 0x512   : > { %7127 = vst [vmem:[#allocation2_spill] sm:$0xff] %v5907_v59  ;;  %7128 = vst [vmem:[#allocation5_spill] sm:$0xff] %v5909_v2  ;;  %v1224_v19 = vmax.f32 %v1140_v54, 0.0  ;;  %v1225_v27 = vmax.f32 %v1142_v7, 0.0  ;;  %v5911_v58 = vpop.f32.mrb[39].mxu1  ;;  %v7132_v54 = vld [vmem:[#allocation29_spill] sm:$0xff] }
 0x513   : > { %v1222_v45 = vmax.f32 %v1134_v40, 0.0  ;;  %v1223_v47 = vmax.f32 %v1136_v31, 0.0  ;;  %7129 = vst [vmem:[#allocation6_spill] sm:$0xff] %v5911_v58  ;;  %v804_v48 = vpop.permute.xlu0 %803 }
 0x514   : > { %v799_v50 = vpop.permute.xlu1 %798  ;;  %1292 = vst [vmem:[%s5704_s21 + $0x1c0] sm:$0xff] %v1224_v19  ;;  %1293 = vst [vmem:[%s5704_s21 + $0x1c8] sm:$0xff] %v1225_v27  ;;  %v1150_v53 = vadd.f32 %v7130_v38, %v804_v48  ;;  %v1152_v55 = vadd.f32 %v7131_v5, %v804_v48  ;;  %v7137_v38 = vld [vmem:[#allocation34_spill] sm:$0xff] }
 0x515   : > { %1290 = vst [vmem:[%s5704_s21 + $0x1b0] sm:$0xff] %v1222_v45  ;;  %1291 = vst [vmem:[%s5704_s21 + $0x1b8] sm:$0xff] %v1223_v47  ;;  %v1144_v7 = vadd.f32 %v7132_v54, %v799_v50  ;;  %v1146_v40 = vadd.f32 %v7133_v29, %v799_v50  ;;  %v7136_v47 = vld [vmem:[#allocation33_spill] sm:$0xff] }
 0x516   : > { %v1228_v41 = vmax.f32 %v1150_v53, 0.0  ;;  %v1229_v31 = vmax.f32 %v1152_v55, 0.0 }
 0x517   : > { %v1226_v58 = vmax.f32 %v1144_v7, 0.0  ;;  %v1227_v19 = vmax.f32 %v1146_v40, 0.0  ;;  %v5921_v2 = vpop.f32.mrb[40].mxu1 }
 0x518   : > { %7134 = vst [vmem:[#allocation3_spill] sm:$0xff] %v5921_v2  ;;  %v809_v27 = vpop.permute.xlu1 %808  ;;  %v5923_v45 = vpop.f32.mrb[41].mxu1  ;;  %1296 = vst [vmem:[%s5704_s21 + $0x1e0] sm:$0xff] %v1228_v41 }
 0x519   : > { %7135 = vst [vmem:[#allocation4_spill] sm:$0xff] %v5923_v45  ;;  %1297 = vst [vmem:[%s5704_s21 + $0x1e8] sm:$0xff] %v1229_v31  ;;  %v1154_v48 = vadd.f32 %v7136_v47, %v809_v27  ;;  %v1156_v5 = vadd.f32 %v7137_v38, %v809_v27  ;;  %v5931_v50 = vpop.f32.mrb[42].mxu1 }
 0x51a   : > { %1294 = vst [vmem:[%s5704_s21 + $0x1d0] sm:$0xff] %v1226_v58  ;;  %1295 = vst [vmem:[%s5704_s21 + $0x1d8] sm:$0xff] %v1227_v19  ;;  %v5933_v53 = vpop.f32.mrb[43].mxu1 }
 0x51b   : > { %7138 = vst [vmem:[#allocation7_spill] sm:$0xff] %v5931_v50  ;;  %7139 = vst [vmem:[#allocation8_spill] sm:$0xff] %v5933_v53  ;;  %v1230_v55 = vmax.f32 %v1154_v48, 0.0  ;;  %v1231_v54 = vmax.f32 %v1156_v5, 0.0 }
 0x51d   : > { %1298 = vst [vmem:[%s5704_s21 + $0x1f0] sm:$0xff] %v1230_v55  ;;  %1299 = vst [vmem:[%s5704_s21 + $0x1f8] sm:$0xff] %v1231_v54 }
 0x51f   : > { %v5937_v7 = vpop.f32.mrb[44].mxu1 }
 0x520   : > { %7140 = vst [vmem:[#allocation11_spill] sm:$0xff] %v5937_v7  ;;  %v5939_v29 = vpop.f32.mrb[45].mxu1 }
 0x521   : > { %7141 = vst [vmem:[#allocation12_spill] sm:$0xff] %v5939_v29  ;;  %v5941_v40 = vpop.f32.mrb[46].mxu1 }
 0x522   : > { %7142 = vst [vmem:[#allocation9_spill] sm:$0xff] %v5941_v40  ;;  %v5943_v58 = vpop.f32.mrb[47].mxu1 }
 0x523   : > { %7143 = vst [vmem:[#allocation10_spill] sm:$0xff] %v5943_v58 }
 0x527   : > { %v5945_v41 = vpop.f32.mrb[48].mxu1 }
 0x528   : > { %7144 = vst [vmem:[#allocation15_spill] sm:$0xff] %v5945_v41  ;;  %v5947_v31 = vpop.f32.mrb[49].mxu1 }
 0x529   : > { %7145 = vst [vmem:[#allocation16_spill] sm:$0xff] %v5947_v31  ;;  %v5949_v19 = vpop.f32.mrb[50].mxu1 }
 0x52a   : > { %7146 = vst [vmem:[#allocation13_spill] sm:$0xff] %v5949_v19  ;;  %v5951_v27 = vpop.f32.mrb[51].mxu1 }
 0x52b   : > { %7147 = vst [vmem:[#allocation14_spill] sm:$0xff] %v5951_v27 }
 0x52f   : > { %v5953_v47 = vpop.f32.mrb[52].mxu1 }
 0x530   : > { %7148 = vst [vmem:[#allocation19_spill] sm:$0xff] %v5953_v47  ;;  %v5955_v48 = vpop.f32.mrb[53].mxu1 }
 0x531   : > { %7149 = vst [vmem:[#allocation20_spill] sm:$0xff] %v5955_v48  ;;  %v5957_v38 = vpop.f32.mrb[54].mxu1 }
 0x532   : > { %7150 = vst [vmem:[#allocation17_spill] sm:$0xff] %v5957_v38  ;;  %v5959_v5 = vpop.f32.mrb[55].mxu1 }
 0x533   : > { %7151 = vst [vmem:[#allocation18_spill] sm:$0xff] %v5959_v5 }
 0x537   : > { %v5961_v55 = vpop.f32.mrb[56].mxu1 }
 0x538   : > { %7152 = vst [vmem:[#allocation23_spill] sm:$0xff] %v5961_v55  ;;  %v5963_v54 = vpop.f32.mrb[57].mxu1 }
 0x539   : > { %7153 = vst [vmem:[#allocation24_spill] sm:$0xff] %v5963_v54  ;;  %v5965_v58 = vpop.f32.mrb[58].mxu1 }
 0x53a   : > { %7154 = vst [vmem:[#allocation21_spill] sm:$0xff] %v5965_v58  ;;  %v5967_v41 = vpop.f32.mrb[59].mxu1 }
 0x53b   : > { %7155 = vst [vmem:[#allocation22_spill] sm:$0xff] %v5967_v41 }
 0x53f   : > { %v5969_v31 = vpop.f32.mrb[60].mxu1 }
 0x540   : > { %7156 = vst [vmem:[#allocation27_spill] sm:$0xff] %v5969_v31  ;;  %v5971_v19 = vpop.f32.mrb[61].mxu1 }
 0x541   : > { %7157 = vst [vmem:[#allocation28_spill] sm:$0xff] %v5971_v19  ;;  %v5973_v27 = vpop.f32.mrb[62].mxu1 }
 0x542   : > { %7158 = vst [vmem:[#allocation25_spill] sm:$0xff] %v5973_v27  ;;  %v5975_v47 = vpop.f32.mrb[63].mxu1 }
 0x543   : > { %7159 = vst [vmem:[#allocation26_spill] sm:$0xff] %v5975_v47 }
 0x547   : > { %v5977_v48 = vpop.f32.mrb[64].mxu1 }
 0x548   : > { %7160 = vst [vmem:[#allocation31_spill] sm:$0xff] %v5977_v48  ;;  %v5979_v38 = vpop.f32.mrb[65].mxu1 }
 0x549   : > { %7161 = vst [vmem:[#allocation32_spill] sm:$0xff] %v5979_v38  ;;  %v5981_v5 = vpop.f32.mrb[66].mxu1 }
 0x54a   : > { %7162 = vst [vmem:[#allocation29_spill] sm:$0xff] %v5981_v5  ;;  %v5983_v55 = vpop.f32.mrb[67].mxu1 }
 0x54b   : > { %7163 = vst [vmem:[#allocation30_spill] sm:$0xff] %v5983_v55  ;;  %v2642_v55 = vld [vmem:[%s6905_s14 + $0xa0] sm:$0xff] }
 0x5a0   : > { %v2525_v54 = vpop.f32.mrb[68].mxu1 }
 0x5a1   : > { %v5986_v58 = vadd.f32 %v2525_v54, %v5806_v46  ;;  %v2527_v41 = vpop.f32.mrb[69].mxu1  ;;  %v1547_v54 = vld [vmem:[%s6897_s6 + $0x30] sm:$0xff] }
 0x5a2   : > { %v5989_v31 = vadd.f32 %v2527_v41, %v5806_v46  ;;  %v2529_v19 = vpop.f32.mrb[70].mxu1  ;;  %v1541_v46 = vld [vmem:[%s6897_s6] sm:$0xff]  ;;  %v1542_v41 = vld [vmem:[%s6897_s6 + $0x8] sm:$0xff] }
 0x5a3   : > { %v6957_v27 = vmax.f32 %v5986_v58, 0.0  ;;  %v2530_v47 = vpop.f32.mrb[71].mxu1  ;;  %v1544_v19 = vld [vmem:[%s6897_s6 + $0x18] sm:$0xff] }
 0x5a4   : > { %v6956_v48 = vmax.f32 %v5989_v31, 0.0  ;;  %v1545_v47 = vld [vmem:[%s6897_s6 + $0x20] sm:$0xff] }
 0x5a6   : > { %v4673_v5 = vpack.i.bf16 %v6956_v48, %v6957_v27 }
 0x5a8   : > { %4674 = vrot.lane.b32.xlu1 %v4673_v5, %s7164_s25  ;;  %4669 = vrot.lane.b32.xlu0 %v4673_v5, %s7165_s22 }
 0x5ac   : > { %3314 = vrot.lane.b32.xlu1 %v5859_v37, %s7066_s23  ;;  %4679 = vrot.lane.b32.xlu0 %v4673_v5, %s7072_s27  ;;  %v1543_v37 = vld [vmem:[%s6897_s6 + $0x10] sm:$0xff] }
 0x5b0   : > { %4684 = vrot.lane.b32.xlu1 %v4673_v5, %s7073_s18  ;;  %4689 = vrot.lane.b32.xlu0 %v4673_v5, %s7166_s26 }
 0x5b4   : > { %4694 = vrot.lane.b32.xlu1 %v4673_v5, %s7167_s3  ;;  %1575 = vperm.xlu0 %4516, %v1541_v46   ;;  %v1546_v5 = vld [vmem:[%s6897_s6 + $0x28] sm:$0xff]  ;;  %v1548_v46 = vld [vmem:[%s6897_s6 + $0x38] sm:$0xff] }
 0x5b8   : > { %1580 = vperm.xlu1 %4547, %v1542_v41   ;;  %1585 = vperm.xlu0 %4516, %v1543_v37   ;;  %v1549_v41 = vld [vmem:[%s6897_s6 + $0x40] sm:$0xff]  ;;  %v1550_v37 = vld [vmem:[%s6897_s6 + $0x48] sm:$0xff] }
 0x5bc   : > { %1590 = vperm.xlu1 %4547, %v1544_v19   ;;  %1595 = vperm.xlu0 %4516, %v1545_v47   ;;  %v1551_v19 = vld [vmem:[%s6897_s6 + $0x50] sm:$0xff]  ;;  %v1552_v47 = vld [vmem:[%s6897_s6 + $0x58] sm:$0xff] }
 0x5c0   : > { %1600 = vperm.xlu1 %4547, %v1546_v5   ;;  %1605 = vperm.xlu0 %4516, %v1547_v54   ;;  %v1553_v5 = vld [vmem:[%s6897_s6 + $0x60] sm:$0xff]  ;;  %v1554_v54 = vld [vmem:[%s6897_s6 + $0x68] sm:$0xff] }
 0x5c4   : > { %1610 = vperm.xlu1 %4547, %v1548_v46   ;;  %1615 = vperm.xlu0 %4516, %v1549_v41   ;;  %v1555_v46 = vld [vmem:[%s6897_s6 + $0x70] sm:$0xff]  ;;  %v1556_v41 = vld [vmem:[%s6897_s6 + $0x78] sm:$0xff] }
 0x5c8   : > { %1620 = vperm.xlu1 %4547, %v1550_v37   ;;  %1625 = vperm.xlu0 %4516, %v1551_v19   ;;  %v1557_v37 = vld [vmem:[%s6897_s6 + $0x80] sm:$0xff]  ;;  %v1558_v19 = vld [vmem:[%s6897_s6 + $0x88] sm:$0xff] }
 0x5cc   : > { %1630 = vperm.xlu1 %4547, %v1552_v47   ;;  %1635 = vperm.xlu0 %4516, %v1553_v5   ;;  %v1559_v47 = vld [vmem:[%s6897_s6 + $0x90] sm:$0xff]  ;;  %v1560_v5 = vld [vmem:[%s6897_s6 + $0x98] sm:$0xff] }
 0x5d0   : > { %1640 = vperm.xlu1 %4547, %v1554_v54   ;;  %1645 = vperm.xlu0 %4516, %v1555_v46   ;;  %v1561_v54 = vld [vmem:[%s6897_s6 + $0xa0] sm:$0xff]  ;;  %v1562_v46 = vld [vmem:[%s6897_s6 + $0xa8] sm:$0xff] }
 0x5d4   : > { %1650 = vperm.xlu1 %4547, %v1556_v41   ;;  %1655 = vperm.xlu0 %4516, %v1557_v37   ;;  %v1563_v41 = vld [vmem:[%s6897_s6 + $0xb0] sm:$0xff]  ;;  %v1564_v37 = vld [vmem:[%s6897_s6 + $0xb8] sm:$0xff] }
 0x5d8   : > { %1660 = vperm.xlu1 %4547, %v1558_v19   ;;  %1665 = vperm.xlu0 %4516, %v1559_v47   ;;  %v1565_v19 = vld [vmem:[%s6897_s6 + $0xc0] sm:$0xff]  ;;  %v1566_v47 = vld [vmem:[%s6897_s6 + $0xc8] sm:$0xff] }
 0x5dc   : > { %1670 = vperm.xlu1 %4547, %v1560_v5   ;;  %1675 = vperm.xlu0 %4516, %v1561_v54   ;;  %v1567_v5 = vld [vmem:[%s6897_s6 + $0xd0] sm:$0xff]  ;;  %v1568_v54 = vld [vmem:[%s6897_s6 + $0xd8] sm:$0xff] }
 0x5e0   : > { %1680 = vperm.xlu1 %4547, %v1562_v46   ;;  %1685 = vperm.xlu0 %4516, %v1563_v41   ;;  %v1569_v46 = vld [vmem:[%s6897_s6 + $0xe0] sm:$0xff]  ;;  %v1570_v41 = vld [vmem:[%s6897_s6 + $0xe8] sm:$0xff] }
 0x5e4   : > { %1690 = vperm.xlu1 %4547, %v1564_v37   ;;  %1695 = vperm.xlu0 %4516, %v1565_v19   ;;  %v1571_v37 = vld [vmem:[%s6897_s6 + $0xf0] sm:$0xff]  ;;  %v1572_v19 = vld [vmem:[%s6897_s6 + $0xf8] sm:$0xff] }
 0x5e8   : > { %1700 = vperm.xlu1 %4547, %v1566_v47   ;;  %1705 = vperm.xlu0 %4516, %v1567_v5   ;;  %v2622_v47 = vld [vmem:[%s6905_s14] sm:$0xff]  ;;  %v2623_v5 = vld [vmem:[%s6905_s14 + $0x8] sm:$0xff] }
 0x5ec   : > { %1710 = vperm.xlu1 %4547, %v1568_v54   ;;  %1715 = vperm.xlu0 %4516, %v1569_v46   ;;  %v2624_v54 = vld [vmem:[%s6905_s14 + $0x10] sm:$0xff]  ;;  %v2625_v46 = vld [vmem:[%s6905_s14 + $0x18] sm:$0xff] }
 0x5f0   : > { %1720 = vperm.xlu1 %4547, %v1570_v41   ;;  %1725 = vperm.xlu0 %4516, %v1571_v37   ;;  %v2626_v41 = vld [vmem:[%s6905_s14 + $0x20] sm:$0xff]  ;;  %v2627_v37 = vld [vmem:[%s6905_s14 + $0x28] sm:$0xff] }
 0x5f4   : > { %1730 = vperm.xlu1 %4547, %v1572_v19   ;;  %2656 = vperm.xlu0 %4516, %v2622_v47   ;;  %v2628_v19 = vld [vmem:[%s6905_s14 + $0x30] sm:$0xff]  ;;  %v2629_v47 = vld [vmem:[%s6905_s14 + $0x38] sm:$0xff] }
 0x5f8   : > { %2661 = vperm.xlu1 %4547, %v2623_v5   ;;  %2666 = vperm.xlu0 %4516, %v2624_v54   ;;  %v2630_v5 = vld [vmem:[%s6905_s14 + $0x40] sm:$0xff]  ;;  %v2631_v54 = vld [vmem:[%s6905_s14 + $0x48] sm:$0xff] }
 0x5fc   : > { %2671 = vperm.xlu1 %4547, %v2625_v46   ;;  %2676 = vperm.xlu0 %4516, %v2626_v41   ;;  %v2632_v46 = vld [vmem:[%s6905_s14 + $0x50] sm:$0xff]  ;;  %v2633_v41 = vld [vmem:[%s6905_s14 + $0x58] sm:$0xff] }
 0x600   : > { %2681 = vperm.xlu1 %4547, %v2627_v37   ;;  %2686 = vperm.xlu0 %4516, %v2628_v19   ;;  %v2634_v37 = vld [vmem:[%s6905_s14 + $0x60] sm:$0xff]  ;;  %v2635_v19 = vld [vmem:[%s6905_s14 + $0x68] sm:$0xff] }
 0x604   : > { %2691 = vperm.xlu1 %4547, %v2629_v47   ;;  %2696 = vperm.xlu0 %4516, %v2630_v5   ;;  %v2636_v47 = vld [vmem:[%s6905_s14 + $0x70] sm:$0xff]  ;;  %v2637_v5 = vld [vmem:[%s6905_s14 + $0x78] sm:$0xff] }
 0x608   : > { %2701 = vperm.xlu1 %4547, %v2631_v54   ;;  %2706 = vperm.xlu0 %4516, %v2632_v46   ;;  %v2638_v54 = vld [vmem:[%s6905_s14 + $0x80] sm:$0xff]  ;;  %v3300_v46 = vpop.permute.xlu0 %3299 }
 0x60c   : > { %2711 = vperm.xlu1 %4547, %v2633_v41   ;;  %2716 = vperm.xlu0 %4516, %v2634_v37   ;;  %v3302_v41 = vpop.permute.xlu1 %3301  ;;  %v2639_v37 = vld [vmem:[%s6905_s14 + $0x88] sm:$0xff]  ;;  %v3313_v48 = vpop.permute.xlu0 %3312 }
 0x60d   : > { %v3303_v27 = vsel %vm7169_vm5, %v3300_v46, %v3302_v41  ;;  %vm7178_vm5 = vcmp.lt.s32.totalorder %v5133_v16, 1 }
 0x610   : > { %2721 = vperm.xlu1 %4547, %v2635_v19   ;;  %2726 = vperm.xlu0 %4516, %v2636_v47   ;;  %v2640_v19 = vld [vmem:[%s6905_s14 + $0x90] sm:$0xff]  ;;  %v3304_v47 = vsel %vm7168_vm14, %v3302_v41, %v3300_v46  ;;  %vm7177_vm14 = vcmp.lt.s32.totalorder %v5140_v22, 240  ;;  %v2646_v22 = vld [vmem:[%s6905_s14 + $0xc0] sm:$0xff] }
 0x614   : > { %2731 = vperm.xlu1 %4547, %v2637_v5   ;;  %2736 = vperm.xlu0 %4516, %v2638_v54   ;;  %v3305_v5 = vsel %vm7170_vm11, %v3304_v47, 0.0  ;;  %v2641_v54 = vld [vmem:[%s6905_s14 + $0x98] sm:$0xff]  ;;  %vm7179_vm11 = vmmov %vm7178_vm5 }
 0x615   : > { %v3309_v53 = vcombine.low %v3305_v5, %v3303_v27 }
 0x617   : > { %v3311_v2 = vadd.f32 %v3309_v53, %v5851_v25  ;;  %v7181_v25 = vmax.f32 %v5986_v58, 0.0 }
 0x618   : > { %2741 = vperm.xlu1 %4547, %v2639_v37   ;;  %2746 = vperm.xlu0 %4516, %v2640_v19  }
 0x61a   : > { %v4675_v38 = vpop.permute.xlu1 %4674  ;;  %v4670_v40 = vpop.permute.xlu0 %4669 }
 0x61b   : > { %v4677_v29 = vunpack.i.h.bf16 %v4675_v38  ;;  %v4676_v7 = vunpack.i.l.bf16 %v4675_v38  ;;  %v4672_v37 = vunpack.i.h.bf16 %v4670_v40  ;;  %v4671_v19 = vunpack.i.l.bf16 %v4670_v40  ;;  %v2643_v38 = vld [vmem:[%s6905_s14 + $0xa8] sm:$0xff]  ;;  %v2644_v40 = vld [vmem:[%s6905_s14 + $0xb0] sm:$0xff] }
 0x61c   : > { %2751 = vperm.xlu1 %4547, %v2641_v54   ;;  %2756 = vperm.xlu0 %4516, %v2642_v55  }
 0x61d   : > { %v2546_v46 = vsel %vm7171_vm1, %v4676_v7, %v4677_v29  ;;  %v2547_v41 = vsel %vm7172_vm10, %v4677_v29, %v4676_v7  ;;  %v2538_v47 = vsel %vm7173_vm4, %v4671_v19, %v4672_v37  ;;  %v2539_v50 = vsel %vm7174_vm13, %v4672_v37, %v4671_v19 }
 0x61e   : > { %v4298_v27 = vpack.c.bf16 %v2547_v41, %v2539_v50  ;;  %v3315_v55 = vpop.permute.xlu1 %3314  ;;  %v4680_v5 = vpop.permute.xlu0 %4679  ;;  %v4295_v54 = vpack.c.bf16 %v2546_v46, %v2538_v47  ;;  %vm7194_vm13 = vcmask 31744  }
 0x61f   : > { %v3316_v7 = vsel %vm7175_vm12, %v3313_v48, %v3315_v55  ;;  %v3317_v29 = vsel %vm7176_vm7, %v3315_v55, %v3313_v48  ;;  %v4682_v45 = vunpack.i.h.bf16 %v4680_v5  ;;  %v4681_v37 = vunpack.i.l.bf16 %v4680_v5  ;;  %v2645_v48 = vld [vmem:[%s6905_s14 + $0xb8] sm:$0xff]  ;;  %vm7196_vm7 = vmmov %vm7194_vm13 }
 0x620   : > { %v3319_v19 = vsel %vm7177_vm14, %v3317_v29, 0.0  ;;  %2761 = vperm.xlu1 %4547, %v2643_v38   ;;  %2766 = vperm.xlu0 %4516, %v2644_v40   ;;  %vm7195_vm12 = vcmask 457728  }
 0x621   : > { %v3322_v59 = vcombine.low %v3316_v7, %v3319_v19  ;;  %v2554_v50 = vsel %vm7178_vm5, %v4681_v37, %v4682_v45  ;;  %v2555_v46 = vsel %vm7179_vm11, %v4682_v45, %v4681_v37  ;;  %4296 = vmatprep.subr.msk.bf16.mxu0 %vm5247_vm3, %v4295_v54  ;;  %v7182_v45 = vmax.f32 %v5989_v31, 0.0  ;;  %vm7197_vm14 = vmmov %vm7195_vm12 }
 0x622   : > { %v4304_v53 = vpack.c.bf16 %v7181_v25, %v2555_v46  ;;  %4299 = vmatpush1.bf16.msk.msra.mxu0 %vm5259_vm2, %v4298_v27  ;;  %v4685_v47 = vpop.permute.xlu1 %4684  ;;  %v4690_v38 = vpop.permute.xlu0 %4689  ;;  %vm7183_vm3 = vcmp.lt.s32.totalorder %v5133_v16, 127  ;;  %vm7185_vm2 = vcmp.lt.s32.totalorder %v5133_v16, 126  ;;  %vm7198_vm5 = vmmov %vm7196_vm7 }
 0x623   : > { %v4301_v40 = vpack.c.bf16 %v7182_v45, %v2554_v50  ;;  %v3324_v55 = vadd.f32 %v3322_v59, %v3311_v2  ;;  %v4687_v5 = vunpack.i.h.bf16 %v4685_v47  ;;  %v4686_v54 = vunpack.i.l.bf16 %v4685_v47  ;;  %vm7184_vm1 = vmmov %vm7183_vm3  ;;  %v2647_v59 = vld [vmem:[%s6905_s14 + $0xc8] sm:$0xff]  ;;  %v2648_v2 = vld [vmem:[%s6905_s14 + $0xd0] sm:$0xff] }
 0x624   : > { %v4692_v7 = vunpack.i.h.bf16 %v4690_v38  ;;  %v4691_v29 = vunpack.i.l.bf16 %v4690_v38  ;;  %2771 = vperm.xlu1 %4547, %v2645_v48   ;;  %2776 = vperm.xlu0 %4516, %v2646_v22   ;;  %vm7186_vm10 = vmmov %vm7185_vm2 }
 0x625   : > { %v3325_v37 = vmul.f32 0.11111111, %v3324_v55  ;;  %v2562_v58 = vsel %vm7183_vm3, %v4686_v54, %v4687_v5  ;;  %v2563_v62 = vsel %vm7184_vm1, %v4687_v5, %v4686_v54  ;;  %4302 = vmatprep.subr.msk.bf16.mxu0 %vm5280_vm15, %v4301_v40  ;;  %v2650_v40 = vld [vmem:[%s6905_s14 + $0xe0] sm:$0xff]  ;;  %vm7189_vm15 = vcmp.lt.s32.totalorder %v5233_v13, 13  ;;  %v2651_v13 = vld [vmem:[%s6905_s14 + $0xe8] sm:$0xff]  ;;  %vm7199_vm11 = vmmov %vm7195_vm12 }
 0x626   : > { %v2570_v31 = vsel %vm7185_vm2, %v4691_v29, %v4692_v7  ;;  %v2571_v27 = vsel %vm7186_vm10, %v4692_v7, %v4691_v29  ;;  %4305 = vmatpush1.bf16.msk.msra.mxu0 %vm5289_vm6, %v4304_v53  ;;  %v4695_v19 = vpop.permute.xlu1 %4694  ;;  %vm7187_vm6 = vcmp.lt.s32.totalorder %v5230_v17, 13  ;;  %v4732_v17 = vld [vmem:[%s6906_s15] sm:$0xff]   ;;  %v2652_v7 = vld [vmem:[%s6905_s14 + $0xf0] sm:$0xff]  ;;  %vm7200_vm3 = vmmov %vm7198_vm5 }
 0x627   : > { %v4307_v8 = vpack.c.bf16 %v2571_v27, %v2563_v62  ;;  %v4310_v50 = vpack.c.bf16 %v2570_v31, %v2562_v58  ;;  %v4697_v46 = vunpack.i.h.bf16 %v4695_v19  ;;  %v4696_v41 = vunpack.i.l.bf16 %v4695_v19  ;;  %v4733_v29 = vld [vmem:[%s6904_s13] sm:$0xff]   ;;  %v4734_v31 = vld [vmem:[%s6906_s15 + $0x8] sm:$0xff]   ;;  %vm7201_vm1 = vmmov %vm7199_vm11 }
 0x628   : > { %2781 = vperm.xlu1 %4547, %v2647_v59   ;;  %2786 = vperm.xlu0 %4516, %v2648_v2   ;;  %v3359_v48 = vcombine.high %v3325_v37, %v3325_v37  ;;  %v3361_v22 = vpack.c.bf16 %v3325_v37, %v3325_v37  ;;  %v2653_v37 = vld [vmem:[%s6905_s14 + $0xf8] sm:$0xff]  ;;  %v3363_v58 = vld [vmem:[%s6907_s16] sm:$0xff]  ;;  %vm7202_vm2 = vmmov %vm7200_vm3 }
 0x629   : > { %v2578_v25 = vsel %vm1361_vm8, %v4696_v41, %v4697_v46  ;;  %v2579_v47 = vsel %vm1361_vm8, %v4697_v46, %v4696_v41  ;;  %4308 = vmatprep.subr.msk.bf16.mxu0 %vm5315_vm9, %v4307_v8  ;;  %vm7190_vm9 = vcmask 1041408   ;;  %v3364_v8 = vld [vmem:[%s6907_s16 + $0x8] sm:$0xff]  ;;  %vm7203_vm10 = vmmov %vm7201_vm1 }
 0x62a   : > { %v2581_v53 = vsel %vm7187_vm6, %v2579_v47, 0.0  ;;  %4311 = vmatpush1.bf16.msk.msra.mxu0 %vm5325_vm0, %v4310_v50  ;;  %v3362_v45 = vpack.c.bf16 %v3359_v48, %v3359_v48  ;;  %v2580_v16 = vsel %vm7189_vm15, %v2578_v25, 0.0  ;;  %vm7191_vm8 = vmmov %vm7190_vm9  ;;  %vm7192_vm0 = vcmask 1043456   ;;  %v3365_v50 = vld [vmem:[%s6907_s16 + $0x10] sm:$0xff] }
 0x62b   : > { %v2621_v10 = vpack.c.bf16 %v2581_v53, %v2581_v53  ;;  %v2620_v55 = vpack.c.bf16 %v2580_v16, %v2580_v16  ;;  %v3684_v5 = vsel %vm7191_vm8, %v3361_v22, 0  ;;  %vm7193_vm4 = vmmov %vm7192_vm0 }
 0x62c   : > { %4409 = vmatprep.subr.msk.bf16.mxu1 %vm7190_vm9, %v3362_v45  ;;  %2791 = vperm.xlu1 %4547, %v2649_v15   ;;  %vm7205_vm6 = vmmov %vm7202_vm2 }
 0x62d   : > { %3690 = vmatpush1.bf16.msra.mxu1 %v3684_v5  ;;  %2796 = vperm.xlu0 %4516, %v2650_v40   ;;  %v2943_v54 = vsel %vm7192_vm0, %v2620_v55, 0  ;;  %v4736_v55 = vld [vmem:[%s6906_s15 + $0x10] sm:$0xff]   ;;  %vm7210_vm15 = vmmov %vm7201_vm1 }
 0x62e   : > { %4312 = vmatprep.subr.msk.bf16.mxu0 %vm7193_vm4, %v2621_v10  ;;  %vm7215_vm9 = vmmov %vm7202_vm2 }
 0x62f   : > { %2955 = vmatpush1.bf16.msra.mxu0 %v2943_v54  ;;  %vm7220_vm8 = vmmov %vm7201_vm1 }
 0x630   : > { %4410 = vmatmul.mubr.msk.bf16.vlgmr.msra.gmra.mrb[72].mxu1 %vm7194_vm13, %v4732_v17  ;;  %2801 = vperm.xlu1 %4547, %v2651_v13   ;;  %vm7225_vm0 = vmmov %vm7202_vm2 }
 0x631   : > { %2806 = vperm.xlu0 %4516, %v2652_v7   ;;  %3731 = vmatprep.mubr.bf16.mxu1 %v7003_v18  ;;  %vm7230_vm4 = vmmov %vm7201_vm1 }
 0x632   : > { %4313 = vmatmul.mubr.msk.bf16.vlgmr.msra.gmra.mrb[76].mxu0 %vm7195_vm12, %v4733_v29  ;;  %vm7235_vm13 = vmmov %vm7225_vm0 }
 0x633   : > { %v1576_v62 = vpop.permute.xlu0 %1575  ;;  %2990 = vmatprep.mubr.bf16.mxu0 %v7003_v18  ;;  %vm7240_vm12 = vmmov %vm7201_vm1 }
 0x634   : > { %v1902_v59 = vadd.f32 %v5693_v60, %v1576_v62  ;;  %v1904_v2 = vadd.f32 %v5699_v12, %v1576_v62  ;;  %2811 = vperm.xlu1 %4547, %v2653_v37   ;;  %v4735_v60 = vld [vmem:[%s6904_s13 + $0x8] sm:$0xff]  }
 0x635   : > { %3397 = vperm.xlu0 %4516, %v3363_v58  }
 0x636   : > { %v2060_v27 = vmax.f32 %v1902_v59, 0.0  ;;  %v2061_v19 = vmax.f32 %v1904_v2, 0.0 }
 0x637   : > { %v1581_v12 = vpop.permute.xlu1 %1580  ;;  %v1586_v46 = vpop.permute.xlu0 %1585 }
 0x638   : > { %4172 = vst [vmem:[%s5704_s21 + $0x200] sm:$0xff] %v2060_v27  ;;  %4173 = vst [vmem:[%s5704_s21 + $0x208] sm:$0xff] %v2061_v19  ;;  %4411 = vmatmul.mubr.msk.bf16.gmra.mrb[76].mxu1 %vm7196_vm7, %v4734_v31  ;;  %v1906_v41 = vadd.f32 %v5706_v23, %v1581_v12  ;;  %v1908_v48 = vadd.f32 %v5708_v24, %v1581_v12  ;;  %v1912_v22 = vadd.f32 %v5718_v63, %v1586_v46  ;;  %v3366_v23 = vld [vmem:[%s6907_s16 + $0x18] sm:$0xff]  ;;  %v3367_v24 = vld [vmem:[%s6907_s16 + $0x20] sm:$0xff] }
 0x639   : > { %v1914_v25 = vadd.f32 %v5728_v21, %v1586_v46  ;;  %3402 = vperm.xlu1 %4547, %v3364_v8   ;;  %3407 = vperm.xlu0 %4516, %v3365_v50   ;;  %v4738_v12 = vld [vmem:[%s6906_s15 + $0x18] sm:$0xff]   ;;  %vm7243_vm7 = vmmov %vm7225_vm0 }
 0x63a   : > { %v2062_v47 = vmax.f32 %v1906_v41, 0.0  ;;  %v2063_v15 = vmax.f32 %v1908_v48, 0.0  ;;  %v2064_v53 = vmax.f32 %v1912_v22, 0.0  ;;  %4314 = vmatmul.mubr.msk.bf16.gmra.mrb[80].mxu0 %vm7197_vm14, %v4735_v60  ;;  %3741 = vmatprep.mubr.bf16.mxu1 %v7003_v18  ;;  %vm7244_vm14 = vmmov %vm7201_vm1 }
 0x63b   : > { %v2065_v38 = vmax.f32 %v1914_v25, 0.0  ;;  %v1591_v63 = vpop.permute.xlu1 %1590  ;;  %v1596_v21 = vpop.permute.xlu0 %1595  ;;  %3000 = vmatprep.mubr.bf16.mxu0 %v7003_v18 }
 0x63c   : > { %4174 = vst [vmem:[%s5704_s21 + $0x210] sm:$0xff] %v2062_v47  ;;  %4175 = vst [vmem:[%s5704_s21 + $0x218] sm:$0xff] %v2063_v15  ;;  %v1916_v45 = vadd.f32 %v5730_v9, %v1591_v63  ;;  %v1918_v40 = vadd.f32 %v5732_v26, %v1591_v63  ;;  %v1922_v16 = vadd.f32 %v5742_v3, %v1596_v21  ;;  %v3368_v9 = vld [vmem:[%s6907_s16 + $0x28] sm:$0xff]  ;;  %v3369_v3 = vld [vmem:[%s6907_s16 + $0x30] sm:$0xff] }
 0x63d   : > { %4176 = vst [vmem:[%s5704_s21 + $0x220] sm:$0xff] %v2064_v53  ;;  %4177 = vst [vmem:[%s5704_s21 + $0x228] sm:$0xff] %v2065_v38  ;;  %v1924_v10 = vadd.f32 %v5752_v14, %v1596_v21  ;;  %3412 = vperm.xlu1 %4547, %v3366_v23   ;;  %3417 = vperm.xlu0 %4516, %v3367_v24   ;;  %v4737_v14 = vld [vmem:[%s6904_s13 + $0x10] sm:$0xff]  }
 0x63e   : > { %v2066_v5 = vmax.f32 %v1916_v45, 0.0  ;;  %v2067_v17 = vmax.f32 %v1918_v40, 0.0  ;;  %v2068_v26 = vmax.f32 %v1922_v16, 0.0 }
 0x63f   : > { %v2069_v54 = vmax.f32 %v1924_v10, 0.0  ;;  %v1601_v13 = vpop.permute.xlu1 %1600  ;;  %v1606_v7 = vpop.permute.xlu0 %1605 }
 0x640   : > { %4178 = vst [vmem:[%s5704_s21 + $0x230] sm:$0xff] %v2066_v5  ;;  %4179 = vst [vmem:[%s5704_s21 + $0x238] sm:$0xff] %v2067_v17  ;;  %4412 = vmatmul.mubr.msk.bf16.gmra.mrb[80].mxu1 %vm7198_vm5, %v4736_v55  ;;  %v1926_v29 = vadd.f32 %v5754_v57, %v1601_v13  ;;  %v1928_v37 = vadd.f32 %v5756_v30, %v1601_v13  ;;  %v1932_v58 = vadd.f32 %v5766_v0, %v1606_v7  ;;  %v3370_v57 = vld [vmem:[%s6907_s16 + $0x38] sm:$0xff]  ;;  %v3371_v30 = vld [vmem:[%s6907_s16 + $0x40] sm:$0xff] }
 0x641   : > { %4180 = vst [vmem:[%s5704_s21 + $0x240] sm:$0xff] %v2068_v26  ;;  %4181 = vst [vmem:[%s5704_s21 + $0x248] sm:$0xff] %v2069_v54  ;;  %v1934_v62 = vadd.f32 %v5776_v32, %v1606_v7  ;;  %3422 = vperm.xlu1 %4547, %v3368_v9   ;;  %3427 = vperm.xlu0 %4516, %v3369_v3   ;;  %v4740_v55 = vld [vmem:[%s6906_s15 + $0x20] sm:$0xff]  }
 0x642   : > { %v2070_v59 = vmax.f32 %v1926_v29, 0.0  ;;  %v2071_v2 = vmax.f32 %v1928_v37, 0.0  ;;  %v2072_v31 = vmax.f32 %v1932_v58, 0.0  ;;  %4315 = vmatmul.mubr.msk.bf16.gmra.mrb[84].mxu0 %vm7199_vm11, %v4737_v14  ;;  %3751 = vmatprep.mubr.bf16.mxu1 %v7003_v18  ;;  %vm7245_vm5 = vmmov %vm7225_vm0 }
 0x643   : > { %v2073_v27 = vmax.f32 %v1934_v62, 0.0  ;;  %v1611_v0 = vpop.permute.xlu1 %1610  ;;  %v1616_v32 = vpop.permute.xlu0 %1615  ;;  %3010 = vmatprep.mubr.bf16.mxu0 %v7003_v18  ;;  %vm7246_vm11 = vmmov %vm7201_vm1 }
 0x644   : > { %4182 = vst [vmem:[%s5704_s21 + $0x250] sm:$0xff] %v2070_v59  ;;  %4183 = vst [vmem:[%s5704_s21 + $0x258] sm:$0xff] %v2071_v2  ;;  %v1936_v19 = vadd.f32 %v5778_v33, %v1611_v0  ;;  %v1938_v8 = vadd.f32 %v5780_v4, %v1611_v0  ;;  %v1942_v50 = vadd.f32 %v5790_v11, %v1616_v32  ;;  %v3372_v33 = vld [vmem:[%s6907_s16 + $0x48] sm:$0xff]  ;;  %v3373_v11 = vld [vmem:[%s6907_s16 + $0x50] sm:$0xff] }
 0x645   : > { %4184 = vst [vmem:[%s5704_s21 + $0x260] sm:$0xff] %v2072_v31  ;;  %4185 = vst [vmem:[%s5704_s21 + $0x268] sm:$0xff] %v2073_v27  ;;  %v1944_v60 = vadd.f32 %v5800_v42, %v1616_v32  ;;  %3432 = vperm.xlu1 %4547, %v3370_v57   ;;  %3437 = vperm.xlu0 %4516, %v3371_v30   ;;  %v4739_v42 = vld [vmem:[%s6904_s13 + $0x18] sm:$0xff]   ;;  %v7204_v27 = vld [vmem:[#allocation2_spill] sm:$0xff] }
 0x646   : > { %v2074_v46 = vmax.f32 %v1936_v19, 0.0  ;;  %v2075_v41 = vmax.f32 %v1938_v8, 0.0  ;;  %v2076_v4 = vmax.f32 %v1942_v50, 0.0  ;;  %v4742_v30 = vld [vmem:[%s6906_s15 + $0x28] sm:$0xff]  }
 0x647   : > { %v2077_v48 = vmax.f32 %v1944_v60, 0.0  ;;  %v1621_v22 = vpop.permute.xlu1 %1620  ;;  %v1626_v25 = vpop.permute.xlu0 %1625  ;;  %v4743_v8 = vld [vmem:[%s6904_s13 + $0x28] sm:$0xff]  }
 0x648   : > { %4186 = vst [vmem:[%s5704_s21 + $0x270] sm:$0xff] %v2074_v46  ;;  %4187 = vst [vmem:[%s5704_s21 + $0x278] sm:$0xff] %v2075_v41  ;;  %4413 = vmatmul.mubr.msk.bf16.gmra.mrb[84].mxu1 %vm7200_vm3, %v4738_v12  ;;  %v1946_v47 = vadd.f32 %v5802_v43, %v1621_v22  ;;  %v1948_v15 = vadd.f32 %v5804_v56, %v1621_v22  ;;  %v1952_v53 = vadd.f32 %v5812_v44, %v1626_v25  ;;  %v3374_v43 = vld [vmem:[%s6907_s16 + $0x58] sm:$0xff]  ;;  %v3375_v56 = vld [vmem:[%s6907_s16 + $0x60] sm:$0xff] }
 0x649   : > { %4188 = vst [vmem:[%s5704_s21 + $0x280] sm:$0xff] %v2076_v4  ;;  %4189 = vst [vmem:[%s5704_s21 + $0x288] sm:$0xff] %v2077_v48  ;;  %v1954_v38 = vadd.f32 %v5818_v1, %v1626_v25  ;;  %3442 = vperm.xlu1 %4547, %v3372_v33   ;;  %3447 = vperm.xlu0 %4516, %v3373_v11   ;;  %v7206_v12 = vld [vmem:[#allocation5_spill] sm:$0xff]  ;;  %v7207_v46 = vld [vmem:[#allocation6_spill] sm:$0xff] }
 0x64a   : > { %v2078_v23 = vmax.f32 %v1946_v47, 0.0  ;;  %v2079_v24 = vmax.f32 %v1948_v15, 0.0  ;;  %v2080_v63 = vmax.f32 %v1952_v53, 0.0  ;;  %4316 = vmatmul.mubr.msk.bf16.gmra.mrb[88].mxu0 %vm7201_vm1, %v4739_v42  ;;  %3761 = vmatprep.mubr.bf16.mxu1 %v7003_v18  ;;  %v7208_v4 = vld [vmem:[#allocation3_spill] sm:$0xff]  ;;  %v7209_v11 = vld [vmem:[#allocation4_spill] sm:$0xff]  ;;  %v3382_v53 = vld [vmem:[%s6907_s16 + $0x98] sm:$0xff] }
 0x64b   : > { %v2081_v21 = vmax.f32 %v1954_v38, 0.0  ;;  %v1631_v44 = vpop.permute.xlu1 %1630  ;;  %v1636_v1 = vpop.permute.xlu0 %1635  ;;  %3020 = vmatprep.mubr.bf16.mxu0 %v7003_v18  ;;  %v3383_v38 = vld [vmem:[%s6907_s16 + $0xa0] sm:$0xff]  ;;  %vm7247_vm3 = vmmov %vm7225_vm0 }
 0x64c   : > { %4190 = vst [vmem:[%s5704_s21 + $0x290] sm:$0xff] %v2078_v23  ;;  %4191 = vst [vmem:[%s5704_s21 + $0x298] sm:$0xff] %v2079_v24  ;;  %v1956_v45 = vadd.f32 %v5824_v61, %v1631_v44  ;;  %v1958_v40 = vadd.f32 %v5826_v49, %v1631_v44  ;;  %v1962_v16 = vadd.f32 %v5839_v28, %v1636_v1  ;;  %v3376_v61 = vld [vmem:[%s6907_s16 + $0x68] sm:$0xff]  ;;  %v3377_v28 = vld [vmem:[%s6907_s16 + $0x70] sm:$0xff] }
 0x64d   : > { %4192 = vst [vmem:[%s5704_s21 + $0x2a0] sm:$0xff] %v2080_v63  ;;  %4193 = vst [vmem:[%s5704_s21 + $0x2a8] sm:$0xff] %v2081_v21  ;;  %v1964_v10 = vadd.f32 %v5847_v34, %v1636_v1  ;;  %3452 = vperm.xlu1 %4547, %v3374_v43   ;;  %3457 = vperm.xlu0 %4516, %v3375_v56   ;;  %v4741_v34 = vld [vmem:[%s6904_s13 + $0x20] sm:$0xff]   ;;  %v7211_v63 = vld [vmem:[#allocation7_spill] sm:$0xff] }
 0x64e   : > { %v2082_v9 = vmax.f32 %v1956_v45, 0.0  ;;  %v2083_v5 = vmax.f32 %v1958_v40, 0.0  ;;  %v2084_v49 = vmax.f32 %v1962_v16, 0.0  ;;  %v7212_v43 = vld [vmem:[#allocation8_spill] sm:$0xff]  ;;  %v7213_v44 = vld [vmem:[#allocation11_spill] sm:$0xff] }
 0x64f   : > { %v2085_v17 = vmax.f32 %v1964_v10, 0.0  ;;  %v1641_v26 = vpop.permute.xlu1 %1640  ;;  %v1646_v54 = vpop.permute.xlu0 %1645  ;;  %v7214_v45 = vld [vmem:[#allocation12_spill] sm:$0xff]  ;;  %v3384_v10 = vld [vmem:[%s6907_s16 + $0xa8] sm:$0xff] }
 0x650   : > { %4194 = vst [vmem:[%s5704_s21 + $0x2b0] sm:$0xff] %v2082_v9  ;;  %4195 = vst [vmem:[%s5704_s21 + $0x2b8] sm:$0xff] %v2083_v5  ;;  %4414 = vmatmul.mubr.msk.bf16.gmra.mrb[88].mxu1 %vm7202_vm2, %v4740_v55  ;;  %v1966_v3 = vadd.f32 %v5849_v35, %v1641_v26  ;;  %v1968_v14 = vadd.f32 %v5853_v6, %v1641_v26  ;;  %v1972_v13 = vadd.f32 %v5871_v20, %v1646_v54  ;;  %v3378_v35 = vld [vmem:[%s6907_s16 + $0x78] sm:$0xff]  ;;  %v3379_v6 = vld [vmem:[%s6907_s16 + $0x80] sm:$0xff] }
 0x651   : > { %4196 = vst [vmem:[%s5704_s21 + $0x2c0] sm:$0xff] %v2084_v49  ;;  %4197 = vst [vmem:[%s5704_s21 + $0x2c8] sm:$0xff] %v2085_v17  ;;  %v1974_v7 = vadd.f32 %v5883_v36, %v1646_v54  ;;  %3462 = vperm.xlu1 %4547, %v3376_v61   ;;  %3467 = vperm.xlu0 %4516, %v3377_v28   ;;  %v4744_v16 = vld [vmem:[%s6906_s15 + $0x30] sm:$0xff]   ;;  %v7216_v26 = vld [vmem:[#allocation9_spill] sm:$0xff] }
 0x652   : > { %v2086_v29 = vmax.f32 %v1966_v3, 0.0  ;;  %v2087_v37 = vmax.f32 %v1968_v14, 0.0  ;;  %v2088_v58 = vmax.f32 %v1972_v13, 0.0  ;;  %4317 = vmatmul.mubr.msk.bf16.gmra.mrb[92].mxu0 %vm7203_vm10, %v4741_v34  ;;  %3771 = vmatprep.mubr.bf16.mxu1 %v7003_v18  ;;  %v3385_v49 = vld [vmem:[%s6907_s16 + $0xb0] sm:$0xff]  ;;  %v7217_v3 = vld [vmem:[#allocation10_spill] sm:$0xff]  ;;  %v7218_v13 = vld [vmem:[#allocation15_spill] sm:$0xff] }
 0x653   : > { %v2089_v62 = vmax.f32 %v1974_v7, 0.0  ;;  %v1651_v20 = vpop.permute.xlu1 %1650  ;;  %v1656_v36 = vpop.permute.xlu0 %1655  ;;  %3030 = vmatprep.mubr.bf16.mxu0 %v7003_v18  ;;  %v4745_v17 = vld [vmem:[%s6904_s13 + $0x30] sm:$0xff]   ;;  %vm7248_vm2 = vmmov %vm7225_vm0 }
 0x654   : > { %4198 = vst [vmem:[%s5704_s21 + $0x2d0] sm:$0xff] %v2086_v29  ;;  %4199 = vst [vmem:[%s5704_s21 + $0x2d8] sm:$0xff] %v2087_v37  ;;  %v1976_v59 = vadd.f32 %v5885_v39, %v1651_v20  ;;  %v1978_v2 = vadd.f32 %v5887_v52, %v1651_v20  ;;  %v1982_v31 = vadd.f32 %v5897_v51, %v1656_v36  ;;  %v3380_v39 = vld [vmem:[%s6907_s16 + $0x88] sm:$0xff]  ;;  %v3381_v51 = vld [vmem:[%s6907_s16 + $0x90] sm:$0xff] }
 0x655   : > { %4200 = vst [vmem:[%s5704_s21 + $0x2e0] sm:$0xff] %v2088_v58  ;;  %4201 = vst [vmem:[%s5704_s21 + $0x2e8] sm:$0xff] %v2089_v62  ;;  %v1984_v57 = vadd.f32 %v7204_v27, %v1656_v36  ;;  %3472 = vperm.xlu1 %4547, %v3378_v35   ;;  %3477 = vperm.xlu0 %4516, %v3379_v6   ;;  %v7219_v29 = vld [vmem:[#allocation16_spill] sm:$0xff]  ;;  %v3386_v20 = vld [vmem:[%s6907_s16 + $0xb8] sm:$0xff] }
 0x656   : > { %v2090_v0 = vmax.f32 %v1976_v59, 0.0  ;;  %v2091_v32 = vmax.f32 %v1978_v2, 0.0  ;;  %v2092_v52 = vmax.f32 %v1982_v31, 0.0  ;;  %v3387_v36 = vld [vmem:[%s6907_s16 + $0xc0] sm:$0xff]  ;;  %v7221_v31 = vld [vmem:[#allocation13_spill] sm:$0xff]  ;;  %vm7249_vm10 = vmmov %vm7201_vm1 }
 0x657   : > { %v2093_v19 = vmax.f32 %v1984_v57, 0.0  ;;  %v1661_v50 = vpop.permute.xlu1 %1660  ;;  %v1666_v60 = vpop.permute.xlu0 %1665  ;;  %v7222_v57 = vld [vmem:[#allocation14_spill] sm:$0xff] }
 0x658   : > { %4202 = vst [vmem:[%s5704_s21 + $0x2f0] sm:$0xff] %v2090_v0  ;;  %4203 = vst [vmem:[%s5704_s21 + $0x2f8] sm:$0xff] %v2091_v32  ;;  %4415 = vmatmul.mubr.msk.bf16.gmra.mrb[92].mxu1 %vm7205_vm6, %v4742_v30  ;;  %v1986_v33 = vadd.f32 %v7206_v12, %v1661_v50  ;;  %v1988_v41 = vadd.f32 %v7207_v46, %v1661_v50  ;;  %v1992_v48 = vadd.f32 %v7208_v4, %v1666_v60  ;;  %v7224_v32 = vld [vmem:[#allocation20_spill] sm:$0xff]  ;;  %v4747_v46 = vld [vmem:[%s6904_s13 + $0x38] sm:$0xff]  }
 0x659   : > { %4204 = vst [vmem:[%s5704_s21 + $0x300] sm:$0xff] %v2092_v52  ;;  %4205 = vst [vmem:[%s5704_s21 + $0x308] sm:$0xff] %v2093_v19  ;;  %v1994_v42 = vadd.f32 %v7209_v11, %v1666_v60  ;;  %3482 = vperm.xlu1 %4547, %v3380_v39   ;;  %3487 = vperm.xlu0 %4516, %v3381_v51   ;;  %v7223_v39 = vld [vmem:[#allocation19_spill] sm:$0xff]  ;;  %v4746_v19 = vld [vmem:[%s6906_s15 + $0x38] sm:$0xff]  }
 0x65a   : > { %v2094_v22 = vmax.f32 %v1986_v33, 0.0  ;;  %v2095_v25 = vmax.f32 %v1988_v41, 0.0  ;;  %v2096_v47 = vmax.f32 %v1992_v48, 0.0  ;;  %4318 = vmatmul.mubr.msk.bf16.gmra.mrb[96].mxu0 %vm7210_vm15, %v4743_v8  ;;  %3781 = vmatprep.mubr.bf16.mxu1 %v7003_v18  ;;  %v3388_v51 = vld [vmem:[%s6907_s16 + $0xc8] sm:$0xff]  ;;  %v3389_v33 = vld [vmem:[%s6907_s16 + $0xd0] sm:$0xff]  ;;  %v7226_v48 = vld [vmem:[#allocation17_spill] sm:$0xff] }
 0x65b   : > { %v2097_v15 = vmax.f32 %v1994_v42, 0.0  ;;  %v1671_v23 = vpop.permute.xlu1 %1670  ;;  %v1676_v24 = vpop.permute.xlu0 %1675  ;;  %3040 = vmatprep.mubr.bf16.mxu0 %v7003_v18  ;;  %v7227_v42 = vld [vmem:[#allocation18_spill] sm:$0xff]  ;;  %vm7250_vm6 = vmmov %vm7225_vm0 }
 0x65c   : > { %4206 = vst [vmem:[%s5704_s21 + $0x310] sm:$0xff] %v2094_v22  ;;  %4207 = vst [vmem:[%s5704_s21 + $0x318] sm:$0xff] %v2095_v25  ;;  %v1996_v21 = vadd.f32 %v7211_v63, %v1671_v23  ;;  %v1998_v56 = vadd.f32 %v7212_v43, %v1671_v23  ;;  %v2002_v1 = vadd.f32 %v7213_v44, %v1676_v24  ;;  %v7228_v25 = vld [vmem:[#allocation23_spill] sm:$0xff]  ;;  %v3391_v43 = vld [vmem:[%s6907_s16 + $0xe0] sm:$0xff] }
 0x65d   : > { %4208 = vst [vmem:[%s5704_s21 + $0x320] sm:$0xff] %v2096_v47  ;;  %4209 = vst [vmem:[%s5704_s21 + $0x328] sm:$0xff] %v2097_v15  ;;  %v2004_v40 = vadd.f32 %v7214_v45, %v1676_v24  ;;  %3492 = vperm.xlu1 %4547, %v3382_v53   ;;  %3497 = vperm.xlu0 %4516, %v3383_v38   ;;  %v7229_v15 = vld [vmem:[#allocation24_spill] sm:$0xff] }
 0x65e   : > { %v2098_v55 = vmax.f32 %v1996_v21, 0.0  ;;  %v2099_v61 = vmax.f32 %v1998_v56, 0.0  ;;  %v2100_v9 = vmax.f32 %v2002_v1, 0.0  ;;  %v3390_v21 = vld [vmem:[%s6907_s16 + $0xd8] sm:$0xff]  ;;  %vm7251_vm15 = vmmov %vm7201_vm1 }
 0x65f   : > { %v2101_v5 = vmax.f32 %v2004_v40, 0.0  ;;  %v1681_v28 = vpop.permute.xlu1 %1680  ;;  %v1686_v34 = vpop.permute.xlu0 %1685  ;;  %v7231_v1 = vld [vmem:[#allocation21_spill] sm:$0xff]  ;;  %v7232_v40 = vld [vmem:[#allocation22_spill] sm:$0xff] }
 0x660   : > { %4210 = vst [vmem:[%s5704_s21 + $0x330] sm:$0xff] %v2098_v55  ;;  %4211 = vst [vmem:[%s5704_s21 + $0x338] sm:$0xff] %v2099_v61  ;;  %4416 = vmatmul.mubr.msk.bf16.gmra.mrb[96].mxu1 %vm7215_vm9, %v4744_v16  ;;  %v2006_v54 = vadd.f32 %v7216_v26, %v1681_v28  ;;  %v2008_v14 = vadd.f32 %v7217_v3, %v1681_v28  ;;  %v2012_v7 = vadd.f32 %v7218_v13, %v1686_v34  ;;  %v7234_v61 = vld [vmem:[#allocation28_spill] sm:$0xff]  ;;  %v4749_v3 = vld [vmem:[%s6904_s13 + $0x40] sm:$0xff]  }
 0x661   : > { %4212 = vst [vmem:[%s5704_s21 + $0x340] sm:$0xff] %v2100_v9  ;;  %4213 = vst [vmem:[%s5704_s21 + $0x348] sm:$0xff] %v2101_v5  ;;  %v2014_v37 = vadd.f32 %v7219_v29, %v1686_v34  ;;  %3502 = vperm.xlu1 %4547, %v3384_v10   ;;  %3507 = vperm.xlu0 %4516, %v3385_v49   ;;  %v7233_v10 = vld [vmem:[#allocation27_spill] sm:$0xff]  ;;  %v4748_v5 = vld [vmem:[%s6906_s15 + $0x40] sm:$0xff]  }
 0x662   : > { %v2102_v58 = vmax.f32 %v2006_v54, 0.0  ;;  %v2103_v62 = vmax.f32 %v2008_v14, 0.0  ;;  %v2104_v35 = vmax.f32 %v2012_v7, 0.0  ;;  %4319 = vmatmul.mubr.msk.bf16.gmra.mrb[100].mxu0 %vm7220_vm8, %v4745_v17  ;;  %3791 = vmatprep.mubr.bf16.mxu1 %v7003_v18  ;;  %v3392_v49 = vld [vmem:[%s6907_s16 + $0xe8] sm:$0xff]  ;;  %v3393_v54 = vld [vmem:[%s6907_s16 + $0xf0] sm:$0xff]  ;;  %v7236_v7 = vld [vmem:[#allocation25_spill] sm:$0xff] }
 0x663   : > { %v2105_v6 = vmax.f32 %v2014_v37, 0.0  ;;  %v1691_v59 = vpop.permute.xlu1 %1690  ;;  %v1696_v2 = vpop.permute.xlu0 %1695  ;;  %3050 = vmatprep.mubr.bf16.mxu0 %v7003_v18  ;;  %v7237_v37 = vld [vmem:[#allocation26_spill] sm:$0xff]  ;;  %vm7252_vm9 = vmmov %vm7225_vm0 }
 0x664   : > { %4214 = vst [vmem:[%s5704_s21 + $0x350] sm:$0xff] %v2102_v58  ;;  %4215 = vst [vmem:[%s5704_s21 + $0x358] sm:$0xff] %v2103_v62  ;;  %v2016_v27 = vadd.f32 %v7221_v31, %v1691_v59  ;;  %v2018_v30 = vadd.f32 %v7222_v57, %v1691_v59  ;;  %v2022_v0 = vadd.f32 %v7223_v39, %v1696_v2  ;;  %v7238_v62 = vld [vmem:[#allocation31_spill] sm:$0xff] }
 0x665   : > { %4216 = vst [vmem:[%s5704_s21 + $0x360] sm:$0xff] %v2104_v35  ;;  %4217 = vst [vmem:[%s5704_s21 + $0x368] sm:$0xff] %v2105_v6  ;;  %v2024_v52 = vadd.f32 %v7224_v32, %v1696_v2  ;;  %3512 = vperm.xlu1 %4547, %v3386_v20   ;;  %3517 = vperm.xlu0 %4516, %v3387_v36   ;;  %v7239_v6 = vld [vmem:[#allocation32_spill] sm:$0xff] }
 0x666   : > { %v2106_v8 = vmax.f32 %v2016_v27, 0.0  ;;  %v2107_v50 = vmax.f32 %v2018_v30, 0.0  ;;  %v2108_v60 = vmax.f32 %v2022_v0, 0.0  ;;  %v3394_v27 = vld [vmem:[%s6907_s16 + $0xf8] sm:$0xff]  ;;  %v7242_v0 = vld [vmem:[#allocation30_spill] sm:$0xff]  ;;  %vm7253_vm8 = vmmov %vm7201_vm1 }
 0x667   : > { %v2109_v12 = vmax.f32 %v2024_v52, 0.0  ;;  %v1701_v41 = vpop.permute.xlu1 %1700  ;;  %v1706_v4 = vpop.permute.xlu0 %1705  ;;  %v7241_v30 = vld [vmem:[#allocation29_spill] sm:$0xff]  ;;  %v4750_v52 = vld [vmem:[%s6906_s15 + $0x48] sm:$0xff]  }
 0x668   : > { %4218 = vst [vmem:[%s5704_s21 + $0x370] sm:$0xff] %v2106_v8  ;;  %4219 = vst [vmem:[%s5704_s21 + $0x378] sm:$0xff] %v2107_v50  ;;  %4417 = vmatmul.mubr.msk.bf16.gmra.mrb[100].mxu1 %vm7225_vm0, %v4746_v19  ;;  %v2026_v11 = vadd.f32 %v7226_v48, %v1701_v41  ;;  %v2028_v22 = vadd.f32 %v7227_v42, %v1701_v41  ;;  %v2032_v47 = vadd.f32 %v7228_v25, %v1706_v4  ;;  %v4751_v8 = vld [vmem:[%s6904_s13 + $0x48] sm:$0xff]   ;;  %v4752_v50 = vld [vmem:[%s6906_s15 + $0x50] sm:$0xff]  }
 0x669   : > { %4220 = vst [vmem:[%s5704_s21 + $0x380] sm:$0xff] %v2108_v60  ;;  %4221 = vst [vmem:[%s5704_s21 + $0x388] sm:$0xff] %v2109_v12  ;;  %v2034_v53 = vadd.f32 %v7229_v15, %v1706_v4  ;;  %3522 = vperm.xlu1 %4547, %v3388_v51   ;;  %3527 = vperm.xlu0 %4516, %v3389_v33   ;;  %v4753_v60 = vld [vmem:[%s6904_s13 + $0x50] sm:$0xff]   ;;  %v4754_v12 = vld [vmem:[%s6906_s15 + $0x58] sm:$0xff]  }
 0x66a   : > { %v2110_v38 = vmax.f32 %v2026_v11, 0.0  ;;  %v2111_v23 = vmax.f32 %v2028_v22, 0.0  ;;  %v2112_v24 = vmax.f32 %v2032_v47, 0.0  ;;  %4320 = vmatmul.mubr.msk.bf16.gmra.mrb[104].mxu0 %vm7230_vm4, %v4747_v46  ;;  %3801 = vmatprep.mubr.bf16.mxu1 %v7003_v18  ;;  %v4755_v33 = vld [vmem:[%s6904_s13 + $0x58] sm:$0xff]   ;;  %v4756_v46 = vld [vmem:[%s6906_s15 + $0x60] sm:$0xff]   ;;  %v4758_v4 = vld [vmem:[%s6906_s15 + $0x68] sm:$0xff]  }
 0x66b   : > { %v2113_v63 = vmax.f32 %v2034_v53, 0.0  ;;  %v1711_v56 = vpop.permute.xlu1 %1710  ;;  %v1716_v44 = vpop.permute.xlu0 %1715  ;;  %3060 = vmatprep.mubr.bf16.mxu0 %v7003_v18  ;;  %v4757_v41 = vld [vmem:[%s6904_s13 + $0x60] sm:$0xff]   ;;  %v4759_v48 = vld [vmem:[%s6904_s13 + $0x68] sm:$0xff]   ;;  %v4760_v11 = vld [vmem:[%s6906_s15 + $0x70] sm:$0xff]  }
 0x66c   : > { %4222 = vst [vmem:[%s5704_s21 + $0x390] sm:$0xff] %v2110_v38  ;;  %4223 = vst [vmem:[%s5704_s21 + $0x398] sm:$0xff] %v2111_v23  ;;  %v2036_v45 = vadd.f32 %v7231_v1, %v1711_v56  ;;  %v2038_v16 = vadd.f32 %v7232_v40, %v1711_v56  ;;  %v2042_v55 = vadd.f32 %v7233_v10, %v1716_v44  ;;  %v4761_v42 = vld [vmem:[%s6904_s13 + $0x70] sm:$0xff]   ;;  %v4762_v47 = vld [vmem:[%s6906_s15 + $0x78] sm:$0xff]  }
 0x66d   : > { %4224 = vst [vmem:[%s5704_s21 + $0x3a0] sm:$0xff] %v2112_v24  ;;  %4225 = vst [vmem:[%s5704_s21 + $0x3a8] sm:$0xff] %v2113_v63  ;;  %v2044_v9 = vadd.f32 %v7234_v61, %v1716_v44  ;;  %3532 = vperm.xlu1 %4547, %v3390_v21   ;;  %3537 = vperm.xlu0 %4516, %v3391_v43   ;;  %v4763_v15 = vld [vmem:[%s6904_s13 + $0x78] sm:$0xff]  }
 0x66e   : > { %v2114_v17 = vmax.f32 %v2036_v45, 0.0  ;;  %v2115_v28 = vmax.f32 %v2038_v16, 0.0  ;;  %v2116_v34 = vmax.f32 %v2042_v55, 0.0  ;;  %vm7254_vm4 = vmmov %vm7201_vm1 }
 0x66f   : > { %v2117_v26 = vmax.f32 %v2044_v9, 0.0  ;;  %v1721_v14 = vpop.permute.xlu1 %1720  ;;  %v1726_v13 = vpop.permute.xlu0 %1725 }
 0x670   : > { %4226 = vst [vmem:[%s5704_s21 + $0x3b0] sm:$0xff] %v2114_v17  ;;  %4227 = vst [vmem:[%s5704_s21 + $0x3b8] sm:$0xff] %v2115_v28  ;;  %4418 = vmatmul.mubr.msk.bf16.gmra.mrb[104].mxu1 %vm7235_vm13, %v4748_v5  ;;  %v2046_v29 = vadd.f32 %v7236_v7, %v1721_v14  ;;  %v2048_v58 = vadd.f32 %v7237_v37, %v1721_v14  ;;  %v2052_v35 = vadd.f32 %v7238_v62, %v1726_v13 }
 0x671   : > { %4228 = vst [vmem:[%s5704_s21 + $0x3c0] sm:$0xff] %v2116_v34  ;;  %4229 = vst [vmem:[%s5704_s21 + $0x3c8] sm:$0xff] %v2117_v26  ;;  %v2054_v20 = vadd.f32 %v7239_v6, %v1726_v13  ;;  %3542 = vperm.xlu1 %4547, %v3392_v49   ;;  %3547 = vperm.xlu0 %4516, %v3393_v54  }
 0x672   : > { %v2118_v36 = vmax.f32 %v2046_v29, 0.0  ;;  %v2119_v59 = vmax.f32 %v2048_v58, 0.0  ;;  %v2120_v2 = vmax.f32 %v2052_v35, 0.0  ;;  %4321 = vmatmul.mubr.msk.bf16.gmra.mrb[108].mxu0 %vm7240_vm12, %v4749_v3  ;;  %3811 = vmatprep.mubr.bf16.mxu1 %v7003_v18 }
 0x673   : > { %v2121_v31 = vmax.f32 %v2054_v20, 0.0  ;;  %v1731_v57 = vpop.permute.xlu1 %1730  ;;  %3070 = vmatprep.mubr.bf16.mxu0 %v7003_v18  ;;  %v2657_v22 = vpop.permute.xlu0 %2656 }
 0x674   : > { %4230 = vst [vmem:[%s5704_s21 + $0x3d0] sm:$0xff] %v2118_v36  ;;  %4231 = vst [vmem:[%s5704_s21 + $0x3d8] sm:$0xff] %v2119_v59  ;;  %v2056_v39 = vadd.f32 %v7241_v30, %v1731_v57  ;;  %v2058_v32 = vadd.f32 %v7242_v0, %v1731_v57 }
 0x675   : > { %4232 = vst [vmem:[%s5704_s21 + $0x3e0] sm:$0xff] %v2120_v2  ;;  %4233 = vst [vmem:[%s5704_s21 + $0x3e8] sm:$0xff] %v2121_v31  ;;  %3552 = vperm.xlu1 %4547, %v3394_v27  }
 0x676   : > { %v2122_v19 = vmax.f32 %v2056_v39, 0.0  ;;  %v2123_v51 = vmax.f32 %v2058_v32, 0.0 }
 0x677   : > { %v2662_v25 = vpop.permute.xlu1 %2661  ;;  %v6639_v53 = vpop.permute.xlu0 %2666 }
 0x678   : > { %4234 = vst [vmem:[%s5704_s21 + $0x3f0] sm:$0xff] %v2122_v19  ;;  %4235 = vst [vmem:[%s5704_s21 + $0x3f8] sm:$0xff] %v2123_v51  ;;  %4419 = vmatmul.mubr.msk.bf16.gmra.mrb[108].mxu1 %vm7243_vm7, %v4750_v52 }
 0x679   : > { %3821 = vmatprep.mubr.bf16.mxu1 %v7003_v18 }
 0x67a   : > { %4322 = vmatmul.mubr.msk.bf16.gmra.mrb[112].mxu0 %vm7244_vm14, %v4751_v8 }
 0x67b   : > { %3080 = vmatprep.mubr.bf16.mxu0 %v7003_v18  ;;  %v6641_v38 = vpop.permute.xlu1 %2671  ;;  %v6644_v23 = vpop.permute.xlu0 %2676 }
 0x67f   : > { %v6648_v24 = vpop.permute.xlu0 %2686 }
 0x680   : > { %4420 = vmatmul.mubr.msk.bf16.gmra.mrb[112].mxu1 %vm7245_vm5, %v4752_v50 }
 0x681   : > { %3831 = vmatprep.mubr.bf16.mxu1 %v7003_v18 }
 0x682   : > { %4323 = vmatmul.mubr.msk.bf16.gmra.mrb[116].mxu0 %vm7246_vm11, %v4753_v60 }
 0x683   : > { %3090 = vmatprep.mubr.bf16.mxu0 %v7003_v18  ;;  %v6652_v21 = vpop.permute.xlu0 %2696 }
 0x687   : > { %v6656_v56 = vpop.permute.xlu0 %2706 }
 0x688   : > { %4421 = vmatmul.mubr.msk.bf16.gmra.mrb[116].mxu1 %vm7247_vm3, %v4754_v12 }
 0x689   : > { %3841 = vmatprep.mubr.bf16.mxu1 %v7003_v18 }
 0x68a   : > { %4324 = vmatmul.mubr.msk.bf16.gmra.mrb[120].mxu0 %vm7201_vm1, %v4755_v33 }
 0x68b   : > { %3100 = vmatprep.mubr.bf16.mxu0 %v7003_v18  ;;  %v6660_v1 = vpop.permute.xlu0 %2716 }
 0x68f   : > { %v6664_v40 = vpop.permute.xlu0 %2726 }
 0x690   : > { %4422 = vmatmul.mubr.msk.bf16.gmra.mrb[120].mxu1 %vm7248_vm2, %v4756_v46 }
 0x691   : > { %3851 = vmatprep.mubr.bf16.mxu1 %v7003_v18 }
 0x692   : > { %4325 = vmatmul.mubr.msk.bf16.gmra.mrb[124].mxu0 %vm7249_vm10, %v4757_v41 }
 0x693   : > { %3110 = vmatprep.mubr.bf16.mxu0 %v7003_v18  ;;  %v6668_v10 = vpop.permute.xlu0 %2736 }
 0x697   : > { %v6672_v61 = vpop.permute.xlu0 %2746 }
 0x698   : > { %4423 = vmatmul.mubr.msk.bf16.gmra.mrb[124].mxu1 %vm7250_vm6, %v4758_v4 }
 0x699   : > { %3861 = vmatprep.mubr.bf16.mxu1 %v7003_v18 }
 0x69a   : > { %4326 = vmatmul.mubr.msk.bf16.gmra.mrb[128].mxu0 %vm7251_vm15, %v4759_v48 }
 0x69b   : > { %3120 = vmatprep.mubr.bf16.mxu0 %v7003_v18  ;;  %v6676_v5 = vpop.permute.xlu0 %2756 }
 0x69f   : > { %v6680_v17 = vpop.permute.xlu0 %2766 }
 0x6a0   : > { %4424 = vmatmul.mubr.msk.bf16.gmra.mrb[128].mxu1 %vm7252_vm9, %v4760_v11 }
 0x6a1   : > { %3871 = vmatprep.mubr.bf16.mxu1 %v7003_v18 }
 0x6a2   : > { %4327 = vmatmul.mubr.msk.bf16.gmra.mrb[132].mxu0 %vm7253_vm8, %v4761_v42 }
 0x6a3   : > { %3130 = vmatprep.mubr.bf16.mxu0 %v7003_v18  ;;  %v6646_v18 = vpop.permute.xlu1 %2681  ;;  %v6684_v34 = vpop.permute.xlu0 %2776 }
 0x6a7   : > { %v6650_v63 = vpop.permute.xlu1 %2691  ;;  %v6688_v54 = vpop.permute.xlu0 %2786 }
 0x6a8   : > { %4425 = vmatmul.mubr.msk.bf16.gmra.mrb[132].mxu1 %vm7225_vm0, %v4762_v47 }
 0x6aa   : > { %4328 = vmatmul.mubr.msk.bf16.gmra.mrb[136].mxu0 %vm7254_vm4, %v4763_v15 }
 0x6ab   : > { %v6654_v43 = vpop.permute.xlu1 %2701 }
 0x6ac   : > { %v6692_v14 = vpop.permute.xlu0 %2796 }
 0x6af   : > { %v6658_v44 = vpop.permute.xlu1 %2711 }
 0x6b0   : > { %v6696_v7 = vpop.permute.xlu0 %2806 }
 0x6b3   : > { %v6662_v45 = vpop.permute.xlu1 %2721 }
 0x6b4   : > { %v3398_v37 = vpop.permute.xlu0 %3397 }
 0x6b7   : > { %v6666_v16 = vpop.permute.xlu1 %2731 }
 0x6b8   : > { %v3408_v41 = vpop.permute.xlu0 %3407 }
 0x6bb   : > { %v6670_v55 = vpop.permute.xlu1 %2741 }
 0x6bf   : > { %v6674_v9 = vpop.permute.xlu1 %2751 }
 0x6c3   : > { %v6678_v49 = vpop.permute.xlu1 %2761 }
 0x6c7   : > { %v6682_v28 = vpop.permute.xlu1 %2771 }
 0x6cb   : > { %v6686_v26 = vpop.permute.xlu1 %2781 }
 0x6cf   : > { %v6690_v3 = vpop.permute.xlu1 %2791 }
 0x6d3   : > { %v6694_v13 = vpop.permute.xlu1 %2801 }
 0x6d7   : > { %v6698_v29 = vpop.permute.xlu1 %2811 }
 0x6db   : > { %v3403_v62 = vpop.permute.xlu1 %3402 }
 0x6df   : > { %v3413_v11 = vpop.permute.xlu1 %3412 }
 0x703   : > { %v3723_v58 = vpop.f32.mrb[72].mxu1 }
 0x704   : > { %v3724_v35 = vadd.f32 %v3723_v58, %v3398_v37  ;;  %v3725_v6 = vpop.f32.mrb[73].mxu1 }
 0x705   : > { %v3726_v20 = vadd.f32 %v3725_v6, %v3398_v37  ;;  %v2982_v36 = vpop.f32.mrb[76].mxu0  ;;  %v3727_v59 = vpop.f32.mrb[74].mxu1 }
 0x706   : > { %v3882_v2 = vmax.f32 %v3724_v35, 0.0  ;;  %v2983_v31 = vadd.f32 %v2982_v36, %v2657_v22  ;;  %v3728_v27 = vadd.f32 %v3727_v59, %v3403_v62  ;;  %v2984_v57 = vpop.f32.mrb[77].mxu0  ;;  %v3729_v30 = vpop.f32.mrb[75].mxu1 }
 0x707   : > { %v3883_v39 = vmax.f32 %v3726_v20, 0.0  ;;  %v2985_v0 = vadd.f32 %v2984_v57, %v2657_v22  ;;  %v3730_v32 = vadd.f32 %v3729_v30, %v3403_v62  ;;  %v2986_v52 = vpop.f32.mrb[78].mxu0 }
 0x708   : > { %4426 = vst [vmem:[%s5704_s21 + $0x600] sm:$0xff] %v3882_v2  ;;  %v3141_v19 = vmax.f32 %v2983_v31, 0.0  ;;  %v3884_v51 = vmax.f32 %v3728_v27, 0.0  ;;  %v2987_v8 = vadd.f32 %v2986_v52, %v2662_v25  ;;  %v2988_v50 = vpop.f32.mrb[79].mxu0  ;;  %v3418_v52 = vpop.permute.xlu0 %3417 }
 0x709   : > { %4427 = vst [vmem:[%s5704_s21 + $0x608] sm:$0xff] %v3883_v39  ;;  %v3142_v60 = vmax.f32 %v2985_v0, 0.0  ;;  %v3885_v12 = vmax.f32 %v3730_v32, 0.0  ;;  %v2989_v33 = vadd.f32 %v2988_v50, %v2662_v25 }
 0x70a   : > { %4329 = vst [vmem:[%s5704_s21 + $0x400] sm:$0xff] %v3141_v19  ;;  %4428 = vst [vmem:[%s5704_s21 + $0x610] sm:$0xff] %v3884_v51  ;;  %v3143_v46 = vmax.f32 %v2987_v8, 0.0  ;;  %v3423_v8 = vpop.permute.xlu1 %3422 }
 0x70b   : > { %4330 = vst [vmem:[%s5704_s21 + $0x408] sm:$0xff] %v3142_v60  ;;  %4429 = vst [vmem:[%s5704_s21 + $0x618] sm:$0xff] %v3885_v12  ;;  %v3144_v4 = vmax.f32 %v2989_v33, 0.0  ;;  %v3733_v48 = vpop.f32.mrb[76].mxu1 }
 0x70c   : > { %4331 = vst [vmem:[%s5704_s21 + $0x410] sm:$0xff] %v3143_v46  ;;  %v3734_v42 = vadd.f32 %v3733_v48, %v3408_v41  ;;  %v3735_v22 = vpop.f32.mrb[77].mxu1 }
 0x70d   : > { %4332 = vst [vmem:[%s5704_s21 + $0x418] sm:$0xff] %v3144_v4  ;;  %v3736_v47 = vadd.f32 %v3735_v22, %v3408_v41  ;;  %v2992_v15 = vpop.f32.mrb[80].mxu0  ;;  %v3737_v37 = vpop.f32.mrb[78].mxu1 }
 0x70e   : > { %v3886_v58 = vmax.f32 %v3734_v42, 0.0  ;;  %v2993_v25 = vadd.f32 %v2992_v15, %v6639_v53  ;;  %v3738_v62 = vadd.f32 %v3737_v37, %v3413_v11  ;;  %v2994_v35 = vpop.f32.mrb[81].mxu0  ;;  %v3739_v6 = vpop.f32.mrb[79].mxu1 }
 0x70f   : > { %v3887_v20 = vmax.f32 %v3736_v47, 0.0  ;;  %v2995_v36 = vadd.f32 %v2994_v35, %v6639_v53  ;;  %v3740_v59 = vadd.f32 %v3739_v6, %v3413_v11  ;;  %v2996_v2 = vpop.f32.mrb[82].mxu0 }
 0x710   : > { %4430 = vst [vmem:[%s5704_s21 + $0x620] sm:$0xff] %v3886_v58  ;;  %v3145_v31 = vmax.f32 %v2993_v25, 0.0  ;;  %v3888_v27 = vmax.f32 %v3738_v62, 0.0  ;;  %v2997_v57 = vadd.f32 %v2996_v2, %v6641_v38  ;;  %v2998_v30 = vpop.f32.mrb[83].mxu0 }
 0x711   : > { %4431 = vst [vmem:[%s5704_s21 + $0x628] sm:$0xff] %v3887_v20  ;;  %v3146_v39 = vmax.f32 %v2995_v36, 0.0  ;;  %v3889_v0 = vmax.f32 %v3740_v59, 0.0  ;;  %v2999_v32 = vadd.f32 %v2998_v30, %v6641_v38  ;;  %v3428_v36 = vpop.permute.xlu0 %3427 }
 0x712   : > { %4333 = vst [vmem:[%s5704_s21 + $0x420] sm:$0xff] %v3145_v31  ;;  %4432 = vst [vmem:[%s5704_s21 + $0x630] sm:$0xff] %v3888_v27  ;;  %v3147_v53 = vmax.f32 %v2997_v57, 0.0  ;;  %v3433_v31 = vpop.permute.xlu1 %3432 }
 0x713   : > { %4334 = vst [vmem:[%s5704_s21 + $0x428] sm:$0xff] %v3146_v39  ;;  %4433 = vst [vmem:[%s5704_s21 + $0x638] sm:$0xff] %v3889_v0  ;;  %v3148_v19 = vmax.f32 %v2999_v32, 0.0  ;;  %v3743_v51 = vpop.f32.mrb[80].mxu1 }
 0x714   : > { %4335 = vst [vmem:[%s5704_s21 + $0x430] sm:$0xff] %v3147_v53  ;;  %v3744_v50 = vadd.f32 %v3743_v51, %v3418_v52  ;;  %v3745_v60 = vpop.f32.mrb[81].mxu1 }
 0x715   : > { %4336 = vst [vmem:[%s5704_s21 + $0x438] sm:$0xff] %v3148_v19  ;;  %v3746_v12 = vadd.f32 %v3745_v60, %v3418_v52  ;;  %v3002_v33 = vpop.f32.mrb[84].mxu0  ;;  %v3747_v46 = vpop.f32.mrb[82].mxu1 }
 0x716   : > { %v3890_v41 = vmax.f32 %v3744_v50, 0.0  ;;  %v3003_v38 = vadd.f32 %v3002_v33, %v6644_v23  ;;  %v3748_v4 = vadd.f32 %v3747_v46, %v3423_v8  ;;  %v3004_v48 = vpop.f32.mrb[85].mxu0  ;;  %v3749_v11 = vpop.f32.mrb[83].mxu1 }
 0x717   : > { %v3891_v42 = vmax.f32 %v3746_v12, 0.0  ;;  %v3005_v22 = vadd.f32 %v3004_v48, %v6644_v23  ;;  %v3750_v47 = vadd.f32 %v3749_v11, %v3423_v8  ;;  %v3006_v15 = vpop.f32.mrb[86].mxu0  ;;  %v3438_v11 = vpop.permute.xlu0 %3437 }
 0x718   : > { %4434 = vst [vmem:[%s5704_s21 + $0x640] sm:$0xff] %v3890_v41  ;;  %v3149_v37 = vmax.f32 %v3003_v38, 0.0  ;;  %v3892_v58 = vmax.f32 %v3748_v4, 0.0  ;;  %v3007_v25 = vadd.f32 %v3006_v15, %v6646_v18  ;;  %v3008_v62 = vpop.f32.mrb[87].mxu0 }
 0x719   : > { %4435 = vst [vmem:[%s5704_s21 + $0x648] sm:$0xff] %v3891_v42  ;;  %v3150_v35 = vmax.f32 %v3005_v22, 0.0  ;;  %v3893_v6 = vmax.f32 %v3750_v47, 0.0  ;;  %v3009_v20 = vadd.f32 %v3008_v62, %v6646_v18  ;;  %v3443_v47 = vpop.permute.xlu1 %3442 }
 0x71a   : > { %4337 = vst [vmem:[%s5704_s21 + $0x440] sm:$0xff] %v3149_v37  ;;  %4436 = vst [vmem:[%s5704_s21 + $0x650] sm:$0xff] %v3892_v58  ;;  %v3151_v23 = vmax.f32 %v3007_v25, 0.0 }
 0x71b   : > { %4338 = vst [vmem:[%s5704_s21 + $0x448] sm:$0xff] %v3150_v35  ;;  %4437 = vst [vmem:[%s5704_s21 + $0x658] sm:$0xff] %v3893_v6  ;;  %v3152_v59 = vmax.f32 %v3009_v20, 0.0  ;;  %v3753_v2 = vpop.f32.mrb[84].mxu1 }
 0x71c   : > { %4339 = vst [vmem:[%s5704_s21 + $0x450] sm:$0xff] %v3151_v23  ;;  %v3754_v27 = vadd.f32 %v3753_v2, %v3428_v36  ;;  %v3755_v57 = vpop.f32.mrb[85].mxu1 }
 0x71d   : > { %4340 = vst [vmem:[%s5704_s21 + $0x458] sm:$0xff] %v3152_v59  ;;  %v3756_v30 = vadd.f32 %v3755_v57, %v3428_v36  ;;  %v3012_v39 = vpop.f32.mrb[88].mxu0  ;;  %v3757_v0 = vpop.f32.mrb[86].mxu1 }
 0x71e   : > { %v3894_v32 = vmax.f32 %v3754_v27, 0.0  ;;  %v3013_v18 = vadd.f32 %v3012_v39, %v6648_v24  ;;  %v3758_v53 = vadd.f32 %v3757_v0, %v3433_v31  ;;  %v3014_v52 = vpop.f32.mrb[89].mxu0  ;;  %v3759_v19 = vpop.f32.mrb[87].mxu1 }
 0x71f   : > { %v3895_v51 = vmax.f32 %v3756_v30, 0.0  ;;  %v3015_v8 = vadd.f32 %v3014_v52, %v6648_v24  ;;  %v3760_v50 = vadd.f32 %v3759_v19, %v3433_v31  ;;  %v3016_v60 = vpop.f32.mrb[90].mxu0 }
 0x720   : > { %4438 = vst [vmem:[%s5704_s21 + $0x660] sm:$0xff] %v3894_v32  ;;  %v3153_v12 = vmax.f32 %v3013_v18, 0.0  ;;  %v3896_v33 = vmax.f32 %v3758_v53, 0.0  ;;  %v3017_v46 = vadd.f32 %v3016_v60, %v6650_v63  ;;  %v3018_v41 = vpop.f32.mrb[91].mxu0  ;;  %v3448_v53 = vpop.permute.xlu0 %3447 }
 0x721   : > { %4439 = vst [vmem:[%s5704_s21 + $0x668] sm:$0xff] %v3895_v51  ;;  %v3154_v38 = vmax.f32 %v3015_v8, 0.0  ;;  %v3897_v4 = vmax.f32 %v3760_v50, 0.0  ;;  %v3019_v48 = vadd.f32 %v3018_v41, %v6650_v63  ;;  %v3453_v51 = vpop.permute.xlu1 %3452 }
 0x722   : > { %4341 = vst [vmem:[%s5704_s21 + $0x460] sm:$0xff] %v3153_v12  ;;  %4440 = vst [vmem:[%s5704_s21 + $0x670] sm:$0xff] %v3896_v33  ;;  %v3155_v24 = vmax.f32 %v3017_v46, 0.0 }
 0x723   : > { %4342 = vst [vmem:[%s5704_s21 + $0x468] sm:$0xff] %v3154_v38  ;;  %4441 = vst [vmem:[%s5704_s21 + $0x678] sm:$0xff] %v3897_v4  ;;  %v3156_v42 = vmax.f32 %v3019_v48, 0.0  ;;  %v3763_v22 = vpop.f32.mrb[88].mxu1 }
 0x724   : > { %4343 = vst [vmem:[%s5704_s21 + $0x470] sm:$0xff] %v3155_v24  ;;  %v3764_v15 = vadd.f32 %v3763_v22, %v3438_v11  ;;  %v3765_v37 = vpop.f32.mrb[89].mxu1 }
 0x725   : > { %4344 = vst [vmem:[%s5704_s21 + $0x478] sm:$0xff] %v3156_v42  ;;  %v3766_v58 = vadd.f32 %v3765_v37, %v3438_v11  ;;  %v3022_v25 = vpop.f32.mrb[92].mxu0  ;;  %v3767_v62 = vpop.f32.mrb[90].mxu1 }
 0x726   : > { %v3898_v35 = vmax.f32 %v3764_v15, 0.0  ;;  %v3023_v63 = vadd.f32 %v3022_v25, %v6652_v21  ;;  %v3768_v6 = vadd.f32 %v3767_v62, %v3443_v47  ;;  %v3024_v20 = vpop.f32.mrb[93].mxu0  ;;  %v3769_v23 = vpop.f32.mrb[91].mxu1 }
 0x727   : > { %v3899_v36 = vmax.f32 %v3766_v58, 0.0  ;;  %v3025_v59 = vadd.f32 %v3024_v20, %v6652_v21  ;;  %v3770_v2 = vadd.f32 %v3769_v23, %v3443_v47  ;;  %v3026_v31 = vpop.f32.mrb[94].mxu0  ;;  %v3463_v20 = vpop.permute.xlu1 %3462 }
 0x728   : > { %4442 = vst [vmem:[%s5704_s21 + $0x680] sm:$0xff] %v3898_v35  ;;  %v3157_v27 = vmax.f32 %v3023_v63, 0.0  ;;  %v3900_v57 = vmax.f32 %v3768_v6, 0.0  ;;  %v3027_v30 = vadd.f32 %v3026_v31, %v6654_v43  ;;  %v3028_v39 = vpop.f32.mrb[95].mxu0  ;;  %v3458_v35 = vpop.permute.xlu0 %3457 }
 0x729   : > { %4443 = vst [vmem:[%s5704_s21 + $0x688] sm:$0xff] %v3899_v36  ;;  %v3158_v0 = vmax.f32 %v3025_v59, 0.0  ;;  %v3901_v32 = vmax.f32 %v3770_v2, 0.0  ;;  %v3029_v18 = vadd.f32 %v3028_v39, %v6654_v43 }
 0x72a   : > { %4345 = vst [vmem:[%s5704_s21 + $0x480] sm:$0xff] %v3157_v27  ;;  %4444 = vst [vmem:[%s5704_s21 + $0x690] sm:$0xff] %v3900_v57  ;;  %v3159_v21 = vmax.f32 %v3027_v30, 0.0 }
 0x72b   : > { %4346 = vst [vmem:[%s5704_s21 + $0x488] sm:$0xff] %v3158_v0  ;;  %4445 = vst [vmem:[%s5704_s21 + $0x698] sm:$0xff] %v3901_v32  ;;  %v3160_v52 = vmax.f32 %v3029_v18, 0.0  ;;  %v3773_v19 = vpop.f32.mrb[92].mxu1 }
 0x72c   : > { %4347 = vst [vmem:[%s5704_s21 + $0x490] sm:$0xff] %v3159_v21  ;;  %v3774_v8 = vadd.f32 %v3773_v19, %v3448_v53  ;;  %v3775_v50 = vpop.f32.mrb[93].mxu1 }
 0x72d   : > { %4348 = vst [vmem:[%s5704_s21 + $0x498] sm:$0xff] %v3160_v52  ;;  %v3776_v60 = vadd.f32 %v3775_v50, %v3448_v53  ;;  %v3032_v12 = vpop.f32.mrb[96].mxu0  ;;  %v3777_v33 = vpop.f32.mrb[94].mxu1 }
 0x72e   : > { %v3902_v46 = vmax.f32 %v3774_v8, 0.0  ;;  %v3033_v43 = vadd.f32 %v3032_v12, %v6656_v56  ;;  %v3778_v41 = vadd.f32 %v3777_v33, %v3453_v51  ;;  %v3034_v38 = vpop.f32.mrb[97].mxu0  ;;  %v3779_v4 = vpop.f32.mrb[95].mxu1 }
 0x72f   : > { %v3903_v48 = vmax.f32 %v3776_v60, 0.0  ;;  %v3035_v24 = vadd.f32 %v3034_v38, %v6656_v56  ;;  %v3780_v11 = vadd.f32 %v3779_v4, %v3453_v51  ;;  %v3036_v42 = vpop.f32.mrb[98].mxu0  ;;  %v3468_v12 = vpop.permute.xlu0 %3467 }
 0x730   : > { %4446 = vst [vmem:[%s5704_s21 + $0x6a0] sm:$0xff] %v3902_v46  ;;  %v3161_v22 = vmax.f32 %v3033_v43, 0.0  ;;  %v3904_v47 = vmax.f32 %v3778_v41, 0.0  ;;  %v3037_v15 = vadd.f32 %v3036_v42, %v6658_v44  ;;  %v3038_v37 = vpop.f32.mrb[99].mxu0  ;;  %v3473_v43 = vpop.permute.xlu1 %3472 }
 0x731   : > { %4447 = vst [vmem:[%s5704_s21 + $0x6a8] sm:$0xff] %v3903_v48  ;;  %v3162_v58 = vmax.f32 %v3035_v24, 0.0  ;;  %v3905_v25 = vmax.f32 %v3780_v11, 0.0  ;;  %v3039_v62 = vadd.f32 %v3038_v37, %v6658_v44 }
 0x732   : > { %4349 = vst [vmem:[%s5704_s21 + $0x4a0] sm:$0xff] %v3161_v22  ;;  %4448 = vst [vmem:[%s5704_s21 + $0x6b0] sm:$0xff] %v3904_v47  ;;  %v3163_v56 = vmax.f32 %v3037_v15, 0.0 }
 0x733   : > { %4350 = vst [vmem:[%s5704_s21 + $0x4a8] sm:$0xff] %v3162_v58  ;;  %4449 = vst [vmem:[%s5704_s21 + $0x6b8] sm:$0xff] %v3905_v25  ;;  %v3164_v63 = vmax.f32 %v3039_v62, 0.0  ;;  %v3783_v6 = vpop.f32.mrb[96].mxu1 }
 0x734   : > { %4351 = vst [vmem:[%s5704_s21 + $0x4b0] sm:$0xff] %v3163_v56  ;;  %v3784_v23 = vadd.f32 %v3783_v6, %v3458_v35  ;;  %v3785_v36 = vpop.f32.mrb[97].mxu1 }
 0x735   : > { %4352 = vst [vmem:[%s5704_s21 + $0x4b8] sm:$0xff] %v3164_v63  ;;  %v3786_v59 = vadd.f32 %v3785_v36, %v3458_v35  ;;  %v3042_v2 = vpop.f32.mrb[100].mxu0  ;;  %v3787_v31 = vpop.f32.mrb[98].mxu1 }
 0x736   : > { %v3906_v27 = vmax.f32 %v3784_v23, 0.0  ;;  %v3043_v44 = vadd.f32 %v3042_v2, %v6660_v1  ;;  %v3788_v57 = vadd.f32 %v3787_v31, %v3463_v20  ;;  %v3044_v30 = vpop.f32.mrb[101].mxu0  ;;  %v3789_v39 = vpop.f32.mrb[99].mxu1 }
 0x737   : > { %v3907_v0 = vmax.f32 %v3786_v59, 0.0  ;;  %v3045_v32 = vadd.f32 %v3044_v30, %v6660_v1  ;;  %v3790_v18 = vadd.f32 %v3789_v39, %v3463_v20  ;;  %v3046_v21 = vpop.f32.mrb[102].mxu0  ;;  %v3478_v36 = vpop.permute.xlu0 %3477 }
 0x738   : > { %4450 = vst [vmem:[%s5704_s21 + $0x6c0] sm:$0xff] %v3906_v27  ;;  %v3165_v53 = vmax.f32 %v3043_v44, 0.0  ;;  %v3908_v52 = vmax.f32 %v3788_v57, 0.0  ;;  %v3047_v19 = vadd.f32 %v3046_v21, %v6662_v45  ;;  %v3048_v51 = vpop.f32.mrb[103].mxu0  ;;  %v3483_v31 = vpop.permute.xlu1 %3482 }
 0x739   : > { %4451 = vst [vmem:[%s5704_s21 + $0x6c8] sm:$0xff] %v3907_v0  ;;  %v3166_v8 = vmax.f32 %v3045_v32, 0.0  ;;  %v3909_v50 = vmax.f32 %v3790_v18, 0.0  ;;  %v3049_v60 = vadd.f32 %v3048_v51, %v6662_v45 }
 0x73a   : > { %4353 = vst [vmem:[%s5704_s21 + $0x4c0] sm:$0xff] %v3165_v53  ;;  %4452 = vst [vmem:[%s5704_s21 + $0x6d0] sm:$0xff] %v3908_v52  ;;  %v3167_v1 = vmax.f32 %v3047_v19, 0.0 }
 0x73b   : > { %4354 = vst [vmem:[%s5704_s21 + $0x4c8] sm:$0xff] %v3166_v8  ;;  %4453 = vst [vmem:[%s5704_s21 + $0x6d8] sm:$0xff] %v3909_v50  ;;  %v3168_v33 = vmax.f32 %v3049_v60, 0.0  ;;  %v3793_v46 = vpop.f32.mrb[100].mxu1 }
 0x73c   : > { %4355 = vst [vmem:[%s5704_s21 + $0x4d0] sm:$0xff] %v3167_v1  ;;  %v3794_v41 = vadd.f32 %v3793_v46, %v3468_v12  ;;  %v3795_v38 = vpop.f32.mrb[101].mxu1 }
 0x73d   : > { %4356 = vst [vmem:[%s5704_s21 + $0x4d8] sm:$0xff] %v3168_v33  ;;  %v3796_v4 = vadd.f32 %v3795_v38, %v3468_v12  ;;  %v3052_v48 = vpop.f32.mrb[104].mxu0  ;;  %v3797_v24 = vpop.f32.mrb[102].mxu1 }
 0x73e   : > { %v3910_v11 = vmax.f32 %v3794_v41, 0.0  ;;  %v3053_v45 = vadd.f32 %v3052_v48, %v6664_v40  ;;  %v3798_v42 = vadd.f32 %v3797_v24, %v3473_v43  ;;  %v3054_v22 = vpop.f32.mrb[105].mxu0  ;;  %v3799_v47 = vpop.f32.mrb[103].mxu1 }
 0x73f   : > { %v3911_v15 = vmax.f32 %v3796_v4, 0.0  ;;  %v3055_v37 = vadd.f32 %v3054_v22, %v6664_v40  ;;  %v3800_v58 = vadd.f32 %v3799_v47, %v3473_v43  ;;  %v3056_v25 = vpop.f32.mrb[106].mxu0  ;;  %v3488_v43 = vpop.permute.xlu0 %3487 }
 0x740   : > { %4454 = vst [vmem:[%s5704_s21 + $0x6e0] sm:$0xff] %v3910_v11  ;;  %v3169_v62 = vmax.f32 %v3053_v45, 0.0  ;;  %v3912_v56 = vmax.f32 %v3798_v42, 0.0  ;;  %v3057_v35 = vadd.f32 %v3056_v25, %v6666_v16  ;;  %v3058_v63 = vpop.f32.mrb[107].mxu0  ;;  %v3493_v4 = vpop.permute.xlu1 %3492 }
 0x741   : > { %4455 = vst [vmem:[%s5704_s21 + $0x6e8] sm:$0xff] %v3911_v15  ;;  %v3170_v6 = vmax.f32 %v3055_v37, 0.0  ;;  %v3913_v20 = vmax.f32 %v3800_v58, 0.0  ;;  %v3059_v23 = vadd.f32 %v3058_v63, %v6666_v16 }
 0x742   : > { %4357 = vst [vmem:[%s5704_s21 + $0x4e0] sm:$0xff] %v3169_v62  ;;  %4456 = vst [vmem:[%s5704_s21 + $0x6f0] sm:$0xff] %v3912_v56  ;;  %v3171_v40 = vmax.f32 %v3057_v35, 0.0 }
 0x743   : > { %4358 = vst [vmem:[%s5704_s21 + $0x4e8] sm:$0xff] %v3170_v6  ;;  %4457 = vst [vmem:[%s5704_s21 + $0x6f8] sm:$0xff] %v3913_v20  ;;  %v3172_v59 = vmax.f32 %v3059_v23, 0.0  ;;  %v3803_v2 = vpop.f32.mrb[104].mxu1 }
 0x744   : > { %4359 = vst [vmem:[%s5704_s21 + $0x4f0] sm:$0xff] %v3171_v40  ;;  %v3804_v27 = vadd.f32 %v3803_v2, %v3478_v36  ;;  %v3805_v44 = vpop.f32.mrb[105].mxu1 }
 0x745   : > { %4360 = vst [vmem:[%s5704_s21 + $0x4f8] sm:$0xff] %v3172_v59  ;;  %v3806_v57 = vadd.f32 %v3805_v44, %v3478_v36  ;;  %v3062_v30 = vpop.f32.mrb[108].mxu0  ;;  %v3807_v39 = vpop.f32.mrb[106].mxu1 }
 0x746   : > { %v3914_v0 = vmax.f32 %v3804_v27, 0.0  ;;  %v3063_v16 = vadd.f32 %v3062_v30, %v6668_v10  ;;  %v3808_v32 = vadd.f32 %v3807_v39, %v3483_v31  ;;  %v3064_v18 = vpop.f32.mrb[109].mxu0  ;;  %v3809_v21 = vpop.f32.mrb[107].mxu1 }
 0x747   : > { %v3915_v53 = vmax.f32 %v3806_v57, 0.0  ;;  %v3065_v52 = vadd.f32 %v3064_v18, %v6668_v10  ;;  %v3810_v19 = vadd.f32 %v3809_v21, %v3483_v31  ;;  %v3066_v51 = vpop.f32.mrb[110].mxu0  ;;  %v3498_v59 = vpop.permute.xlu0 %3497 }
 0x748   : > { %4458 = vst [vmem:[%s5704_s21 + $0x700] sm:$0xff] %v3914_v0  ;;  %v3173_v8 = vmax.f32 %v3063_v16, 0.0  ;;  %v3916_v50 = vmax.f32 %v3808_v32, 0.0  ;;  %v3067_v60 = vadd.f32 %v3066_v51, %v6670_v55  ;;  %v3068_v1 = vpop.f32.mrb[111].mxu0  ;;  %v3503_v27 = vpop.permute.xlu1 %3502 }
 0x749   : > { %4459 = vst [vmem:[%s5704_s21 + $0x708] sm:$0xff] %v3915_v53  ;;  %v3174_v12 = vmax.f32 %v3065_v52, 0.0  ;;  %v3917_v33 = vmax.f32 %v3810_v19, 0.0  ;;  %v3069_v46 = vadd.f32 %v3068_v1, %v6670_v55 }
 0x74a   : > { %4361 = vst [vmem:[%s5704_s21 + $0x500] sm:$0xff] %v3173_v8  ;;  %4460 = vst [vmem:[%s5704_s21 + $0x710] sm:$0xff] %v3916_v50  ;;  %v3175_v10 = vmax.f32 %v3067_v60, 0.0 }
 0x74b   : > { %4362 = vst [vmem:[%s5704_s21 + $0x508] sm:$0xff] %v3174_v12  ;;  %4461 = vst [vmem:[%s5704_s21 + $0x718] sm:$0xff] %v3917_v33  ;;  %v3176_v41 = vmax.f32 %v3069_v46, 0.0  ;;  %v3813_v38 = vpop.f32.mrb[108].mxu1 }
 0x74c   : > { %4363 = vst [vmem:[%s5704_s21 + $0x510] sm:$0xff] %v3175_v10  ;;  %v3814_v48 = vadd.f32 %v3813_v38, %v3488_v43  ;;  %v3815_v24 = vpop.f32.mrb[109].mxu1  ;;  %v3508_v10 = vpop.permute.xlu0 %3507 }
 0x74d   : > { %4364 = vst [vmem:[%s5704_s21 + $0x518] sm:$0xff] %v3176_v41  ;;  %v3816_v11 = vadd.f32 %v3815_v24, %v3488_v43  ;;  %v3072_v45 = vpop.f32.mrb[112].mxu0  ;;  %v3817_v42 = vpop.f32.mrb[110].mxu1 }
 0x74e   : > { %v3918_v22 = vmax.f32 %v3814_v48, 0.0  ;;  %v3073_v55 = vadd.f32 %v3072_v45, %v6672_v61  ;;  %v3818_v47 = vadd.f32 %v3817_v42, %v3493_v4  ;;  %v3074_v15 = vpop.f32.mrb[113].mxu0  ;;  %v3819_v37 = vpop.f32.mrb[111].mxu1 }
 0x74f   : > { %v3919_v58 = vmax.f32 %v3816_v11, 0.0  ;;  %v3075_v25 = vadd.f32 %v3074_v15, %v6672_v61  ;;  %v3820_v62 = vadd.f32 %v3819_v37, %v3493_v4  ;;  %v3076_v56 = vpop.f32.mrb[114].mxu0  ;;  %v3513_v38 = vpop.permute.xlu1 %3512 }
 0x750   : > { %4462 = vst [vmem:[%s5704_s21 + $0x720] sm:$0xff] %v3918_v22  ;;  %v3177_v35 = vmax.f32 %v3073_v55, 0.0  ;;  %v3920_v63 = vmax.f32 %v3818_v47, 0.0  ;;  %v3077_v6 = vadd.f32 %v3076_v56, %v6674_v9  ;;  %v3078_v20 = vpop.f32.mrb[115].mxu0 }
 0x751   : > { %4463 = vst [vmem:[%s5704_s21 + $0x728] sm:$0xff] %v3919_v58  ;;  %v3178_v23 = vmax.f32 %v3075_v25, 0.0  ;;  %v3921_v40 = vmax.f32 %v3820_v62, 0.0  ;;  %v3079_v36 = vadd.f32 %v3078_v20, %v6674_v9 }
 0x752   : > { %4365 = vst [vmem:[%s5704_s21 + $0x520] sm:$0xff] %v3177_v35  ;;  %4464 = vst [vmem:[%s5704_s21 + $0x730] sm:$0xff] %v3920_v63  ;;  %v3179_v61 = vmax.f32 %v3077_v6, 0.0 }
 0x753   : > { %4366 = vst [vmem:[%s5704_s21 + $0x528] sm:$0xff] %v3178_v23  ;;  %4465 = vst [vmem:[%s5704_s21 + $0x738] sm:$0xff] %v3921_v40  ;;  %v3180_v2 = vmax.f32 %v3079_v36, 0.0  ;;  %v3823_v31 = vpop.f32.mrb[112].mxu1  ;;  %v3518_v40 = vpop.permute.xlu0 %3517 }
 0x754   : > { %4367 = vst [vmem:[%s5704_s21 + $0x530] sm:$0xff] %v3179_v61  ;;  %v3824_v44 = vadd.f32 %v3823_v31, %v3498_v59  ;;  %v3825_v57 = vpop.f32.mrb[113].mxu1 }
 0x755   : > { %4368 = vst [vmem:[%s5704_s21 + $0x538] sm:$0xff] %v3180_v2  ;;  %v3826_v30 = vadd.f32 %v3825_v57, %v3498_v59  ;;  %v3082_v39 = vpop.f32.mrb[116].mxu0  ;;  %v3827_v0 = vpop.f32.mrb[114].mxu1 }
 0x756   : > { %v3922_v16 = vmax.f32 %v3824_v44, 0.0  ;;  %v3083_v9 = vadd.f32 %v3082_v39, %v6676_v5  ;;  %v3828_v32 = vadd.f32 %v3827_v0, %v3503_v27  ;;  %v3084_v18 = vpop.f32.mrb[117].mxu0  ;;  %v3829_v21 = vpop.f32.mrb[115].mxu1 }
 0x757   : > { %v3923_v53 = vmax.f32 %v3826_v30, 0.0  ;;  %v3085_v52 = vadd.f32 %v3084_v18, %v6676_v5  ;;  %v3830_v19 = vadd.f32 %v3829_v21, %v3503_v27  ;;  %v3086_v51 = vpop.f32.mrb[118].mxu0  ;;  %v3523_v59 = vpop.permute.xlu1 %3522 }
 0x758   : > { %4466 = vst [vmem:[%s5704_s21 + $0x740] sm:$0xff] %v3922_v16  ;;  %v3181_v8 = vmax.f32 %v3083_v9, 0.0  ;;  %v3924_v50 = vmax.f32 %v3828_v32, 0.0  ;;  %v3087_v60 = vadd.f32 %v3086_v51, %v6678_v49  ;;  %v3088_v1 = vpop.f32.mrb[119].mxu0 }
 0x759   : > { %4467 = vst [vmem:[%s5704_s21 + $0x748] sm:$0xff] %v3923_v53  ;;  %v3182_v12 = vmax.f32 %v3085_v52, 0.0  ;;  %v3925_v33 = vmax.f32 %v3830_v19, 0.0  ;;  %v3089_v46 = vadd.f32 %v3088_v1, %v6678_v49  ;;  %v3528_v1 = vpop.permute.xlu0 %3527 }
 0x75a   : > { %4369 = vst [vmem:[%s5704_s21 + $0x540] sm:$0xff] %v3181_v8  ;;  %4468 = vst [vmem:[%s5704_s21 + $0x750] sm:$0xff] %v3924_v50  ;;  %v3183_v5 = vmax.f32 %v3087_v60, 0.0 }
 0x75b   : > { %4370 = vst [vmem:[%s5704_s21 + $0x548] sm:$0xff] %v3182_v12  ;;  %4469 = vst [vmem:[%s5704_s21 + $0x758] sm:$0xff] %v3925_v33  ;;  %v3184_v43 = vmax.f32 %v3089_v46, 0.0  ;;  %v3833_v41 = vpop.f32.mrb[116].mxu1  ;;  %v3533_v46 = vpop.permute.xlu1 %3532 }
 0x75c   : > { %4371 = vst [vmem:[%s5704_s21 + $0x550] sm:$0xff] %v3183_v5  ;;  %v3834_v4 = vadd.f32 %v3833_v41, %v3508_v10  ;;  %v3835_v48 = vpop.f32.mrb[117].mxu1 }
 0x75d   : > { %4372 = vst [vmem:[%s5704_s21 + $0x558] sm:$0xff] %v3184_v43  ;;  %v3836_v24 = vadd.f32 %v3835_v48, %v3508_v10  ;;  %v3092_v11 = vpop.f32.mrb[120].mxu0  ;;  %v3837_v45 = vpop.f32.mrb[118].mxu1 }
 0x75e   : > { %v3926_v42 = vmax.f32 %v3834_v4, 0.0  ;;  %v3093_v49 = vadd.f32 %v3092_v11, %v6680_v17  ;;  %v3838_v22 = vadd.f32 %v3837_v45, %v3513_v38  ;;  %v3094_v55 = vpop.f32.mrb[121].mxu0  ;;  %v3839_v47 = vpop.f32.mrb[119].mxu1 }
 0x75f   : > { %v3927_v15 = vmax.f32 %v3836_v24, 0.0  ;;  %v3095_v37 = vadd.f32 %v3094_v55, %v6680_v17  ;;  %v3840_v58 = vadd.f32 %v3839_v47, %v3513_v38  ;;  %v3096_v25 = vpop.f32.mrb[122].mxu0 }
 0x760   : > { %4470 = vst [vmem:[%s5704_s21 + $0x760] sm:$0xff] %v3926_v42  ;;  %v3185_v62 = vmax.f32 %v3093_v49, 0.0  ;;  %v3928_v56 = vmax.f32 %v3838_v22, 0.0  ;;  %v3097_v35 = vadd.f32 %v3096_v25, %v6682_v28  ;;  %v3098_v63 = vpop.f32.mrb[123].mxu0 }
 0x761   : > { %4471 = vst [vmem:[%s5704_s21 + $0x768] sm:$0xff] %v3927_v15  ;;  %v3186_v6 = vmax.f32 %v3095_v37, 0.0  ;;  %v3929_v20 = vmax.f32 %v3840_v58, 0.0  ;;  %v3099_v23 = vadd.f32 %v3098_v63, %v6682_v28 }
 0x762   : > { %4373 = vst [vmem:[%s5704_s21 + $0x560] sm:$0xff] %v3185_v62  ;;  %4472 = vst [vmem:[%s5704_s21 + $0x770] sm:$0xff] %v3928_v56  ;;  %v3187_v17 = vmax.f32 %v3097_v35, 0.0  ;;  %v3538_v56 = vpop.permute.xlu0 %3537 }
 0x763   : > { %4374 = vst [vmem:[%s5704_s21 + $0x568] sm:$0xff] %v3186_v6  ;;  %4473 = vst [vmem:[%s5704_s21 + $0x778] sm:$0xff] %v3929_v20  ;;  %v3188_v36 = vmax.f32 %v3099_v23, 0.0  ;;  %v3843_v61 = vpop.f32.mrb[120].mxu1  ;;  %v3543_v6 = vpop.permute.xlu1 %3542 }
 0x764   : > { %4375 = vst [vmem:[%s5704_s21 + $0x570] sm:$0xff] %v3187_v17  ;;  %v3844_v2 = vadd.f32 %v3843_v61, %v3518_v40  ;;  %v3845_v31 = vpop.f32.mrb[121].mxu1 }
 0x765   : > { %4376 = vst [vmem:[%s5704_s21 + $0x578] sm:$0xff] %v3188_v36  ;;  %v3846_v27 = vadd.f32 %v3845_v31, %v3518_v40  ;;  %v3102_v44 = vpop.f32.mrb[124].mxu0  ;;  %v3847_v57 = vpop.f32.mrb[122].mxu1 }
 0x766   : > { %v3930_v30 = vmax.f32 %v3844_v2, 0.0  ;;  %v3103_v28 = vadd.f32 %v3102_v44, %v6684_v34  ;;  %v3848_v39 = vadd.f32 %v3847_v57, %v3523_v59  ;;  %v3104_v0 = vpop.f32.mrb[125].mxu0  ;;  %v3849_v16 = vpop.f32.mrb[123].mxu1 }
 0x767   : > { %v3931_v9 = vmax.f32 %v3846_v27, 0.0  ;;  %v3105_v32 = vadd.f32 %v3104_v0, %v6684_v34  ;;  %v3850_v18 = vadd.f32 %v3849_v16, %v3523_v59  ;;  %v3106_v21 = vpop.f32.mrb[126].mxu0 }
 0x768   : > { %4474 = vst [vmem:[%s5704_s21 + $0x780] sm:$0xff] %v3930_v30  ;;  %v3189_v53 = vmax.f32 %v3103_v28, 0.0  ;;  %v3932_v52 = vmax.f32 %v3848_v39, 0.0  ;;  %v3107_v19 = vadd.f32 %v3106_v21, %v6686_v26  ;;  %v3108_v51 = vpop.f32.mrb[127].mxu0  ;;  %v3548_v21 = vpop.permute.xlu0 %3547 }
 0x769   : > { %4475 = vst [vmem:[%s5704_s21 + $0x788] sm:$0xff] %v3931_v9  ;;  %v3190_v8 = vmax.f32 %v3105_v32, 0.0  ;;  %v3933_v50 = vmax.f32 %v3850_v18, 0.0  ;;  %v3109_v60 = vadd.f32 %v3108_v51, %v6686_v26 }
 0x76a   : > { %4377 = vst [vmem:[%s5704_s21 + $0x580] sm:$0xff] %v3189_v53  ;;  %4476 = vst [vmem:[%s5704_s21 + $0x790] sm:$0xff] %v3932_v52  ;;  %v3191_v34 = vmax.f32 %v3107_v19, 0.0  ;;  %v3553_v19 = vpop.permute.xlu1 %3552 }
 0x76b   : > { %4378 = vst [vmem:[%s5704_s21 + $0x588] sm:$0xff] %v3190_v8  ;;  %4477 = vst [vmem:[%s5704_s21 + $0x798] sm:$0xff] %v3933_v50  ;;  %v3192_v12 = vmax.f32 %v3109_v60, 0.0  ;;  %v3853_v33 = vpop.f32.mrb[124].mxu1 }
 0x76c   : > { %4379 = vst [vmem:[%s5704_s21 + $0x590] sm:$0xff] %v3191_v34  ;;  %v3854_v5 = vadd.f32 %v3853_v33, %v3528_v1  ;;  %v3855_v10 = vpop.f32.mrb[125].mxu1 }
 0x76d   : > { %4380 = vst [vmem:[%s5704_s21 + $0x598] sm:$0xff] %v3192_v12  ;;  %v3856_v43 = vadd.f32 %v3855_v10, %v3528_v1  ;;  %v3112_v41 = vpop.f32.mrb[128].mxu0  ;;  %v3857_v38 = vpop.f32.mrb[126].mxu1 }
 0x76e   : > { %v3934_v4 = vmax.f32 %v3854_v5, 0.0  ;;  %v3113_v26 = vadd.f32 %v3112_v41, %v6688_v54  ;;  %v3858_v48 = vadd.f32 %v3857_v38, %v3533_v46  ;;  %v3114_v24 = vpop.f32.mrb[129].mxu0  ;;  %v3859_v11 = vpop.f32.mrb[127].mxu1 }
 0x76f   : > { %v3935_v45 = vmax.f32 %v3856_v43, 0.0  ;;  %v3115_v42 = vadd.f32 %v3114_v24, %v6688_v54  ;;  %v3860_v49 = vadd.f32 %v3859_v11, %v3533_v46  ;;  %v3116_v22 = vpop.f32.mrb[130].mxu0 }
 0x770   : > { %4478 = vst [vmem:[%s5704_s21 + $0x7a0] sm:$0xff] %v3934_v4  ;;  %v3193_v55 = vmax.f32 %v3113_v26, 0.0  ;;  %v3936_v47 = vmax.f32 %v3858_v48, 0.0  ;;  %v3117_v15 = vadd.f32 %v3116_v22, %v6690_v3  ;;  %v3118_v37 = vpop.f32.mrb[131].mxu0 }
 0x771   : > { %4479 = vst [vmem:[%s5704_s21 + $0x7a8] sm:$0xff] %v3935_v45  ;;  %v3194_v58 = vmax.f32 %v3115_v42, 0.0  ;;  %v3937_v25 = vmax.f32 %v3860_v49, 0.0  ;;  %v3119_v62 = vadd.f32 %v3118_v37, %v6690_v3 }
 0x772   : > { %4381 = vst [vmem:[%s5704_s21 + $0x5a0] sm:$0xff] %v3193_v55  ;;  %4480 = vst [vmem:[%s5704_s21 + $0x7b0] sm:$0xff] %v3936_v47  ;;  %v3195_v54 = vmax.f32 %v3117_v15, 0.0 }
 0x773   : > { %4382 = vst [vmem:[%s5704_s21 + $0x5a8] sm:$0xff] %v3194_v58  ;;  %4481 = vst [vmem:[%s5704_s21 + $0x7b8] sm:$0xff] %v3937_v25  ;;  %v3196_v35 = vmax.f32 %v3119_v62, 0.0  ;;  %v3863_v63 = vpop.f32.mrb[128].mxu1 }
 0x774   : > { %4383 = vst [vmem:[%s5704_s21 + $0x5b0] sm:$0xff] %v3195_v54  ;;  %v3864_v20 = vadd.f32 %v3863_v63, %v3538_v56  ;;  %v3865_v23 = vpop.f32.mrb[129].mxu1 }
 0x775   : > { %4384 = vst [vmem:[%s5704_s21 + $0x5b8] sm:$0xff] %v3196_v35  ;;  %v3866_v17 = vadd.f32 %v3865_v23, %v3538_v56  ;;  %v3122_v40 = vpop.f32.mrb[132].mxu0  ;;  %v3867_v36 = vpop.f32.mrb[130].mxu1 }
 0x776   : > { %v3938_v61 = vmax.f32 %v3864_v20, 0.0  ;;  %v3123_v3 = vadd.f32 %v3122_v40, %v6692_v14  ;;  %v3868_v59 = vadd.f32 %v3867_v36, %v3543_v6  ;;  %v3124_v2 = vpop.f32.mrb[133].mxu0  ;;  %v3869_v31 = vpop.f32.mrb[131].mxu1 }
 0x777   : > { %v3939_v27 = vmax.f32 %v3866_v17, 0.0  ;;  %v3125_v44 = vadd.f32 %v3124_v2, %v6692_v14  ;;  %v3870_v57 = vadd.f32 %v3869_v31, %v3543_v6  ;;  %v3126_v30 = vpop.f32.mrb[134].mxu0 }
 0x778   : > { %4482 = vst [vmem:[%s5704_s21 + $0x7c0] sm:$0xff] %v3938_v61  ;;  %v3197_v28 = vmax.f32 %v3123_v3, 0.0  ;;  %v3940_v39 = vmax.f32 %v3868_v59, 0.0  ;;  %v3127_v0 = vadd.f32 %v3126_v30, %v6694_v13  ;;  %v3128_v16 = vpop.f32.mrb[135].mxu0 }
 0x779   : > { %4483 = vst [vmem:[%s5704_s21 + $0x7c8] sm:$0xff] %v3939_v27  ;;  %v3198_v9 = vmax.f32 %v3125_v44, 0.0  ;;  %v3941_v32 = vmax.f32 %v3870_v57, 0.0  ;;  %v3129_v18 = vadd.f32 %v3128_v16, %v6694_v13 }
 0x77a   : > { %4385 = vst [vmem:[%s5704_s21 + $0x5c0] sm:$0xff] %v3197_v28  ;;  %4484 = vst [vmem:[%s5704_s21 + $0x7d0] sm:$0xff] %v3940_v39  ;;  %v3199_v14 = vmax.f32 %v3127_v0, 0.0 }
 0x77b   : > { %4386 = vst [vmem:[%s5704_s21 + $0x5c8] sm:$0xff] %v3198_v9  ;;  %4485 = vst [vmem:[%s5704_s21 + $0x7d8] sm:$0xff] %v3941_v32  ;;  %v3200_v53 = vmax.f32 %v3129_v18, 0.0  ;;  %v3873_v52 = vpop.f32.mrb[132].mxu1 }
 0x77c   : > { %4387 = vst [vmem:[%s5704_s21 + $0x5d0] sm:$0xff] %v3199_v14  ;;  %v3874_v51 = vadd.f32 %v3873_v52, %v3548_v21  ;;  %v3875_v8 = vpop.f32.mrb[133].mxu1 }
 0x77d   : > { %4388 = vst [vmem:[%s5704_s21 + $0x5d8] sm:$0xff] %v3200_v53  ;;  %v3876_v50 = vadd.f32 %v3875_v8, %v3548_v21  ;;  %v3132_v60 = vpop.f32.mrb[136].mxu0  ;;  %v3877_v34 = vpop.f32.mrb[134].mxu1 }
 0x77e   : > { %v3942_v1 = vmax.f32 %v3874_v51, 0.0  ;;  %v3133_v13 = vadd.f32 %v3132_v60, %v6696_v7  ;;  %v3878_v12 = vadd.f32 %v3877_v34, %v3553_v19  ;;  %v3134_v33 = vpop.f32.mrb[137].mxu0  ;;  %v3879_v46 = vpop.f32.mrb[135].mxu1 }
 0x77f   : > { %v3943_v5 = vmax.f32 %v3876_v50, 0.0  ;;  %v3135_v10 = vadd.f32 %v3134_v33, %v6696_v7  ;;  %v3880_v43 = vadd.f32 %v3879_v46, %v3553_v19  ;;  %v3136_v41 = vpop.f32.mrb[138].mxu0 }
 0x780   : > { %4486 = vst [vmem:[%s5704_s21 + $0x7e0] sm:$0xff] %v3942_v1  ;;  %v3201_v38 = vmax.f32 %v3133_v13, 0.0  ;;  %v3944_v4 = vmax.f32 %v3878_v12, 0.0  ;;  %v3137_v26 = vadd.f32 %v3136_v41, %v6698_v29  ;;  %v3138_v48 = vpop.f32.mrb[139].mxu0 }
 0x781   : > { %4487 = vst [vmem:[%s5704_s21 + $0x7e8] sm:$0xff] %v3943_v5  ;;  %v3202_v24 = vmax.f32 %v3135_v10, 0.0  ;;  %v3945_v11 = vmax.f32 %v3880_v43, 0.0  ;;  %v3139_v45 = vadd.f32 %v3138_v48, %v6698_v29 }
 0x782   : > { %4389 = vst [vmem:[%s5704_s21 + $0x5e0] sm:$0xff] %v3201_v38  ;;  %4488 = vst [vmem:[%s5704_s21 + $0x7f0] sm:$0xff] %v3944_v4  ;;  %v3203_v42 = vmax.f32 %v3137_v26, 0.0 }
 0x783   : > { %4390 = vst [vmem:[%s5704_s21 + $0x5e8] sm:$0xff] %v3202_v24  ;;  %4489 = vst [vmem:[%s5704_s21 + $0x7f8] sm:$0xff] %v3945_v11  ;;  %v3204_v7 = vmax.f32 %v3139_v45, 0.0 }
 0x784   : > { %4391 = vst [vmem:[%s5704_s21 + $0x5f0] sm:$0xff] %v3203_v42 }
 0x785   : > { %4392 = vst [vmem:[%s5704_s21 + $0x5f8] sm:$0xff] %v3204_v7 }
 0x786 PF: > { %s27_s24 = sadd.s32 1, %s4771_s24  }
 0x787   : > { %p24_p4 = scmp.ge.s32.totalorder %s27_s24, 4  }
 0x789   :  { %26 = sbr.rel (!%p24_p4) target bundleno = 5 (0x5), region = 121 }

</bundles_post_ra>
